<compile_context>
chip_gen: v7x
topology: tpu7x:2x2x1
jax: 0.10.0
libtpu: 0.0.40
codegen_flags: <defaults>
</compile_context>

<pallas_src>
import jax
import jax.numpy as jnp
from jax import lax
from jax.experimental import pallas as pl
from jax.experimental.pallas import tpu as pltpu


def _round_up(x, m):
    return ((x + m - 1) // m) * m


_GATE_PERM = (0, 1, 3, 2)  # PyTorch [i, f, g, o] -> kernel [i, f, o, g]


def _pack_gate_matrix(w, in_pad, hid_pad):
    """PyTorch (4H, In) weight -> (in_pad, 4*hid_pad) transposed, per-gate padded,
    gates reordered to [i, f, o, g], bf16. Padding is zeros so padded lanes of
    h/c stay exactly 0 and never contaminate real lanes."""
    H4, In = w.shape
    H = H4 // 4
    wt = jnp.transpose(w).reshape(In, 4, H)
    wt = wt[:, jnp.array(_GATE_PERM), :]
    wt = jnp.pad(wt, ((0, in_pad - In), (0, 0), (0, hid_pad - H)))
    return wt.reshape(in_pad, 4 * hid_pad).astype(jnp.bfloat16)


def _pack_gate_bias(b_ih, b_hh, hid_pad):
    H = b_ih.shape[0] // 4
    b = (b_ih + b_hh).reshape(4, H)[jnp.array(_GATE_PERM), :]
    b = jnp.pad(b, ((0, 0), (0, hid_pad - H)))
    return b.reshape(1, 4 * hid_pad).astype(jnp.float32)


def init_lstm_params(key, input_size, hidden_size):
    """Deterministic PyTorch-style LSTM parameter init: U(-1/sqrt(H), 1/sqrt(H))."""
    k = 1.0 / jnp.sqrt(jnp.float32(hidden_size))
    ks = jax.random.split(key, 4)
    w_ih = jax.random.uniform(ks[0], (4 * hidden_size, input_size),
                              jnp.float32, -k, k)
    w_hh = jax.random.uniform(ks[1], (4 * hidden_size, hidden_size),
                              jnp.float32, -k, k)
    b_ih = jax.random.uniform(ks[2], (4 * hidden_size,), jnp.float32, -k, k)
    b_hh = jax.random.uniform(ks[3], (4 * hidden_size,), jnp.float32, -k, k)
    return w_ih, w_hh, b_ih, b_hh


def _fused_lstm_encoder_kernel(
    x_ref,       # (T, BB, F)        bf16  time-major chunk of the input
    wih1_ref,    # (F, 4*Hp1)        bf16
    whh1_ref,    # (Hp1, 4*Hp1)      bf16
    b1_ref,      # (1, 4*Hp1)        f32
    w2_ref,      # (Hp1+Hp2, 4*Hp2)  bf16  concat(Wih2, Whh2) along K
    b2_ref,      # (1, 4*Hp2)        f32
    out_ref,     # (BB, Hp2)         f32   final hidden state of layer 2
    gx1_scr,     # (T, BB, 4*Hp1)    f32   hoisted layer-1 input gates (per chunk)
    h1_ref,      # (BB, Hp1)         bf16  carried layer-1 hidden state
    c1_ref,      # (BB, Hp1)         f32   carried layer-1 cell state
    h2_ref,      # (BB, Hp2)         bf16  carried layer-2 hidden state
    c2_ref,      # (BB, Hp2)         f32   carried layer-2 cell state
):
    t_idx = pl.program_id(1)
    T, BB, F = x_ref.shape
    Hp1 = h1_ref.shape[-1]
    Hp2 = h2_ref.shape[-1]

    @pl.when(t_idx == 0)
    def _():
        h1_ref[...] = jnp.zeros_like(h1_ref)
        c1_ref[...] = jnp.zeros_like(c1_ref)
        h2_ref[...] = jnp.zeros_like(h2_ref)
        c2_ref[...] = jnp.zeros_like(c2_ref)

    # Hoisted layer-1 input projection for the whole chunk: one matmul + bias.
    x_all = x_ref[...].reshape(T * BB, F)
    gx1 = jnp.dot(x_all, wih1_ref[...], preferred_element_type=jnp.float32)
    gx1_scr[...] = (gx1 + b1_ref[...]).reshape(T, BB, 4 * Hp1)

    def step(t, carry):
        # ---- layer 1 ----
        g1 = gx1_scr[t] + jnp.dot(h1_ref[...], whh1_ref[...],
                                  preferred_element_type=jnp.float32)
        s1 = jax.nn.sigmoid(g1[:, :3 * Hp1])           # [i, f, o] in one EUP stream
        i1 = s1[:, 0 * Hp1:1 * Hp1]
        f1 = s1[:, 1 * Hp1:2 * Hp1]
        o1 = s1[:, 2 * Hp1:3 * Hp1]
        gg1 = jnp.tanh(g1[:, 3 * Hp1:4 * Hp1])
        c1_new = f1 * c1_ref[...] + i1 * gg1
        h1_new = (o1 * jnp.tanh(c1_new)).astype(jnp.bfloat16)
        c1_ref[...] = c1_new
        h1_ref[...] = h1_new

        # ---- layer 2 (wavefront: consumes h1 of this step directly) ----
        inp2 = jnp.concatenate([h1_new, h2_ref[...]], axis=-1)   # (BB, Hp1+Hp2)
        g2 = jnp.dot(inp2, w2_ref[...],
                     preferred_element_type=jnp.float32) + b2_ref[...]
        s2 = jax.nn.sigmoid(g2[:, :3 * Hp2])
        i2 = s2[:, 0 * Hp2:1 * Hp2]
        f2 = s2[:, 1 * Hp2:2 * Hp2]
        o2 = s2[:, 2 * Hp2:3 * Hp2]
        gg2 = jnp.tanh(g2[:, 3 * Hp2:4 * Hp2])
        c2_new = f2 * c2_ref[...] + i2 * gg2
        h2_new = (o2 * jnp.tanh(c2_new)).astype(jnp.bfloat16)
        c2_ref[...] = c2_new
        h2_ref[...] = h2_new
        return carry

    lax.fori_loop(0, T, step, 0, unroll=min(T, 8))

    @pl.when(t_idx == pl.num_programs(1) - 1)
    def _():
        out_ref[...] = h2_ref[...].astype(jnp.float32)


def _pick_seq_chunk(S, BB, Hp1, budget_bytes=4 << 20):
    """Largest divisor of S whose per-chunk gx1 scratch stays under budget."""
    best = 1
    for T in range(1, S + 1):
        if S % T == 0 and T * BB * (4 * Hp1) * 4 <= budget_bytes:
            best = T
    return best


def _vmem_budget_bytes(T, BB, F, Hp1, Hp2):
    x_b = 2 * T * BB * F * 2                                        # double-buffered
    w_b = 2 * ((F * 4 * Hp1 + Hp1 * 4 * Hp1 + (Hp1 + Hp2) * 4 * Hp2) * 2
               + (4 * Hp1 + 4 * Hp2) * 4)
    out_b = 2 * BB * Hp2 * 4
    scr_b = (T * BB * 4 * Hp1 * 4
             + BB * Hp1 * (2 + 4) + BB * Hp2 * (2 + 4))
    total = x_b + w_b + out_b + scr_b
    return int(min(max(2 * total + (8 << 20), 32 << 20), 100 << 20))


class LSTMEncoderPallas:
    def __init__(self, seq_len, n_features, embedding_dim=64, *, key):
        self.seq_len = seq_len
        self.n_features = n_features
        self.embedding_dim = embedding_dim
        self.hidden_dim = 2 * embedding_dim

        k1, k2 = jax.random.split(key)
        self.rnn1 = init_lstm_params(k1, n_features, self.hidden_dim)
        self.rnn2 = init_lstm_params(k2, self.hidden_dim, embedding_dim)

        # Per-gate lane-padded hidden dims (multiples of 128).
        self.Hp1 = _round_up(self.hidden_dim, 128)
        self.Hp2 = _round_up(self.embedding_dim, 128)

        w_ih1, w_hh1, b_ih1, b_hh1 = self.rnn1
        w_ih2, w_hh2, b_ih2, b_hh2 = self.rnn2

        # Layer 1: keep the (tiny) feature dim unpadded; Mosaic handles K < 128.
        self.wih1 = _pack_gate_matrix(w_ih1, n_features, self.Hp1)
        self.whh1 = _pack_gate_matrix(w_hh1, self.Hp1, self.Hp1)
        self.b1 = _pack_gate_bias(b_ih1, b_hh1, self.Hp1)

        # Layer 2: concat input and recurrent weights along K for one matmul/step.
        wih2 = _pack_gate_matrix(w_ih2, self.Hp1, self.Hp2)
        whh2 = _pack_gate_matrix(w_hh2, self.Hp2, self.Hp2)
        self.w2 = jnp.concatenate([wih2, whh2], axis=0)   # (Hp1+Hp2, 4*Hp2)
        self.b2 = _pack_gate_bias(b_ih2, b_hh2, self.Hp2)

    def __call__(self, x):
        # x: (B, seq_len, n_features) float32, batch_first like the PyTorch module.
        B, S, F = x.shape
        Hp1, Hp2 = self.Hp1, self.Hp2

        # Batch padded to the bf16 sublane tile (16); split into 2 batch blocks
        # when large enough so v7x megacore can take half each.
        Bp = _round_up(max(B, 16), 16)
        if Bp >= 32:
            Bp = _round_up(Bp, 32)
            nb = 2
        else:
            nb = 1
        BB = Bp // nb

        T = _pick_seq_chunk(S, BB, Hp1)
        nt = S // T

        # Time-major, batch zero-padded, bf16 for the MXU input projection.
        x_sbf = jnp.transpose(x, (1, 0, 2))
        x_sbf = jnp.pad(x_sbf, ((0, 0), (0, Bp - B), (0, 0))).astype(jnp.bfloat16)

        out = pl.pallas_call(
            _fused_lstm_encoder_kernel,
            out_shape=jax.ShapeDtypeStruct((Bp, Hp2), jnp.float32),
            grid=(nb, nt),
            in_specs=[
                pl.BlockSpec((T, BB, F), lambda b, t: (t, b, 0)),
                pl.BlockSpec((F, 4 * Hp1), lambda b, t: (0, 0)),
                pl.BlockSpec((Hp1, 4 * Hp1), lambda b, t: (0, 0)),
                pl.BlockSpec((1, 4 * Hp1), lambda b, t: (0, 0)),
                pl.BlockSpec((Hp1 + Hp2, 4 * Hp2), lambda b, t: (0, 0)),
                pl.BlockSpec((1, 4 * Hp2), lambda b, t: (0, 0)),
            ],
            out_specs=pl.BlockSpec((BB, Hp2), lambda b, t: (b, 0)),
            scratch_shapes=[
                pltpu.VMEM((T, BB, 4 * Hp1), jnp.float32),   # gx1 chunk
                pltpu.VMEM((BB, Hp1), jnp.bfloat16),         # h layer 1
                pltpu.VMEM((BB, Hp1), jnp.float32),          # c layer 1
                pltpu.VMEM((BB, Hp2), jnp.bfloat16),         # h layer 2
                pltpu.VMEM((BB, Hp2), jnp.float32),          # c layer 2
            ],
            compiler_params=pltpu.CompilerParams(
                dimension_semantics=("parallel", "arbitrary"),
                vmem_limit_bytes=_vmem_budget_bytes(T, BB, F, Hp1, Hp2),
            ),
        )(x_sbf, self.wih1, self.whh1, self.b1, self.w2, self.b2)

        # hidden_n of rnn2 == last hidden state; PyTorch returns
        # hidden_n.permute(1, 0, 2) -> (B, num_layers=1, E).
        hidden_n = out[:B, :self.embedding_dim]
        return hidden_n[:, None, :]


if __name__ == "__main__":
    key = jax.random.PRNGKey(0)
    k_params, k_x = jax.random.split(key)

    batch = 2
    seq_len = 8
    n_features = 4
    embedding_dim = 32

    model = LSTMEncoderPallas(seq_len, n_features, embedding_dim, key=k_params)
    x = jax.random.normal(k_x, (batch, seq_len, n_features), jnp.float32)

    out = model(x)
    out = jax.block_until_ready(out)

    assert out.shape == (batch, 1, embedding_dim), out.shape
    assert out.dtype == jnp.float32
    print("KERNEL_OK")
</pallas_src>

<mosaic_0001>
module attributes {stable_mosaic.version = 11 : i64} {
  func.func @_fused_lstm_encoder_kernel(%arg0: i32, %arg1: i32, %arg2: memref<8x16x4xbf16, #tpu.memory_space<vmem>>, %arg3: memref<4x512xbf16, #tpu.memory_space<vmem>>, %arg4: memref<128x512xbf16, #tpu.memory_space<vmem>>, %arg5: memref<1x512xf32, #tpu.memory_space<vmem>>, %arg6: memref<256x512xbf16, #tpu.memory_space<vmem>>, %arg7: memref<1x512xf32, #tpu.memory_space<vmem>>, %arg8: memref<16x128xf32, #tpu.memory_space<vmem>>, %arg9: memref<8x16x512xf32, #tpu.memory_space<vmem>>, %arg10: memref<16x128xbf16, #tpu.memory_space<vmem>>, %arg11: memref<16x128xf32, #tpu.memory_space<vmem>>, %arg12: memref<16x128xbf16, #tpu.memory_space<vmem>>, %arg13: memref<16x128xf32, #tpu.memory_space<vmem>>) attributes {dimension_semantics = [#tpu.dimension_semantics<parallel>, #tpu.dimension_semantics<arbitrary>], iteration_bounds = array<i64: 1, 1>, scalar_prefetch = 0 : i64, scratch_operands = 5 : i64, tpu.core_type = #tpu.core_type<tc>, window_params = [{transform_indices = @transform_0, window_bounds = array<i64: 8, 16, 4>}, {pipeline_mode = #tpu.pipeline_mode<synchronous>, transform_indices = @transform_1, window_bounds = array<i64: 4, 512>}, {pipeline_mode = #tpu.pipeline_mode<synchronous>, transform_indices = @transform_2, window_bounds = array<i64: 128, 512>}, {pipeline_mode = #tpu.pipeline_mode<synchronous>, transform_indices = @transform_3, window_bounds = array<i64: 1, 512>}, {pipeline_mode = #tpu.pipeline_mode<synchronous>, transform_indices = @transform_4, window_bounds = array<i64: 256, 512>}, {pipeline_mode = #tpu.pipeline_mode<synchronous>, transform_indices = @transform_5, window_bounds = array<i64: 1, 512>}, {transform_indices = @transform_6, window_bounds = array<i64: 16, 128>}]} {
    %c0_i32 = arith.constant 0 : i32
    %0 = arith.cmpi eq, %arg1, %c0_i32 : i32
    %1 = arith.extui %0 : i1 to i32
    %c0_i32_0 = arith.constant 0 : i32
    %2 = arith.cmpi ne, %1, %c0_i32_0 : i32
    scf.if %2 {
      %cst_237 = arith.constant 0.000000e+00 : bf16
      %447 = vector.broadcast %cst_237 : bf16 to vector<16x128xbf16>
      %c0_238 = arith.constant 0 : index
      %c0_239 = arith.constant 0 : index
      %448 = vector.load %arg10[%c0_238, %c0_239] : memref<16x128xbf16, #tpu.memory_space<vmem>>, vector<16x128xbf16>
      tpu.vector_store %arg10[%c0_238, %c0_239], %447 {strides = array<i32>} : memref<16x128xbf16, #tpu.memory_space<vmem>>, vector<16x128xbf16>,
      %cst_240 = arith.constant 0.000000e+00 : f32
      %449 = vector.broadcast %cst_240 : f32 to vector<16x128xf32>
      %c0_241 = arith.constant 0 : index
      %c0_242 = arith.constant 0 : index
      %450 = vector.load %arg11[%c0_241, %c0_242] : memref<16x128xf32, #tpu.memory_space<vmem>>, vector<16x128xf32>
      tpu.vector_store %arg11[%c0_241, %c0_242], %449 {strides = array<i32>} : memref<16x128xf32, #tpu.memory_space<vmem>>, vector<16x128xf32>,
      %cst_243 = arith.constant 0.000000e+00 : bf16
      %451 = vector.broadcast %cst_243 : bf16 to vector<16x128xbf16>
      %c0_244 = arith.constant 0 : index
      %c0_245 = arith.constant 0 : index
      %452 = vector.load %arg12[%c0_244, %c0_245] : memref<16x128xbf16, #tpu.memory_space<vmem>>, vector<16x128xbf16>
      tpu.vector_store %arg12[%c0_244, %c0_245], %451 {strides = array<i32>} : memref<16x128xbf16, #tpu.memory_space<vmem>>, vector<16x128xbf16>,
      %cst_246 = arith.constant 0.000000e+00 : f32
      %453 = vector.broadcast %cst_246 : f32 to vector<16x128xf32>
      %c0_247 = arith.constant 0 : index
      %c0_248 = arith.constant 0 : index
      %454 = vector.load %arg13[%c0_247, %c0_248] : memref<16x128xf32, #tpu.memory_space<vmem>>, vector<16x128xf32>
      tpu.vector_store %arg13[%c0_247, %c0_248], %453 {strides = array<i32>} : memref<16x128xf32, #tpu.memory_space<vmem>>, vector<16x128xf32>,
    } else {
    }
    %c0 = arith.constant 0 : index
    %c0_1 = arith.constant 0 : index
    %c0_2 = arith.constant 0 : index
    %3 = vector.load %arg2[%c0, %c0_1, %c0_2] : memref<8x16x4xbf16, #tpu.memory_space<vmem>>, vector<8x16x4xbf16>
    %4 = vector.shape_cast %3 : vector<8x16x4xbf16> to vector<128x4xbf16>
    %c0_3 = arith.constant 0 : index
    %c0_4 = arith.constant 0 : index
    %5 = vector.load %arg3[%c0_3, %c0_4] : memref<4x512xbf16, #tpu.memory_space<vmem>>, vector<4x512xbf16>
    %cst = arith.constant dense<0.000000e+00> : vector<128x512xf32>
    %6 = tpu.matmul %4, %5, %cst {dimension_numbers = #tpu.dot_dimension_numbers<[1], [0], [0], [1], [0, 0, 1, 1], [], []>} : vector<128x4xbf16>, vector<4x512xbf16>, vector<128x512xf32> -> vector<128x512xf32>
    %c0_5 = arith.constant 0 : index
    %c0_6 = arith.constant 0 : index
    %7 = vector.load %arg5[%c0_5, %c0_6] : memref<1x512xf32, #tpu.memory_space<vmem>>, vector<1x512xf32>
    %8 = vector.broadcast %7 : vector<1x512xf32> to vector<128x512xf32>
    %9 = arith.addf %6, %8 : vector<128x512xf32>
    %10 = vector.shape_cast %9 : vector<128x512xf32> to vector<8x16x512xf32>
    %c0_7 = arith.constant 0 : index
    %c0_8 = arith.constant 0 : index
    %c0_9 = arith.constant 0 : index
    %11 = vector.load %arg9[%c0_7, %c0_8, %c0_9] : memref<8x16x512xf32, #tpu.memory_space<vmem>>, vector<8x16x512xf32>
    tpu.vector_store %arg9[%c0_7, %c0_8, %c0_9], %10 {strides = array<i32>} : memref<8x16x512xf32, #tpu.memory_space<vmem>>, vector<8x16x512xf32>,
    %c0_i32_10 = arith.constant 0 : i32
    %12 = arith.index_cast %c0_i32_10 : i32 to index
    %c0_11 = arith.constant 0 : index
    %c0_12 = arith.constant 0 : index
    %13 = vector.load %arg9[%12, %c0_11, %c0_12] : memref<8x16x512xf32, #tpu.memory_space<vmem>>, vector<1x16x512xf32>
    %14 = vector.shape_cast %13 : vector<1x16x512xf32> to vector<16x512xf32>
    %c0_13 = arith.constant 0 : index
    %c0_14 = arith.constant 0 : index
    %15 = vector.load %arg10[%c0_13, %c0_14] : memref<16x128xbf16, #tpu.memory_space<vmem>>, vector<16x128xbf16>
    %c0_15 = arith.constant 0 : index
    %c0_16 = arith.constant 0 : index
    %16 = vector.load %arg4[%c0_15, %c0_16] : memref<128x512xbf16, #tpu.memory_space<vmem>>, vector<128x512xbf16>
    %cst_17 = arith.constant dense<0.000000e+00> : vector<16x512xf32>
    %17 = tpu.matmul %15, %16, %cst_17 {dimension_numbers = #tpu.dot_dimension_numbers<[1], [0], [0], [1], [0, 0, 1, 1], [], []>} : vector<16x128xbf16>, vector<128x512xbf16>, vector<16x512xf32> -> vector<16x512xf32>
    %18 = arith.addf %14, %17 : vector<16x512xf32>
    %19 = vector.extract_strided_slice %18 {offsets = [0, 0], sizes = [16, 384], strides = [1, 1]} : vector<16x512xf32> to vector<16x384xf32>
    %20 = arith.negf %19 : vector<16x384xf32>
    %21 = math.exp %20 : vector<16x384xf32>
    %cst_18 = arith.constant 1.000000e+00 : f32
    %22 = vector.broadcast %cst_18 : f32 to vector<16x384xf32>
    %23 = arith.addf %22, %21 : vector<16x384xf32>
    %24 = arith.divf %22, %23 : vector<16x384xf32>
    %25 = vector.extract_strided_slice %24 {offsets = [0, 0], sizes = [16, 128], strides = [1, 1]} : vector<16x384xf32> to vector<16x128xf32>
    %26 = vector.extract_strided_slice %24 {offsets = [0, 128], sizes = [16, 128], strides = [1, 1]} : vector<16x384xf32> to vector<16x128xf32>
    %27 = vector.extract_strided_slice %24 {offsets = [0, 256], sizes = [16, 128], strides = [1, 1]} : vector<16x384xf32> to vector<16x128xf32>
    %28 = vector.extract_strided_slice %18 {offsets = [0, 384], sizes = [16, 128], strides = [1, 1]} : vector<16x512xf32> to vector<16x128xf32>
    %29 = math.tanh %28 : vector<16x128xf32>
    %c0_19 = arith.constant 0 : index
    %c0_20 = arith.constant 0 : index
    %30 = vector.load %arg11[%c0_19, %c0_20] : memref<16x128xf32, #tpu.memory_space<vmem>>, vector<16x128xf32>
    %31 = arith.mulf %26, %30 : vector<16x128xf32>
    %32 = arith.mulf %25, %29 : vector<16x128xf32>
    %33 = arith.addf %31, %32 : vector<16x128xf32>
    %34 = math.tanh %33 : vector<16x128xf32>
    %35 = arith.mulf %27, %34 : vector<16x128xf32>
    %36 = arith.truncf %35 : vector<16x128xf32> to vector<16x128xbf16>
    %c0_21 = arith.constant 0 : index
    %c0_22 = arith.constant 0 : index
    %37 = vector.load %arg11[%c0_21, %c0_22] : memref<16x128xf32, #tpu.memory_space<vmem>>, vector<16x128xf32>
    tpu.vector_store %arg11[%c0_21, %c0_22], %33 {strides = array<i32>} : memref<16x128xf32, #tpu.memory_space<vmem>>, vector<16x128xf32>,
    %c0_23 = arith.constant 0 : index
    %c0_24 = arith.constant 0 : index
    %38 = vector.load %arg10[%c0_23, %c0_24] : memref<16x128xbf16, #tpu.memory_space<vmem>>, vector<16x128xbf16>
    tpu.vector_store %arg10[%c0_23, %c0_24], %36 {strides = array<i32>} : memref<16x128xbf16, #tpu.memory_space<vmem>>, vector<16x128xbf16>,
    %c0_25 = arith.constant 0 : index
    %c0_26 = arith.constant 0 : index
    %39 = vector.load %arg12[%c0_25, %c0_26] : memref<16x128xbf16, #tpu.memory_space<vmem>>, vector<16x128xbf16>
    %40 = tpu.concatenate %36, %39 in 1 : vector<16x128xbf16>, vector<16x128xbf16> -> vector<16x256xbf16>
    %c0_27 = arith.constant 0 : index
    %c0_28 = arith.constant 0 : index
    %41 = vector.load %arg6[%c0_27, %c0_28] : memref<256x512xbf16, #tpu.memory_space<vmem>>, vector<256x512xbf16>
    %cst_29 = arith.constant dense<0.000000e+00> : vector<16x512xf32>
    %42 = tpu.matmul %40, %41, %cst_29 {dimension_numbers = #tpu.dot_dimension_numbers<[1], [0], [0], [1], [0, 0, 1, 1], [], []>} : vector<16x256xbf16>, vector<256x512xbf16>, vector<16x512xf32> -> vector<16x512xf32>
    %c0_30 = arith.constant 0 : index
    %c0_31 = arith.constant 0 : index
    %43 = vector.load %arg7[%c0_30, %c0_31] : memref<1x512xf32, #tpu.memory_space<vmem>>, vector<1x512xf32>
    %44 = vector.broadcast %43 : vector<1x512xf32> to vector<16x512xf32>
    %45 = arith.addf %42, %44 : vector<16x512xf32>
    %46 = vector.extract_strided_slice %45 {offsets = [0, 0], sizes = [16, 384], strides = [1, 1]} : vector<16x512xf32> to vector<16x384xf32>
    %47 = arith.negf %46 : vector<16x384xf32>
    %48 = math.exp %47 : vector<16x384xf32>
    %cst_32 = arith.constant 1.000000e+00 : f32
    %49 = vector.broadcast %cst_32 : f32 to vector<16x384xf32>
    %50 = arith.addf %49, %48 : vector<16x384xf32>
    %51 = arith.divf %49, %50 : vector<16x384xf32>
    %52 = vector.extract_strided_slice %51 {offsets = [0, 0], sizes = [16, 128], strides = [1, 1]} : vector<16x384xf32> to vector<16x128xf32>
    %53 = vector.extract_strided_slice %51 {offsets = [0, 128], sizes = [16, 128], strides = [1, 1]} : vector<16x384xf32> to vector<16x128xf32>
    %54 = vector.extract_strided_slice %51 {offsets = [0, 256], sizes = [16, 128], strides = [1, 1]} : vector<16x384xf32> to vector<16x128xf32>
    %55 = vector.extract_strided_slice %45 {offsets = [0, 384], sizes = [16, 128], strides = [1, 1]} : vector<16x512xf32> to vector<16x128xf32>
    %56 = math.tanh %55 : vector<16x128xf32>
    %c0_33 = arith.constant 0 : index
    %c0_34 = arith.constant 0 : index
    %57 = vector.load %arg13[%c0_33, %c0_34] : memref<16x128xf32, #tpu.memory_space<vmem>>, vector<16x128xf32>
    %58 = arith.mulf %53, %57 : vector<16x128xf32>
    %59 = arith.mulf %52, %56 : vector<16x128xf32>
    %60 = arith.addf %58, %59 : vector<16x128xf32>
    %61 = math.tanh %60 : vector<16x128xf32>
    %62 = arith.mulf %54, %61 : vector<16x128xf32>
    %63 = arith.truncf %62 : vector<16x128xf32> to vector<16x128xbf16>
    %c0_35 = arith.constant 0 : index
    %c0_36 = arith.constant 0 : index
    %64 = vector.load %arg13[%c0_35, %c0_36] : memref<16x128xf32, #tpu.memory_space<vmem>>, vector<16x128xf32>
    tpu.vector_store %arg13[%c0_35, %c0_36], %60 {strides = array<i32>} : memref<16x128xf32, #tpu.memory_space<vmem>>, vector<16x128xf32>,
    %c0_37 = arith.constant 0 : index
    %c0_38 = arith.constant 0 : index
    %65 = vector.load %arg12[%c0_37, %c0_38] : memref<16x128xbf16, #tpu.memory_space<vmem>>, vector<16x128xbf16>
    tpu.vector_store %arg12[%c0_37, %c0_38], %63 {strides = array<i32>} : memref<16x128xbf16, #tpu.memory_space<vmem>>, vector<16x128xbf16>,
    %c1_i32 = arith.constant 1 : i32
    %66 = arith.index_cast %c1_i32 : i32 to index
    %c0_39 = arith.constant 0 : index
    %c0_40 = arith.constant 0 : index
    %67 = vector.load %arg9[%66, %c0_39, %c0_40] : memref<8x16x512xf32, #tpu.memory_space<vmem>>, vector<1x16x512xf32>
    %68 = vector.shape_cast %67 : vector<1x16x512xf32> to vector<16x512xf32>
    %c0_41 = arith.constant 0 : index
    %c0_42 = arith.constant 0 : index
    %69 = vector.load %arg10[%c0_41, %c0_42] : memref<16x128xbf16, #tpu.memory_space<vmem>>, vector<16x128xbf16>
    %c0_43 = arith.constant 0 : index
    %c0_44 = arith.constant 0 : index
    %70 = vector.load %arg4[%c0_43, %c0_44] : memref<128x512xbf16, #tpu.memory_space<vmem>>, vector<128x512xbf16>
    %cst_45 = arith.constant dense<0.000000e+00> : vector<16x512xf32>
    %71 = tpu.matmul %69, %70, %cst_45 {dimension_numbers = #tpu.dot_dimension_numbers<[1], [0], [0], [1], [0, 0, 1, 1], [], []>} : vector<16x128xbf16>, vector<128x512xbf16>, vector<16x512xf32> -> vector<16x512xf32>
    %72 = arith.addf %68, %71 : vector<16x512xf32>
    %73 = vector.extract_strided_slice %72 {offsets = [0, 0], sizes = [16, 384], strides = [1, 1]} : vector<16x512xf32> to vector<16x384xf32>
    %74 = arith.negf %73 : vector<16x384xf32>
    %75 = math.exp %74 : vector<16x384xf32>
    %cst_46 = arith.constant 1.000000e+00 : f32
    %76 = vector.broadcast %cst_46 : f32 to vector<16x384xf32>
    %77 = arith.addf %76, %75 : vector<16x384xf32>
    %78 = arith.divf %76, %77 : vector<16x384xf32>
    %79 = vector.extract_strided_slice %78 {offsets = [0, 0], sizes = [16, 128], strides = [1, 1]} : vector<16x384xf32> to vector<16x128xf32>
    %80 = vector.extract_strided_slice %78 {offsets = [0, 128], sizes = [16, 128], strides = [1, 1]} : vector<16x384xf32> to vector<16x128xf32>
    %81 = vector.extract_strided_slice %78 {offsets = [0, 256], sizes = [16, 128], strides = [1, 1]} : vector<16x384xf32> to vector<16x128xf32>
    %82 = vector.extract_strided_slice %72 {offsets = [0, 384], sizes = [16, 128], strides = [1, 1]} : vector<16x512xf32> to vector<16x128xf32>
    %83 = math.tanh %82 : vector<16x128xf32>
    %c0_47 = arith.constant 0 : index
    %c0_48 = arith.constant 0 : index
    %84 = vector.load %arg11[%c0_47, %c0_48] : memref<16x128xf32, #tpu.memory_space<vmem>>, vector<16x128xf32>
    %85 = arith.mulf %80, %84 : vector<16x128xf32>
    %86 = arith.mulf %79, %83 : vector<16x128xf32>
    %87 = arith.addf %85, %86 : vector<16x128xf32>
    %88 = math.tanh %87 : vector<16x128xf32>
    %89 = arith.mulf %81, %88 : vector<16x128xf32>
    %90 = arith.truncf %89 : vector<16x128xf32> to vector<16x128xbf16>
    %c0_49 = arith.constant 0 : index
    %c0_50 = arith.constant 0 : index
    %91 = vector.load %arg11[%c0_49, %c0_50] : memref<16x128xf32, #tpu.memory_space<vmem>>, vector<16x128xf32>
    tpu.vector_store %arg11[%c0_49, %c0_50], %87 {strides = array<i32>} : memref<16x128xf32, #tpu.memory_space<vmem>>, vector<16x128xf32>,
    %c0_51 = arith.constant 0 : index
    %c0_52 = arith.constant 0 : index
    %92 = vector.load %arg10[%c0_51, %c0_52] : memref<16x128xbf16, #tpu.memory_space<vmem>>, vector<16x128xbf16>
    tpu.vector_store %arg10[%c0_51, %c0_52], %90 {strides = array<i32>} : memref<16x128xbf16, #tpu.memory_space<vmem>>, vector<16x128xbf16>,
    %c0_53 = arith.constant 0 : index
    %c0_54 = arith.constant 0 : index
    %93 = vector.load %arg12[%c0_53, %c0_54] : memref<16x128xbf16, #tpu.memory_space<vmem>>, vector<16x128xbf16>
    %94 = tpu.concatenate %90, %93 in 1 : vector<16x128xbf16>, vector<16x128xbf16> -> vector<16x256xbf16>
    %c0_55 = arith.constant 0 : index
    %c0_56 = arith.constant 0 : index
    %95 = vector.load %arg6[%c0_55, %c0_56] : memref<256x512xbf16, #tpu.memory_space<vmem>>, vector<256x512xbf16>
    %cst_57 = arith.constant dense<0.000000e+00> : vector<16x512xf32>
    %96 = tpu.matmul %94, %95, %cst_57 {dimension_numbers = #tpu.dot_dimension_numbers<[1], [0], [0], [1], [0, 0, 1, 1], [], []>} : vector<16x256xbf16>, vector<256x512xbf16>, vector<16x512xf32> -> vector<16x512xf32>
    %c0_58 = arith.constant 0 : index
    %c0_59 = arith.constant 0 : index
    %97 = vector.load %arg7[%c0_58, %c0_59] : memref<1x512xf32, #tpu.memory_space<vmem>>, vector<1x512xf32>
    %98 = vector.broadcast %97 : vector<1x512xf32> to vector<16x512xf32>
    %99 = arith.addf %96, %98 : vector<16x512xf32>
    %100 = vector.extract_strided_slice %99 {offsets = [0, 0], sizes = [16, 384], strides = [1, 1]} : vector<16x512xf32> to vector<16x384xf32>
    %101 = arith.negf %100 : vector<16x384xf32>
    %102 = math.exp %101 : vector<16x384xf32>
    %cst_60 = arith.constant 1.000000e+00 : f32
    %103 = vector.broadcast %cst_60 : f32 to vector<16x384xf32>
    %104 = arith.addf %103, %102 : vector<16x384xf32>
    %105 = arith.divf %103, %104 : vector<16x384xf32>
    %106 = vector.extract_strided_slice %105 {offsets = [0, 0], sizes = [16, 128], strides = [1, 1]} : vector<16x384xf32> to vector<16x128xf32>
    %107 = vector.extract_strided_slice %105 {offsets = [0, 128], sizes = [16, 128], strides = [1, 1]} : vector<16x384xf32> to vector<16x128xf32>
    %108 = vector.extract_strided_slice %105 {offsets = [0, 256], sizes = [16, 128], strides = [1, 1]} : vector<16x384xf32> to vector<16x128xf32>
    %109 = vector.extract_strided_slice %99 {offsets = [0, 384], sizes = [16, 128], strides = [1, 1]} : vector<16x512xf32> to vector<16x128xf32>
    %110 = math.tanh %109 : vector<16x128xf32>
    %c0_61 = arith.constant 0 : index
    %c0_62 = arith.constant 0 : index
    %111 = vector.load %arg13[%c0_61, %c0_62] : memref<16x128xf32, #tpu.memory_space<vmem>>, vector<16x128xf32>
    %112 = arith.mulf %107, %111 : vector<16x128xf32>
    %113 = arith.mulf %106, %110 : vector<16x128xf32>
    %114 = arith.addf %112, %113 : vector<16x128xf32>
    %115 = math.tanh %114 : vector<16x128xf32>
    %116 = arith.mulf %108, %115 : vector<16x128xf32>
    %117 = arith.truncf %116 : vector<16x128xf32> to vector<16x128xbf16>
    %c0_63 = arith.constant 0 : index
    %c0_64 = arith.constant 0 : index
    %118 = vector.load %arg13[%c0_63, %c0_64] : memref<16x128xf32, #tpu.memory_space<vmem>>, vector<16x128xf32>
    tpu.vector_store %arg13[%c0_63, %c0_64], %114 {strides = array<i32>} : memref<16x128xf32, #tpu.memory_space<vmem>>, vector<16x128xf32>,
    %c0_65 = arith.constant 0 : index
    %c0_66 = arith.constant 0 : index
    %119 = vector.load %arg12[%c0_65, %c0_66] : memref<16x128xbf16, #tpu.memory_space<vmem>>, vector<16x128xbf16>
    tpu.vector_store %arg12[%c0_65, %c0_66], %117 {strides = array<i32>} : memref<16x128xbf16, #tpu.memory_space<vmem>>, vector<16x128xbf16>,
    %c2_i32 = arith.constant 2 : i32
    %120 = arith.index_cast %c2_i32 : i32 to index
    %c0_67 = arith.constant 0 : index
    %c0_68 = arith.constant 0 : index
    %121 = vector.load %arg9[%120, %c0_67, %c0_68] : memref<8x16x512xf32, #tpu.memory_space<vmem>>, vector<1x16x512xf32>
    %122 = vector.shape_cast %121 : vector<1x16x512xf32> to vector<16x512xf32>
    %c0_69 = arith.constant 0 : index
    %c0_70 = arith.constant 0 : index
    %123 = vector.load %arg10[%c0_69, %c0_70] : memref<16x128xbf16, #tpu.memory_space<vmem>>, vector<16x128xbf16>
    %c0_71 = arith.constant 0 : index
    %c0_72 = arith.constant 0 : index
    %124 = vector.load %arg4[%c0_71, %c0_72] : memref<128x512xbf16, #tpu.memory_space<vmem>>, vector<128x512xbf16>
    %cst_73 = arith.constant dense<0.000000e+00> : vector<16x512xf32>
    %125 = tpu.matmul %123, %124, %cst_73 {dimension_numbers = #tpu.dot_dimension_numbers<[1], [0], [0], [1], [0, 0, 1, 1], [], []>} : vector<16x128xbf16>, vector<128x512xbf16>, vector<16x512xf32> -> vector<16x512xf32>
    %126 = arith.addf %122, %125 : vector<16x512xf32>
    %127 = vector.extract_strided_slice %126 {offsets = [0, 0], sizes = [16, 384], strides = [1, 1]} : vector<16x512xf32> to vector<16x384xf32>
    %128 = arith.negf %127 : vector<16x384xf32>
    %129 = math.exp %128 : vector<16x384xf32>
    %cst_74 = arith.constant 1.000000e+00 : f32
    %130 = vector.broadcast %cst_74 : f32 to vector<16x384xf32>
    %131 = arith.addf %130, %129 : vector<16x384xf32>
    %132 = arith.divf %130, %131 : vector<16x384xf32>
    %133 = vector.extract_strided_slice %132 {offsets = [0, 0], sizes = [16, 128], strides = [1, 1]} : vector<16x384xf32> to vector<16x128xf32>
    %134 = vector.extract_strided_slice %132 {offsets = [0, 128], sizes = [16, 128], strides = [1, 1]} : vector<16x384xf32> to vector<16x128xf32>
    %135 = vector.extract_strided_slice %132 {offsets = [0, 256], sizes = [16, 128], strides = [1, 1]} : vector<16x384xf32> to vector<16x128xf32>
    %136 = vector.extract_strided_slice %126 {offsets = [0, 384], sizes = [16, 128], strides = [1, 1]} : vector<16x512xf32> to vector<16x128xf32>
    %137 = math.tanh %136 : vector<16x128xf32>
    %c0_75 = arith.constant 0 : index
    %c0_76 = arith.constant 0 : index
    %138 = vector.load %arg11[%c0_75, %c0_76] : memref<16x128xf32, #tpu.memory_space<vmem>>, vector<16x128xf32>
    %139 = arith.mulf %134, %138 : vector<16x128xf32>
    %140 = arith.mulf %133, %137 : vector<16x128xf32>
    %141 = arith.addf %139, %140 : vector<16x128xf32>
    %142 = math.tanh %141 : vector<16x128xf32>
    %143 = arith.mulf %135, %142 : vector<16x128xf32>
    %144 = arith.truncf %143 : vector<16x128xf32> to vector<16x128xbf16>
    %c0_77 = arith.constant 0 : index
    %c0_78 = arith.constant 0 : index
    %145 = vector.load %arg11[%c0_77, %c0_78] : memref<16x128xf32, #tpu.memory_space<vmem>>, vector<16x128xf32>
    tpu.vector_store %arg11[%c0_77, %c0_78], %141 {strides = array<i32>} : memref<16x128xf32, #tpu.memory_space<vmem>>, vector<16x128xf32>,
    %c0_79 = arith.constant 0 : index
    %c0_80 = arith.constant 0 : index
    %146 = vector.load %arg10[%c0_79, %c0_80] : memref<16x128xbf16, #tpu.memory_space<vmem>>, vector<16x128xbf16>
    tpu.vector_store %arg10[%c0_79, %c0_80], %144 {strides = array<i32>} : memref<16x128xbf16, #tpu.memory_space<vmem>>, vector<16x128xbf16>,
    %c0_81 = arith.constant 0 : index
    %c0_82 = arith.constant 0 : index
    %147 = vector.load %arg12[%c0_81, %c0_82] : memref<16x128xbf16, #tpu.memory_space<vmem>>, vector<16x128xbf16>
    %148 = tpu.concatenate %144, %147 in 1 : vector<16x128xbf16>, vector<16x128xbf16> -> vector<16x256xbf16>
    %c0_83 = arith.constant 0 : index
    %c0_84 = arith.constant 0 : index
    %149 = vector.load %arg6[%c0_83, %c0_84] : memref<256x512xbf16, #tpu.memory_space<vmem>>, vector<256x512xbf16>
    %cst_85 = arith.constant dense<0.000000e+00> : vector<16x512xf32>
    %150 = tpu.matmul %148, %149, %cst_85 {dimension_numbers = #tpu.dot_dimension_numbers<[1], [0], [0], [1], [0, 0, 1, 1], [], []>} : vector<16x256xbf16>, vector<256x512xbf16>, vector<16x512xf32> -> vector<16x512xf32>
    %c0_86 = arith.constant 0 : index
    %c0_87 = arith.constant 0 : index
    %151 = vector.load %arg7[%c0_86, %c0_87] : memref<1x512xf32, #tpu.memory_space<vmem>>, vector<1x512xf32>
    %152 = vector.broadcast %151 : vector<1x512xf32> to vector<16x512xf32>
    %153 = arith.addf %150, %152 : vector<16x512xf32>
    %154 = vector.extract_strided_slice %153 {offsets = [0, 0], sizes = [16, 384], strides = [1, 1]} : vector<16x512xf32> to vector<16x384xf32>
    %155 = arith.negf %154 : vector<16x384xf32>
    %156 = math.exp %155 : vector<16x384xf32>
    %cst_88 = arith.constant 1.000000e+00 : f32
    %157 = vector.broadcast %cst_88 : f32 to vector<16x384xf32>
    %158 = arith.addf %157, %156 : vector<16x384xf32>
    %159 = arith.divf %157, %158 : vector<16x384xf32>
    %160 = vector.extract_strided_slice %159 {offsets = [0, 0], sizes = [16, 128], strides = [1, 1]} : vector<16x384xf32> to vector<16x128xf32>
    %161 = vector.extract_strided_slice %159 {offsets = [0, 128], sizes = [16, 128], strides = [1, 1]} : vector<16x384xf32> to vector<16x128xf32>
    %162 = vector.extract_strided_slice %159 {offsets = [0, 256], sizes = [16, 128], strides = [1, 1]} : vector<16x384xf32> to vector<16x128xf32>
    %163 = vector.extract_strided_slice %153 {offsets = [0, 384], sizes = [16, 128], strides = [1, 1]} : vector<16x512xf32> to vector<16x128xf32>
    %164 = math.tanh %163 : vector<16x128xf32>
    %c0_89 = arith.constant 0 : index
    %c0_90 = arith.constant 0 : index
    %165 = vector.load %arg13[%c0_89, %c0_90] : memref<16x128xf32, #tpu.memory_space<vmem>>, vector<16x128xf32>
    %166 = arith.mulf %161, %165 : vector<16x128xf32>
    %167 = arith.mulf %160, %164 : vector<16x128xf32>
    %168 = arith.addf %166, %167 : vector<16x128xf32>
    %169 = math.tanh %168 : vector<16x128xf32>
    %170 = arith.mulf %162, %169 : vector<16x128xf32>
    %171 = arith.truncf %170 : vector<16x128xf32> to vector<16x128xbf16>
    %c0_91 = arith.constant 0 : index
    %c0_92 = arith.constant 0 : index
    %172 = vector.load %arg13[%c0_91, %c0_92] : memref<16x128xf32, #tpu.memory_space<vmem>>, vector<16x128xf32>
    tpu.vector_store %arg13[%c0_91, %c0_92], %168 {strides = array<i32>} : memref<16x128xf32, #tpu.memory_space<vmem>>, vector<16x128xf32>,
    %c0_93 = arith.constant 0 : index
    %c0_94 = arith.constant 0 : index
    %173 = vector.load %arg12[%c0_93, %c0_94] : memref<16x128xbf16, #tpu.memory_space<vmem>>, vector<16x128xbf16>
    tpu.vector_store %arg12[%c0_93, %c0_94], %171 {strides = array<i32>} : memref<16x128xbf16, #tpu.memory_space<vmem>>, vector<16x128xbf16>,
    %c3_i32 = arith.constant 3 : i32
    %174 = arith.index_cast %c3_i32 : i32 to index
    %c0_95 = arith.constant 0 : index
    %c0_96 = arith.constant 0 : index
    %175 = vector.load %arg9[%174, %c0_95, %c0_96] : memref<8x16x512xf32, #tpu.memory_space<vmem>>, vector<1x16x512xf32>
    %176 = vector.shape_cast %175 : vector<1x16x512xf32> to vector<16x512xf32>
    %c0_97 = arith.constant 0 : index
    %c0_98 = arith.constant 0 : index
    %177 = vector.load %arg10[%c0_97, %c0_98] : memref<16x128xbf16, #tpu.memory_space<vmem>>, vector<16x128xbf16>
    %c0_99 = arith.constant 0 : index
    %c0_100 = arith.constant 0 : index
    %178 = vector.load %arg4[%c0_99, %c0_100] : memref<128x512xbf16, #tpu.memory_space<vmem>>, vector<128x512xbf16>
    %cst_101 = arith.constant dense<0.000000e+00> : vector<16x512xf32>
    %179 = tpu.matmul %177, %178, %cst_101 {dimension_numbers = #tpu.dot_dimension_numbers<[1], [0], [0], [1], [0, 0, 1, 1], [], []>} : vector<16x128xbf16>, vector<128x512xbf16>, vector<16x512xf32> -> vector<16x512xf32>
    %180 = arith.addf %176, %179 : vector<16x512xf32>
    %181 = vector.extract_strided_slice %180 {offsets = [0, 0], sizes = [16, 384], strides = [1, 1]} : vector<16x512xf32> to vector<16x384xf32>
    %182 = arith.negf %181 : vector<16x384xf32>
    %183 = math.exp %182 : vector<16x384xf32>
    %cst_102 = arith.constant 1.000000e+00 : f32
    %184 = vector.broadcast %cst_102 : f32 to vector<16x384xf32>
    %185 = arith.addf %184, %183 : vector<16x384xf32>
    %186 = arith.divf %184, %185 : vector<16x384xf32>
    %187 = vector.extract_strided_slice %186 {offsets = [0, 0], sizes = [16, 128], strides = [1, 1]} : vector<16x384xf32> to vector<16x128xf32>
    %188 = vector.extract_strided_slice %186 {offsets = [0, 128], sizes = [16, 128], strides = [1, 1]} : vector<16x384xf32> to vector<16x128xf32>
    %189 = vector.extract_strided_slice %186 {offsets = [0, 256], sizes = [16, 128], strides = [1, 1]} : vector<16x384xf32> to vector<16x128xf32>
    %190 = vector.extract_strided_slice %180 {offsets = [0, 384], sizes = [16, 128], strides = [1, 1]} : vector<16x512xf32> to vector<16x128xf32>
    %191 = math.tanh %190 : vector<16x128xf32>
    %c0_103 = arith.constant 0 : index
    %c0_104 = arith.constant 0 : index
    %192 = vector.load %arg11[%c0_103, %c0_104] : memref<16x128xf32, #tpu.memory_space<vmem>>, vector<16x128xf32>
    %193 = arith.mulf %188, %192 : vector<16x128xf32>
    %194 = arith.mulf %187, %191 : vector<16x128xf32>
    %195 = arith.addf %193, %194 : vector<16x128xf32>
    %196 = math.tanh %195 : vector<16x128xf32>
    %197 = arith.mulf %189, %196 : vector<16x128xf32>
    %198 = arith.truncf %197 : vector<16x128xf32> to vector<16x128xbf16>
    %c0_105 = arith.constant 0 : index
    %c0_106 = arith.constant 0 : index
    %199 = vector.load %arg11[%c0_105, %c0_106] : memref<16x128xf32, #tpu.memory_space<vmem>>, vector<16x128xf32>
    tpu.vector_store %arg11[%c0_105, %c0_106], %195 {strides = array<i32>} : memref<16x128xf32, #tpu.memory_space<vmem>>, vector<16x128xf32>,
    %c0_107 = arith.constant 0 : index
    %c0_108 = arith.constant 0 : index
    %200 = vector.load %arg10[%c0_107, %c0_108] : memref<16x128xbf16, #tpu.memory_space<vmem>>, vector<16x128xbf16>
    tpu.vector_store %arg10[%c0_107, %c0_108], %198 {strides = array<i32>} : memref<16x128xbf16, #tpu.memory_space<vmem>>, vector<16x128xbf16>,
    %c0_109 = arith.constant 0 : index
    %c0_110 = arith.constant 0 : index
    %201 = vector.load %arg12[%c0_109, %c0_110] : memref<16x128xbf16, #tpu.memory_space<vmem>>, vector<16x128xbf16>
    %202 = tpu.concatenate %198, %201 in 1 : vector<16x128xbf16>, vector<16x128xbf16> -> vector<16x256xbf16>
    %c0_111 = arith.constant 0 : index
    %c0_112 = arith.constant 0 : index
    %203 = vector.load %arg6[%c0_111, %c0_112] : memref<256x512xbf16, #tpu.memory_space<vmem>>, vector<256x512xbf16>
    %cst_113 = arith.constant dense<0.000000e+00> : vector<16x512xf32>
    %204 = tpu.matmul %202, %203, %cst_113 {dimension_numbers = #tpu.dot_dimension_numbers<[1], [0], [0], [1], [0, 0, 1, 1], [], []>} : vector<16x256xbf16>, vector<256x512xbf16>, vector<16x512xf32> -> vector<16x512xf32>
    %c0_114 = arith.constant 0 : index
    %c0_115 = arith.constant 0 : index
    %205 = vector.load %arg7[%c0_114, %c0_115] : memref<1x512xf32, #tpu.memory_space<vmem>>, vector<1x512xf32>
    %206 = vector.broadcast %205 : vector<1x512xf32> to vector<16x512xf32>
    %207 = arith.addf %204, %206 : vector<16x512xf32>
    %208 = vector.extract_strided_slice %207 {offsets = [0, 0], sizes = [16, 384], strides = [1, 1]} : vector<16x512xf32> to vector<16x384xf32>
    %209 = arith.negf %208 : vector<16x384xf32>
    %210 = math.exp %209 : vector<16x384xf32>
    %cst_116 = arith.constant 1.000000e+00 : f32
    %211 = vector.broadcast %cst_116 : f32 to vector<16x384xf32>
    %212 = arith.addf %211, %210 : vector<16x384xf32>
    %213 = arith.divf %211, %212 : vector<16x384xf32>
    %214 = vector.extract_strided_slice %213 {offsets = [0, 0], sizes = [16, 128], strides = [1, 1]} : vector<16x384xf32> to vector<16x128xf32>
    %215 = vector.extract_strided_slice %213 {offsets = [0, 128], sizes = [16, 128], strides = [1, 1]} : vector<16x384xf32> to vector<16x128xf32>
    %216 = vector.extract_strided_slice %213 {offsets = [0, 256], sizes = [16, 128], strides = [1, 1]} : vector<16x384xf32> to vector<16x128xf32>
    %217 = vector.extract_strided_slice %207 {offsets = [0, 384], sizes = [16, 128], strides = [1, 1]} : vector<16x512xf32> to vector<16x128xf32>
    %218 = math.tanh %217 : vector<16x128xf32>
    %c0_117 = arith.constant 0 : index
    %c0_118 = arith.constant 0 : index
    %219 = vector.load %arg13[%c0_117, %c0_118] : memref<16x128xf32, #tpu.memory_space<vmem>>, vector<16x128xf32>
    %220 = arith.mulf %215, %219 : vector<16x128xf32>
    %221 = arith.mulf %214, %218 : vector<16x128xf32>
    %222 = arith.addf %220, %221 : vector<16x128xf32>
    %223 = math.tanh %222 : vector<16x128xf32>
    %224 = arith.mulf %216, %223 : vector<16x128xf32>
    %225 = arith.truncf %224 : vector<16x128xf32> to vector<16x128xbf16>
    %c0_119 = arith.constant 0 : index
    %c0_120 = arith.constant 0 : index
    %226 = vector.load %arg13[%c0_119, %c0_120] : memref<16x128xf32, #tpu.memory_space<vmem>>, vector<16x128xf32>
    tpu.vector_store %arg13[%c0_119, %c0_120], %222 {strides = array<i32>} : memref<16x128xf32, #tpu.memory_space<vmem>>, vector<16x128xf32>,
    %c0_121 = arith.constant 0 : index
    %c0_122 = arith.constant 0 : index
    %227 = vector.load %arg12[%c0_121, %c0_122] : memref<16x128xbf16, #tpu.memory_space<vmem>>, vector<16x128xbf16>
    tpu.vector_store %arg12[%c0_121, %c0_122], %225 {strides = array<i32>} : memref<16x128xbf16, #tpu.memory_space<vmem>>, vector<16x128xbf16>,
    %c4_i32 = arith.constant 4 : i32
    %228 = arith.index_cast %c4_i32 : i32 to index
    %c0_123 = arith.constant 0 : index
    %c0_124 = arith.constant 0 : index
    %229 = vector.load %arg9[%228, %c0_123, %c0_124] : memref<8x16x512xf32, #tpu.memory_space<vmem>>, vector<1x16x512xf32>
    %230 = vector.shape_cast %229 : vector<1x16x512xf32> to vector<16x512xf32>
    %c0_125 = arith.constant 0 : index
    %c0_126 = arith.constant 0 : index
    %231 = vector.load %arg10[%c0_125, %c0_126] : memref<16x128xbf16, #tpu.memory_space<vmem>>, vector<16x128xbf16>
    %c0_127 = arith.constant 0 : index
    %c0_128 = arith.constant 0 : index
    %232 = vector.load %arg4[%c0_127, %c0_128] : memref<128x512xbf16, #tpu.memory_space<vmem>>, vector<128x512xbf16>
    %cst_129 = arith.constant dense<0.000000e+00> : vector<16x512xf32>
    %233 = tpu.matmul %231, %232, %cst_129 {dimension_numbers = #tpu.dot_dimension_numbers<[1], [0], [0], [1], [0, 0, 1, 1], [], []>} : vector<16x128xbf16>, vector<128x512xbf16>, vector<16x512xf32> -> vector<16x512xf32>
    %234 = arith.addf %230, %233 : vector<16x512xf32>
    %235 = vector.extract_strided_slice %234 {offsets = [0, 0], sizes = [16, 384], strides = [1, 1]} : vector<16x512xf32> to vector<16x384xf32>
    %236 = arith.negf %235 : vector<16x384xf32>
    %237 = math.exp %236 : vector<16x384xf32>
    %cst_130 = arith.constant 1.000000e+00 : f32
    %238 = vector.broadcast %cst_130 : f32 to vector<16x384xf32>
    %239 = arith.addf %238, %237 : vector<16x384xf32>
    %240 = arith.divf %238, %239 : vector<16x384xf32>
    %241 = vector.extract_strided_slice %240 {offsets = [0, 0], sizes = [16, 128], strides = [1, 1]} : vector<16x384xf32> to vector<16x128xf32>
    %242 = vector.extract_strided_slice %240 {offsets = [0, 128], sizes = [16, 128], strides = [1, 1]} : vector<16x384xf32> to vector<16x128xf32>
    %243 = vector.extract_strided_slice %240 {offsets = [0, 256], sizes = [16, 128], strides = [1, 1]} : vector<16x384xf32> to vector<16x128xf32>
    %244 = vector.extract_strided_slice %234 {offsets = [0, 384], sizes = [16, 128], strides = [1, 1]} : vector<16x512xf32> to vector<16x128xf32>
    %245 = math.tanh %244 : vector<16x128xf32>
    %c0_131 = arith.constant 0 : index
    %c0_132 = arith.constant 0 : index
    %246 = vector.load %arg11[%c0_131, %c0_132] : memref<16x128xf32, #tpu.memory_space<vmem>>, vector<16x128xf32>
    %247 = arith.mulf %242, %246 : vector<16x128xf32>
    %248 = arith.mulf %241, %245 : vector<16x128xf32>
    %249 = arith.addf %247, %248 : vector<16x128xf32>
    %250 = math.tanh %249 : vector<16x128xf32>
    %251 = arith.mulf %243, %250 : vector<16x128xf32>
    %252 = arith.truncf %251 : vector<16x128xf32> to vector<16x128xbf16>
    %c0_133 = arith.constant 0 : index
    %c0_134 = arith.constant 0 : index
    %253 = vector.load %arg11[%c0_133, %c0_134] : memref<16x128xf32, #tpu.memory_space<vmem>>, vector<16x128xf32>
    tpu.vector_store %arg11[%c0_133, %c0_134], %249 {strides = array<i32>} : memref<16x128xf32, #tpu.memory_space<vmem>>, vector<16x128xf32>,
    %c0_135 = arith.constant 0 : index
    %c0_136 = arith.constant 0 : index
    %254 = vector.load %arg10[%c0_135, %c0_136] : memref<16x128xbf16, #tpu.memory_space<vmem>>, vector<16x128xbf16>
    tpu.vector_store %arg10[%c0_135, %c0_136], %252 {strides = array<i32>} : memref<16x128xbf16, #tpu.memory_space<vmem>>, vector<16x128xbf16>,
    %c0_137 = arith.constant 0 : index
    %c0_138 = arith.constant 0 : index
    %255 = vector.load %arg12[%c0_137, %c0_138] : memref<16x128xbf16, #tpu.memory_space<vmem>>, vector<16x128xbf16>
    %256 = tpu.concatenate %252, %255 in 1 : vector<16x128xbf16>, vector<16x128xbf16> -> vector<16x256xbf16>
    %c0_139 = arith.constant 0 : index
    %c0_140 = arith.constant 0 : index
    %257 = vector.load %arg6[%c0_139, %c0_140] : memref<256x512xbf16, #tpu.memory_space<vmem>>, vector<256x512xbf16>
    %cst_141 = arith.constant dense<0.000000e+00> : vector<16x512xf32>
    %258 = tpu.matmul %256, %257, %cst_141 {dimension_numbers = #tpu.dot_dimension_numbers<[1], [0], [0], [1], [0, 0, 1, 1], [], []>} : vector<16x256xbf16>, vector<256x512xbf16>, vector<16x512xf32> -> vector<16x512xf32>
    %c0_142 = arith.constant 0 : index
    %c0_143 = arith.constant 0 : index
    %259 = vector.load %arg7[%c0_142, %c0_143] : memref<1x512xf32, #tpu.memory_space<vmem>>, vector<1x512xf32>
    %260 = vector.broadcast %259 : vector<1x512xf32> to vector<16x512xf32>
    %261 = arith.addf %258, %260 : vector<16x512xf32>
    %262 = vector.extract_strided_slice %261 {offsets = [0, 0], sizes = [16, 384], strides = [1, 1]} : vector<16x512xf32> to vector<16x384xf32>
    %263 = arith.negf %262 : vector<16x384xf32>
    %264 = math.exp %263 : vector<16x384xf32>
    %cst_144 = arith.constant 1.000000e+00 : f32
    %265 = vector.broadcast %cst_144 : f32 to vector<16x384xf32>
    %266 = arith.addf %265, %264 : vector<16x384xf32>
    %267 = arith.divf %265, %266 : vector<16x384xf32>
    %268 = vector.extract_strided_slice %267 {offsets = [0, 0], sizes = [16, 128], strides = [1, 1]} : vector<16x384xf32> to vector<16x128xf32>
    %269 = vector.extract_strided_slice %267 {offsets = [0, 128], sizes = [16, 128], strides = [1, 1]} : vector<16x384xf32> to vector<16x128xf32>
    %270 = vector.extract_strided_slice %267 {offsets = [0, 256], sizes = [16, 128], strides = [1, 1]} : vector<16x384xf32> to vector<16x128xf32>
    %271 = vector.extract_strided_slice %261 {offsets = [0, 384], sizes = [16, 128], strides = [1, 1]} : vector<16x512xf32> to vector<16x128xf32>
    %272 = math.tanh %271 : vector<16x128xf32>
    %c0_145 = arith.constant 0 : index
    %c0_146 = arith.constant 0 : index
    %273 = vector.load %arg13[%c0_145, %c0_146] : memref<16x128xf32, #tpu.memory_space<vmem>>, vector<16x128xf32>
    %274 = arith.mulf %269, %273 : vector<16x128xf32>
    %275 = arith.mulf %268, %272 : vector<16x128xf32>
    %276 = arith.addf %274, %275 : vector<16x128xf32>
    %277 = math.tanh %276 : vector<16x128xf32>
    %278 = arith.mulf %270, %277 : vector<16x128xf32>
    %279 = arith.truncf %278 : vector<16x128xf32> to vector<16x128xbf16>
    %c0_147 = arith.constant 0 : index
    %c0_148 = arith.constant 0 : index
    %280 = vector.load %arg13[%c0_147, %c0_148] : memref<16x128xf32, #tpu.memory_space<vmem>>, vector<16x128xf32>
    tpu.vector_store %arg13[%c0_147, %c0_148], %276 {strides = array<i32>} : memref<16x128xf32, #tpu.memory_space<vmem>>, vector<16x128xf32>,
    %c0_149 = arith.constant 0 : index
    %c0_150 = arith.constant 0 : index
    %281 = vector.load %arg12[%c0_149, %c0_150] : memref<16x128xbf16, #tpu.memory_space<vmem>>, vector<16x128xbf16>
    tpu.vector_store %arg12[%c0_149, %c0_150], %279 {strides = array<i32>} : memref<16x128xbf16, #tpu.memory_space<vmem>>, vector<16x128xbf16>,
    %c5_i32 = arith.constant 5 : i32
    %282 = arith.index_cast %c5_i32 : i32 to index
    %c0_151 = arith.constant 0 : index
    %c0_152 = arith.constant 0 : index
    %283 = vector.load %arg9[%282, %c0_151, %c0_152] : memref<8x16x512xf32, #tpu.memory_space<vmem>>, vector<1x16x512xf32>
    %284 = vector.shape_cast %283 : vector<1x16x512xf32> to vector<16x512xf32>
    %c0_153 = arith.constant 0 : index
    %c0_154 = arith.constant 0 : index
    %285 = vector.load %arg10[%c0_153, %c0_154] : memref<16x128xbf16, #tpu.memory_space<vmem>>, vector<16x128xbf16>
    %c0_155 = arith.constant 0 : index
    %c0_156 = arith.constant 0 : index
    %286 = vector.load %arg4[%c0_155, %c0_156] : memref<128x512xbf16, #tpu.memory_space<vmem>>, vector<128x512xbf16>
    %cst_157 = arith.constant dense<0.000000e+00> : vector<16x512xf32>
    %287 = tpu.matmul %285, %286, %cst_157 {dimension_numbers = #tpu.dot_dimension_numbers<[1], [0], [0], [1], [0, 0, 1, 1], [], []>} : vector<16x128xbf16>, vector<128x512xbf16>, vector<16x512xf32> -> vector<16x512xf32>
    %288 = arith.addf %284, %287 : vector<16x512xf32>
    %289 = vector.extract_strided_slice %288 {offsets = [0, 0], sizes = [16, 384], strides = [1, 1]} : vector<16x512xf32> to vector<16x384xf32>
    %290 = arith.negf %289 : vector<16x384xf32>
    %291 = math.exp %290 : vector<16x384xf32>
    %cst_158 = arith.constant 1.000000e+00 : f32
    %292 = vector.broadcast %cst_158 : f32 to vector<16x384xf32>
    %293 = arith.addf %292, %291 : vector<16x384xf32>
    %294 = arith.divf %292, %293 : vector<16x384xf32>
    %295 = vector.extract_strided_slice %294 {offsets = [0, 0], sizes = [16, 128], strides = [1, 1]} : vector<16x384xf32> to vector<16x128xf32>
    %296 = vector.extract_strided_slice %294 {offsets = [0, 128], sizes = [16, 128], strides = [1, 1]} : vector<16x384xf32> to vector<16x128xf32>
    %297 = vector.extract_strided_slice %294 {offsets = [0, 256], sizes = [16, 128], strides = [1, 1]} : vector<16x384xf32> to vector<16x128xf32>
    %298 = vector.extract_strided_slice %288 {offsets = [0, 384], sizes = [16, 128], strides = [1, 1]} : vector<16x512xf32> to vector<16x128xf32>
    %299 = math.tanh %298 : vector<16x128xf32>
    %c0_159 = arith.constant 0 : index
    %c0_160 = arith.constant 0 : index
    %300 = vector.load %arg11[%c0_159, %c0_160] : memref<16x128xf32, #tpu.memory_space<vmem>>, vector<16x128xf32>
    %301 = arith.mulf %296, %300 : vector<16x128xf32>
    %302 = arith.mulf %295, %299 : vector<16x128xf32>
    %303 = arith.addf %301, %302 : vector<16x128xf32>
    %304 = math.tanh %303 : vector<16x128xf32>
    %305 = arith.mulf %297, %304 : vector<16x128xf32>
    %306 = arith.truncf %305 : vector<16x128xf32> to vector<16x128xbf16>
    %c0_161 = arith.constant 0 : index
    %c0_162 = arith.constant 0 : index
    %307 = vector.load %arg11[%c0_161, %c0_162] : memref<16x128xf32, #tpu.memory_space<vmem>>, vector<16x128xf32>
    tpu.vector_store %arg11[%c0_161, %c0_162], %303 {strides = array<i32>} : memref<16x128xf32, #tpu.memory_space<vmem>>, vector<16x128xf32>,
    %c0_163 = arith.constant 0 : index
    %c0_164 = arith.constant 0 : index
    %308 = vector.load %arg10[%c0_163, %c0_164] : memref<16x128xbf16, #tpu.memory_space<vmem>>, vector<16x128xbf16>
    tpu.vector_store %arg10[%c0_163, %c0_164], %306 {strides = array<i32>} : memref<16x128xbf16, #tpu.memory_space<vmem>>, vector<16x128xbf16>,
    %c0_165 = arith.constant 0 : index
    %c0_166 = arith.constant 0 : index
    %309 = vector.load %arg12[%c0_165, %c0_166] : memref<16x128xbf16, #tpu.memory_space<vmem>>, vector<16x128xbf16>
    %310 = tpu.concatenate %306, %309 in 1 : vector<16x128xbf16>, vector<16x128xbf16> -> vector<16x256xbf16>
    %c0_167 = arith.constant 0 : index
    %c0_168 = arith.constant 0 : index
    %311 = vector.load %arg6[%c0_167, %c0_168] : memref<256x512xbf16, #tpu.memory_space<vmem>>, vector<256x512xbf16>
    %cst_169 = arith.constant dense<0.000000e+00> : vector<16x512xf32>
    %312 = tpu.matmul %310, %311, %cst_169 {dimension_numbers = #tpu.dot_dimension_numbers<[1], [0], [0], [1], [0, 0, 1, 1], [], []>} : vector<16x256xbf16>, vector<256x512xbf16>, vector<16x512xf32> -> vector<16x512xf32>
    %c0_170 = arith.constant 0 : index
    %c0_171 = arith.constant 0 : index
    %313 = vector.load %arg7[%c0_170, %c0_171] : memref<1x512xf32, #tpu.memory_space<vmem>>, vector<1x512xf32>
    %314 = vector.broadcast %313 : vector<1x512xf32> to vector<16x512xf32>
    %315 = arith.addf %312, %314 : vector<16x512xf32>
    %316 = vector.extract_strided_slice %315 {offsets = [0, 0], sizes = [16, 384], strides = [1, 1]} : vector<16x512xf32> to vector<16x384xf32>
    %317 = arith.negf %316 : vector<16x384xf32>
    %318 = math.exp %317 : vector<16x384xf32>
    %cst_172 = arith.constant 1.000000e+00 : f32
    %319 = vector.broadcast %cst_172 : f32 to vector<16x384xf32>
    %320 = arith.addf %319, %318 : vector<16x384xf32>
    %321 = arith.divf %319, %320 : vector<16x384xf32>
    %322 = vector.extract_strided_slice %321 {offsets = [0, 0], sizes = [16, 128], strides = [1, 1]} : vector<16x384xf32> to vector<16x128xf32>
    %323 = vector.extract_strided_slice %321 {offsets = [0, 128], sizes = [16, 128], strides = [1, 1]} : vector<16x384xf32> to vector<16x128xf32>
    %324 = vector.extract_strided_slice %321 {offsets = [0, 256], sizes = [16, 128], strides = [1, 1]} : vector<16x384xf32> to vector<16x128xf32>
    %325 = vector.extract_strided_slice %315 {offsets = [0, 384], sizes = [16, 128], strides = [1, 1]} : vector<16x512xf32> to vector<16x128xf32>
    %326 = math.tanh %325 : vector<16x128xf32>
    %c0_173 = arith.constant 0 : index
    %c0_174 = arith.constant 0 : index
    %327 = vector.load %arg13[%c0_173, %c0_174] : memref<16x128xf32, #tpu.memory_space<vmem>>, vector<16x128xf32>
    %328 = arith.mulf %323, %327 : vector<16x128xf32>
    %329 = arith.mulf %322, %326 : vector<16x128xf32>
    %330 = arith.addf %328, %329 : vector<16x128xf32>
    %331 = math.tanh %330 : vector<16x128xf32>
    %332 = arith.mulf %324, %331 : vector<16x128xf32>
    %333 = arith.truncf %332 : vector<16x128xf32> to vector<16x128xbf16>
    %c0_175 = arith.constant 0 : index
    %c0_176 = arith.constant 0 : index
    %334 = vector.load %arg13[%c0_175, %c0_176] : memref<16x128xf32, #tpu.memory_space<vmem>>, vector<16x128xf32>
    tpu.vector_store %arg13[%c0_175, %c0_176], %330 {strides = array<i32>} : memref<16x128xf32, #tpu.memory_space<vmem>>, vector<16x128xf32>,
    %c0_177 = arith.constant 0 : index
    %c0_178 = arith.constant 0 : index
    %335 = vector.load %arg12[%c0_177, %c0_178] : memref<16x128xbf16, #tpu.memory_space<vmem>>, vector<16x128xbf16>
    tpu.vector_store %arg12[%c0_177, %c0_178], %333 {strides = array<i32>} : memref<16x128xbf16, #tpu.memory_space<vmem>>, vector<16x128xbf16>,
    %c6_i32 = arith.constant 6 : i32
    %336 = arith.index_cast %c6_i32 : i32 to index
    %c0_179 = arith.constant 0 : index
    %c0_180 = arith.constant 0 : index
    %337 = vector.load %arg9[%336, %c0_179, %c0_180] : memref<8x16x512xf32, #tpu.memory_space<vmem>>, vector<1x16x512xf32>
    %338 = vector.shape_cast %337 : vector<1x16x512xf32> to vector<16x512xf32>
    %c0_181 = arith.constant 0 : index
    %c0_182 = arith.constant 0 : index
    %339 = vector.load %arg10[%c0_181, %c0_182] : memref<16x128xbf16, #tpu.memory_space<vmem>>, vector<16x128xbf16>
    %c0_183 = arith.constant 0 : index
    %c0_184 = arith.constant 0 : index
    %340 = vector.load %arg4[%c0_183, %c0_184] : memref<128x512xbf16, #tpu.memory_space<vmem>>, vector<128x512xbf16>
    %cst_185 = arith.constant dense<0.000000e+00> : vector<16x512xf32>
    %341 = tpu.matmul %339, %340, %cst_185 {dimension_numbers = #tpu.dot_dimension_numbers<[1], [0], [0], [1], [0, 0, 1, 1], [], []>} : vector<16x128xbf16>, vector<128x512xbf16>, vector<16x512xf32> -> vector<16x512xf32>
    %342 = arith.addf %338, %341 : vector<16x512xf32>
    %343 = vector.extract_strided_slice %342 {offsets = [0, 0], sizes = [16, 384], strides = [1, 1]} : vector<16x512xf32> to vector<16x384xf32>
    %344 = arith.negf %343 : vector<16x384xf32>
    %345 = math.exp %344 : vector<16x384xf32>
    %cst_186 = arith.constant 1.000000e+00 : f32
    %346 = vector.broadcast %cst_186 : f32 to vector<16x384xf32>
    %347 = arith.addf %346, %345 : vector<16x384xf32>
    %348 = arith.divf %346, %347 : vector<16x384xf32>
    %349 = vector.extract_strided_slice %348 {offsets = [0, 0], sizes = [16, 128], strides = [1, 1]} : vector<16x384xf32> to vector<16x128xf32>
    %350 = vector.extract_strided_slice %348 {offsets = [0, 128], sizes = [16, 128], strides = [1, 1]} : vector<16x384xf32> to vector<16x128xf32>
    %351 = vector.extract_strided_slice %348 {offsets = [0, 256], sizes = [16, 128], strides = [1, 1]} : vector<16x384xf32> to vector<16x128xf32>
    %352 = vector.extract_strided_slice %342 {offsets = [0, 384], sizes = [16, 128], strides = [1, 1]} : vector<16x512xf32> to vector<16x128xf32>
    %353 = math.tanh %352 : vector<16x128xf32>
    %c0_187 = arith.constant 0 : index
    %c0_188 = arith.constant 0 : index
    %354 = vector.load %arg11[%c0_187, %c0_188] : memref<16x128xf32, #tpu.memory_space<vmem>>, vector<16x128xf32>
    %355 = arith.mulf %350, %354 : vector<16x128xf32>
    %356 = arith.mulf %349, %353 : vector<16x128xf32>
    %357 = arith.addf %355, %356 : vector<16x128xf32>
    %358 = math.tanh %357 : vector<16x128xf32>
    %359 = arith.mulf %351, %358 : vector<16x128xf32>
    %360 = arith.truncf %359 : vector<16x128xf32> to vector<16x128xbf16>
    %c0_189 = arith.constant 0 : index
    %c0_190 = arith.constant 0 : index
    %361 = vector.load %arg11[%c0_189, %c0_190] : memref<16x128xf32, #tpu.memory_space<vmem>>, vector<16x128xf32>
    tpu.vector_store %arg11[%c0_189, %c0_190], %357 {strides = array<i32>} : memref<16x128xf32, #tpu.memory_space<vmem>>, vector<16x128xf32>,
    %c0_191 = arith.constant 0 : index
    %c0_192 = arith.constant 0 : index
    %362 = vector.load %arg10[%c0_191, %c0_192] : memref<16x128xbf16, #tpu.memory_space<vmem>>, vector<16x128xbf16>
    tpu.vector_store %arg10[%c0_191, %c0_192], %360 {strides = array<i32>} : memref<16x128xbf16, #tpu.memory_space<vmem>>, vector<16x128xbf16>,
    %c0_193 = arith.constant 0 : index
    %c0_194 = arith.constant 0 : index
    %363 = vector.load %arg12[%c0_193, %c0_194] : memref<16x128xbf16, #tpu.memory_space<vmem>>, vector<16x128xbf16>
    %364 = tpu.concatenate %360, %363 in 1 : vector<16x128xbf16>, vector<16x128xbf16> -> vector<16x256xbf16>
    %c0_195 = arith.constant 0 : index
    %c0_196 = arith.constant 0 : index
    %365 = vector.load %arg6[%c0_195, %c0_196] : memref<256x512xbf16, #tpu.memory_space<vmem>>, vector<256x512xbf16>
    %cst_197 = arith.constant dense<0.000000e+00> : vector<16x512xf32>
    %366 = tpu.matmul %364, %365, %cst_197 {dimension_numbers = #tpu.dot_dimension_numbers<[1], [0], [0], [1], [0, 0, 1, 1], [], []>} : vector<16x256xbf16>, vector<256x512xbf16>, vector<16x512xf32> -> vector<16x512xf32>
    %c0_198 = arith.constant 0 : index
    %c0_199 = arith.constant 0 : index
    %367 = vector.load %arg7[%c0_198, %c0_199] : memref<1x512xf32, #tpu.memory_space<vmem>>, vector<1x512xf32>
    %368 = vector.broadcast %367 : vector<1x512xf32> to vector<16x512xf32>
    %369 = arith.addf %366, %368 : vector<16x512xf32>
    %370 = vector.extract_strided_slice %369 {offsets = [0, 0], sizes = [16, 384], strides = [1, 1]} : vector<16x512xf32> to vector<16x384xf32>
    %371 = arith.negf %370 : vector<16x384xf32>
    %372 = math.exp %371 : vector<16x384xf32>
    %cst_200 = arith.constant 1.000000e+00 : f32
    %373 = vector.broadcast %cst_200 : f32 to vector<16x384xf32>
    %374 = arith.addf %373, %372 : vector<16x384xf32>
    %375 = arith.divf %373, %374 : vector<16x384xf32>
    %376 = vector.extract_strided_slice %375 {offsets = [0, 0], sizes = [16, 128], strides = [1, 1]} : vector<16x384xf32> to vector<16x128xf32>
    %377 = vector.extract_strided_slice %375 {offsets = [0, 128], sizes = [16, 128], strides = [1, 1]} : vector<16x384xf32> to vector<16x128xf32>
    %378 = vector.extract_strided_slice %375 {offsets = [0, 256], sizes = [16, 128], strides = [1, 1]} : vector<16x384xf32> to vector<16x128xf32>
    %379 = vector.extract_strided_slice %369 {offsets = [0, 384], sizes = [16, 128], strides = [1, 1]} : vector<16x512xf32> to vector<16x128xf32>
    %380 = math.tanh %379 : vector<16x128xf32>
    %c0_201 = arith.constant 0 : index
    %c0_202 = arith.constant 0 : index
    %381 = vector.load %arg13[%c0_201, %c0_202] : memref<16x128xf32, #tpu.memory_space<vmem>>, vector<16x128xf32>
    %382 = arith.mulf %377, %381 : vector<16x128xf32>
    %383 = arith.mulf %376, %380 : vector<16x128xf32>
    %384 = arith.addf %382, %383 : vector<16x128xf32>
    %385 = math.tanh %384 : vector<16x128xf32>
    %386 = arith.mulf %378, %385 : vector<16x128xf32>
    %387 = arith.truncf %386 : vector<16x128xf32> to vector<16x128xbf16>
    %c0_203 = arith.constant 0 : index
    %c0_204 = arith.constant 0 : index
    %388 = vector.load %arg13[%c0_203, %c0_204] : memref<16x128xf32, #tpu.memory_space<vmem>>, vector<16x128xf32>
    tpu.vector_store %arg13[%c0_203, %c0_204], %384 {strides = array<i32>} : memref<16x128xf32, #tpu.memory_space<vmem>>, vector<16x128xf32>,
    %c0_205 = arith.constant 0 : index
    %c0_206 = arith.constant 0 : index
    %389 = vector.load %arg12[%c0_205, %c0_206] : memref<16x128xbf16, #tpu.memory_space<vmem>>, vector<16x128xbf16>
    tpu.vector_store %arg12[%c0_205, %c0_206], %387 {strides = array<i32>} : memref<16x128xbf16, #tpu.memory_space<vmem>>, vector<16x128xbf16>,
    %c7_i32 = arith.constant 7 : i32
    %390 = arith.index_cast %c7_i32 : i32 to index
    %c0_207 = arith.constant 0 : index
    %c0_208 = arith.constant 0 : index
    %391 = vector.load %arg9[%390, %c0_207, %c0_208] : memref<8x16x512xf32, #tpu.memory_space<vmem>>, vector<1x16x512xf32>
    %392 = vector.shape_cast %391 : vector<1x16x512xf32> to vector<16x512xf32>
    %c0_209 = arith.constant 0 : index
    %c0_210 = arith.constant 0 : index
    %393 = vector.load %arg10[%c0_209, %c0_210] : memref<16x128xbf16, #tpu.memory_space<vmem>>, vector<16x128xbf16>
    %c0_211 = arith.constant 0 : index
    %c0_212 = arith.constant 0 : index
    %394 = vector.load %arg4[%c0_211, %c0_212] : memref<128x512xbf16, #tpu.memory_space<vmem>>, vector<128x512xbf16>
    %cst_213 = arith.constant dense<0.000000e+00> : vector<16x512xf32>
    %395 = tpu.matmul %393, %394, %cst_213 {dimension_numbers = #tpu.dot_dimension_numbers<[1], [0], [0], [1], [0, 0, 1, 1], [], []>} : vector<16x128xbf16>, vector<128x512xbf16>, vector<16x512xf32> -> vector<16x512xf32>
    %396 = arith.addf %392, %395 : vector<16x512xf32>
    %397 = vector.extract_strided_slice %396 {offsets = [0, 0], sizes = [16, 384], strides = [1, 1]} : vector<16x512xf32> to vector<16x384xf32>
    %398 = arith.negf %397 : vector<16x384xf32>
    %399 = math.exp %398 : vector<16x384xf32>
    %cst_214 = arith.constant 1.000000e+00 : f32
    %400 = vector.broadcast %cst_214 : f32 to vector<16x384xf32>
    %401 = arith.addf %400, %399 : vector<16x384xf32>
    %402 = arith.divf %400, %401 : vector<16x384xf32>
    %403 = vector.extract_strided_slice %402 {offsets = [0, 0], sizes = [16, 128], strides = [1, 1]} : vector<16x384xf32> to vector<16x128xf32>
    %404 = vector.extract_strided_slice %402 {offsets = [0, 128], sizes = [16, 128], strides = [1, 1]} : vector<16x384xf32> to vector<16x128xf32>
    %405 = vector.extract_strided_slice %402 {offsets = [0, 256], sizes = [16, 128], strides = [1, 1]} : vector<16x384xf32> to vector<16x128xf32>
    %406 = vector.extract_strided_slice %396 {offsets = [0, 384], sizes = [16, 128], strides = [1, 1]} : vector<16x512xf32> to vector<16x128xf32>
    %407 = math.tanh %406 : vector<16x128xf32>
    %c0_215 = arith.constant 0 : index
    %c0_216 = arith.constant 0 : index
    %408 = vector.load %arg11[%c0_215, %c0_216] : memref<16x128xf32, #tpu.memory_space<vmem>>, vector<16x128xf32>
    %409 = arith.mulf %404, %408 : vector<16x128xf32>
    %410 = arith.mulf %403, %407 : vector<16x128xf32>
    %411 = arith.addf %409, %410 : vector<16x128xf32>
    %412 = math.tanh %411 : vector<16x128xf32>
    %413 = arith.mulf %405, %412 : vector<16x128xf32>
    %414 = arith.truncf %413 : vector<16x128xf32> to vector<16x128xbf16>
    %c0_217 = arith.constant 0 : index
    %c0_218 = arith.constant 0 : index
    %415 = vector.load %arg11[%c0_217, %c0_218] : memref<16x128xf32, #tpu.memory_space<vmem>>, vector<16x128xf32>
    tpu.vector_store %arg11[%c0_217, %c0_218], %411 {strides = array<i32>} : memref<16x128xf32, #tpu.memory_space<vmem>>, vector<16x128xf32>,
    %c0_219 = arith.constant 0 : index
    %c0_220 = arith.constant 0 : index
    %416 = vector.load %arg10[%c0_219, %c0_220] : memref<16x128xbf16, #tpu.memory_space<vmem>>, vector<16x128xbf16>
    tpu.vector_store %arg10[%c0_219, %c0_220], %414 {strides = array<i32>} : memref<16x128xbf16, #tpu.memory_space<vmem>>, vector<16x128xbf16>,
    %c0_221 = arith.constant 0 : index
    %c0_222 = arith.constant 0 : index
    %417 = vector.load %arg12[%c0_221, %c0_222] : memref<16x128xbf16, #tpu.memory_space<vmem>>, vector<16x128xbf16>
    %418 = tpu.concatenate %414, %417 in 1 : vector<16x128xbf16>, vector<16x128xbf16> -> vector<16x256xbf16>
    %c0_223 = arith.constant 0 : index
    %c0_224 = arith.constant 0 : index
    %419 = vector.load %arg6[%c0_223, %c0_224] : memref<256x512xbf16, #tpu.memory_space<vmem>>, vector<256x512xbf16>
    %cst_225 = arith.constant dense<0.000000e+00> : vector<16x512xf32>
    %420 = tpu.matmul %418, %419, %cst_225 {dimension_numbers = #tpu.dot_dimension_numbers<[1], [0], [0], [1], [0, 0, 1, 1], [], []>} : vector<16x256xbf16>, vector<256x512xbf16>, vector<16x512xf32> -> vector<16x512xf32>
    %c0_226 = arith.constant 0 : index
    %c0_227 = arith.constant 0 : index
    %421 = vector.load %arg7[%c0_226, %c0_227] : memref<1x512xf32, #tpu.memory_space<vmem>>, vector<1x512xf32>
    %422 = vector.broadcast %421 : vector<1x512xf32> to vector<16x512xf32>
    %423 = arith.addf %420, %422 : vector<16x512xf32>
    %424 = vector.extract_strided_slice %423 {offsets = [0, 0], sizes = [16, 384], strides = [1, 1]} : vector<16x512xf32> to vector<16x384xf32>
    %425 = arith.negf %424 : vector<16x384xf32>
    %426 = math.exp %425 : vector<16x384xf32>
    %cst_228 = arith.constant 1.000000e+00 : f32
    %427 = vector.broadcast %cst_228 : f32 to vector<16x384xf32>
    %428 = arith.addf %427, %426 : vector<16x384xf32>
    %429 = arith.divf %427, %428 : vector<16x384xf32>
    %430 = vector.extract_strided_slice %429 {offsets = [0, 0], sizes = [16, 128], strides = [1, 1]} : vector<16x384xf32> to vector<16x128xf32>
    %431 = vector.extract_strided_slice %429 {offsets = [0, 128], sizes = [16, 128], strides = [1, 1]} : vector<16x384xf32> to vector<16x128xf32>
    %432 = vector.extract_strided_slice %429 {offsets = [0, 256], sizes = [16, 128], strides = [1, 1]} : vector<16x384xf32> to vector<16x128xf32>
    %433 = vector.extract_strided_slice %423 {offsets = [0, 384], sizes = [16, 128], strides = [1, 1]} : vector<16x512xf32> to vector<16x128xf32>
    %434 = math.tanh %433 : vector<16x128xf32>
    %c0_229 = arith.constant 0 : index
    %c0_230 = arith.constant 0 : index
    %435 = vector.load %arg13[%c0_229, %c0_230] : memref<16x128xf32, #tpu.memory_space<vmem>>, vector<16x128xf32>
    %436 = arith.mulf %431, %435 : vector<16x128xf32>
    %437 = arith.mulf %430, %434 : vector<16x128xf32>
    %438 = arith.addf %436, %437 : vector<16x128xf32>
    %439 = math.tanh %438 : vector<16x128xf32>
    %440 = arith.mulf %432, %439 : vector<16x128xf32>
    %441 = arith.truncf %440 : vector<16x128xf32> to vector<16x128xbf16>
    %c0_231 = arith.constant 0 : index
    %c0_232 = arith.constant 0 : index
    %442 = vector.load %arg13[%c0_231, %c0_232] : memref<16x128xf32, #tpu.memory_space<vmem>>, vector<16x128xf32>
    tpu.vector_store %arg13[%c0_231, %c0_232], %438 {strides = array<i32>} : memref<16x128xf32, #tpu.memory_space<vmem>>, vector<16x128xf32>,
    %c0_233 = arith.constant 0 : index
    %c0_234 = arith.constant 0 : index
    %443 = vector.load %arg12[%c0_233, %c0_234] : memref<16x128xbf16, #tpu.memory_space<vmem>>, vector<16x128xbf16>
    tpu.vector_store %arg12[%c0_233, %c0_234], %441 {strides = array<i32>} : memref<16x128xbf16, #tpu.memory_space<vmem>>, vector<16x128xbf16>,
    %c8_i32 = arith.constant 8 : i32
    %c0_i32_235 = arith.constant 0 : i32
    %444 = arith.cmpi eq, %arg1, %c0_i32_235 : i32
    %445 = arith.extui %444 : i1 to i32
    %c0_i32_236 = arith.constant 0 : i32
    %446 = arith.cmpi ne, %445, %c0_i32_236 : i32
    scf.if %446 {
      %c0_237 = arith.constant 0 : index
      %c0_238 = arith.constant 0 : index
      %447 = vector.load %arg12[%c0_237, %c0_238] : memref<16x128xbf16, #tpu.memory_space<vmem>>, vector<16x128xbf16>
      %448 = arith.extf %447 : vector<16x128xbf16> to vector<16x128xf32>
      %c0_239 = arith.constant 0 : index
      %c0_240 = arith.constant 0 : index
      %449 = vector.load %arg8[%c0_239, %c0_240] : memref<16x128xf32, #tpu.memory_space<vmem>>, vector<16x128xf32>
      tpu.vector_store %arg8[%c0_239, %c0_240], %448 {strides = array<i32>} : memref<16x128xf32, #tpu.memory_space<vmem>>, vector<16x128xf32>,
    } else {
    }
    return
  }
  func.func @transform_0(%arg0: i32, %arg1: i32) -> (i32, i32, i32) {
    %c0_i32 = arith.constant 0 : i32
    %c0_i32_0 = arith.constant 0 : i32
    return %arg1, %arg0, %c0_i32 : i32, i32, i32
  }
  func.func @transform_1(%arg0: i32, %arg1: i32) -> (i32, i32) {
    %c0_i32 = arith.constant 0 : i32
    %c0_i32_0 = arith.constant 0 : i32
    %c0_i32_1 = arith.constant 0 : i32
    return %c0_i32, %c0_i32_0 : i32, i32
  }
  func.func @transform_2(%arg0: i32, %arg1: i32) -> (i32, i32) {
    %c0_i32 = arith.constant 0 : i32
    %c0_i32_0 = arith.constant 0 : i32
    %c0_i32_1 = arith.constant 0 : i32
    return %c0_i32, %c0_i32_0 : i32, i32
  }
  func.func @transform_3(%arg0: i32, %arg1: i32) -> (i32, i32) {
    %c0_i32 = arith.constant 0 : i32
    %c0_i32_0 = arith.constant 0 : i32
    %c0_i32_1 = arith.constant 0 : i32
    return %c0_i32, %c0_i32_0 : i32, i32
  }
  func.func @transform_4(%arg0: i32, %arg1: i32) -> (i32, i32) {
    %c0_i32 = arith.constant 0 : i32
    %c0_i32_0 = arith.constant 0 : i32
    %c0_i32_1 = arith.constant 0 : i32
    return %c0_i32, %c0_i32_0 : i32, i32
  }
  func.func @transform_5(%arg0: i32, %arg1: i32) -> (i32, i32) {
    %c0_i32 = arith.constant 0 : i32
    %c0_i32_0 = arith.constant 0 : i32
    %c0_i32_1 = arith.constant 0 : i32
    return %c0_i32, %c0_i32_0 : i32, i32
  }
  func.func @transform_6(%arg0: i32, %arg1: i32) -> (i32, i32) {
    %c0_i32 = arith.constant 0 : i32
    %c0_i32_0 = arith.constant 0 : i32
    return %arg0, %c0_i32 : i32, i32
  }
}

</mosaic_0001>

<bundles_post_ra>
// kernel: tpu_custom_call.1
= control target key start
LH: loop header
LB: loop body
LE: loop exit
PB: predicated region body
PF: predicated region fallthrough
CT: control target
= control target key end

     0   :  { %11 = vsyncpa [#allocation8], 0  ;;  %s11764_s0 = inlined_call_operand.vmem [shape: bf16[8,16,4], index: 0, kind: input, shape index: {}]   ;;  %s11765_s1 = inlined_call_operand.vmem [shape: bf16[4,512], index: 1, kind: input, shape index: {}]   ;;  %s11766_s2 = inlined_call_operand.hbm [shape: bf16[128,512], index: 2, kind: input, shape index: {}]   ;;  %s11767_s3 = inlined_call_operand.vmem [shape: f32[1,512], index: 3, kind: input, shape index: {}]   ;;  %s11768_s4 = inlined_call_operand.hbm [shape: bf16[256,512], index: 4, kind: input, shape index: {}]   ;;  %s11769_s5 = inlined_call_operand.vmem [shape: f32[1,512], index: 5, kind: input, shape index: {}]   ;;  %s11770_s6 = inlined_call_operand.hbm [shape: f32[16,128], index: 6, kind: output, shape index: {}]  }
   0x1   :  { %12 = vsyncpa [#allocation11], 0 }
   0x2   :  { %13 = vsyncpa [#allocation9], 0  ;;  %s9919_s21 = smov [#allocation7]   ;;  %s9847_s25 = scalar_lea.hbm %s11766_s2, 4096 }
   0x3   :  { %s23_s22 = sshll.u32 %s9919_s21, 4  ;;  %p9848_p0 = scmp.ne.s32.totalorder %s11766_s2, %s9847_s25  ;;  %s24_s22 = int_to_ptr.vmem [resolvable:$true] %s23_s22 }
   0x4   :  { %p9851_p1 = scmp.lt.u32.totalorder %s9847_s25, %s11766_s2 }
   0x6   :  { %p9853_p2 = pnand %p9851_p1, %p9848_p0 }
   0x8   :  { %9856 = shalt.err (!%p9853_p2)
}
   0x9   :  { %s9857_s30 = scalar_lea.vmem %s24_s22, 4096  ;;  %p9862_p4 = scmp.lt.s32.totalorder %s24_s22, %s24_s22 }
   0xa   :  { %p9858_p3 = scmp.ne.s32.totalorder %s24_s22, %s9857_s30  ;;  %p9863_p5 = scmp.lt.s32.totalorder %s9857_s30, %s9857_s30 }
   0xc   :  { %p9864_p6 = por %p9863_p5, %p9862_p4 }
   0xe   :  { %p9865_p7 = pnand %p9864_p6, %p9858_p3 }
  0x10   :  { %9868 = shalt.err (!%p9865_p7)
}
  0x11   :  { %s9920_s7 = smov 256   ;;  %s9921_s8 = smov 16  }
  0x12   :  { %29 = dma.hbm_to_vmem [thread:$0]  %s11766_s2, 4096, %s24_s22, [#allocation8], %s9920_s7, %s9920_s7, %s9921_s8  }
  0x13   :  { %s9922_s11 = smov [#allocation10]   ;;  %s9869_s15 = scalar_lea.hbm %s11768_s4, 8192 }
  0x14   :  { %s37_s12 = sshll.u32 %s9922_s11, 4  ;;  %p9870_p8 = scmp.ne.s32.totalorder %s11768_s4, %s9869_s15  ;;  %s38_s12 = int_to_ptr.vmem [resolvable:$true] %s37_s12 }
  0x15   :  { %p9873_p9 = scmp.lt.u32.totalorder %s9869_s15, %s11768_s4 }
  0x17   :  { %p9875_p10 = pnand %p9873_p9, %p9870_p8 }
  0x19   :  { %9878 = shalt.err (!%p9875_p10)
}
  0x1a   :  { %s9879_s20 = scalar_lea.vmem %s38_s12, 8192  ;;  %p9884_p12 = scmp.lt.s32.totalorder %s38_s12, %s38_s12 }
  0x1b   :  { %p9880_p11 = scmp.ne.s32.totalorder %s38_s12, %s9879_s20  ;;  %p9885_p13 = scmp.lt.s32.totalorder %s9879_s20, %s9879_s20 }
  0x1d   :  { %p9886_p0 = por %p9885_p13, %p9884_p12 }
  0x1f   :  { %p9887_p1 = pnand %p9886_p0, %p9880_p11 }
  0x21   :  { %9890 = shalt.err (!%p9887_p1)
}
  0x22   :  { %43 = dma.hbm_to_vmem [thread:$0]  %s11768_s4, 8192, %s38_s12, [#allocation11], %s9920_s7, %s9920_s7, %s9921_s8  }
  0x23   :  { %9913 = dma.done.wait [#allocation8], 4096  }
  0x24   :  { %9914 = vsyncadd [#allocation8], 4294963200 }
  0x25   :  { %9915 = dma.done.wait [#allocation11], 8192  }
  0x26   :  { %9916 = vsyncadd [#allocation11], 4294959104  ;;  %v82_v0 = vlaneseq  ;;  %v9923_v1 = vmov 1983009808   ;;  %v11771_v3 = vmov 0   ;;  %v79_v7 = vld [vmem:[%s11765_s1] sm:$0xff] }
  0x27   :  { %v145_v2 = vunpack.c.l.s4 %v9923_v1  ;;  %230 = vmatprep.mubr.bf16.mxu0 %v11771_v3  ;;  %343 = vmatprep.mubr.bf16.mxu1 %v11771_v3  ;;  %vm185_vm0 = vcmask 1041408   ;;  %v143_v9 = vcombine.high %v79_v7, %v79_v7  ;;  %v8720_v13 = vld [vmem:[#allocation7 + $0x4] ss:$16 sps:$4 sm:$0xff]   ;;  %v8718_v17 = vld [vmem:[#allocation7] ss:$16 sps:$4 sm:$0xff]   ;;  %vm160_vm1 = vcmask 31744  }
  0x28   :  { %v9989_v4 = vshrl.u32 %v82_v0, 7  ;;  %v8717_v16 = vld [vmem:[%s11764_s0] sm:$0xff]   ;;  %v8727_v18 = vld [vmem:[#allocation7 + $0xc] ss:$16 sps:$4 sm:$0xff]   ;;  %v8725_v20 = vld [vmem:[#allocation7 + $0x8] ss:$16 sps:$4 sm:$0xff]  }
  0x29   :  { %v146_v5 = vunpack.c.0.s8 %v145_v2  ;;  %v8724_v19 = vld [vmem:[#allocation7 + $0x24] ss:$16 sps:$4 sm:$0xff]   ;;  %v8734_v21 = vld [vmem:[#allocation7 + $0x2c] ss:$16 sps:$4 sm:$0xff]   ;;  %v8722_v22 = vld [vmem:[#allocation7 + $0x20] ss:$16 sps:$4 sm:$0xff]  }
  0x2a   :  { %v8731_v23 = vld [vmem:[#allocation7 + $0x44] ss:$16 sps:$4 sm:$0xff]   ;;  %v8721_v24 = vld [vmem:[%s11764_s0 + $0x8] sm:$0xff]   ;;  %v8729_v27 = vld [vmem:[#allocation7 + $0x40] ss:$16 sps:$4 sm:$0xff]  }
  0x2b   :  { %v149_v6 = vsub.s32 %v146_v5, %v9989_v4  ;;  %v8732_v25 = vld [vmem:[#allocation7 + $0x28] ss:$16 sps:$4 sm:$0xff]   ;;  %v8741_v26 = vld [vmem:[#allocation7 + $0x4c] ss:$16 sps:$4 sm:$0xff]   ;;  %v8738_v28 = vld [vmem:[#allocation7 + $0x64] ss:$16 sps:$4 sm:$0xff]  }
  0x2c   :  { %v8739_v29 = vld [vmem:[#allocation7 + $0x48] ss:$16 sps:$4 sm:$0xff]   ;;  %v8748_v30 = vld [vmem:[#allocation7 + $0x6c] ss:$16 sps:$4 sm:$0xff]   ;;  %v8736_v31 = vld [vmem:[#allocation7 + $0x60] ss:$16 sps:$4 sm:$0xff]  }
  0x2d   :  { %v150_v8 = vrot.slane %v79_v7, %v149_v6  ;;  %v157_v12 = vrot.slane %v143_v9, %v149_v6  ;;  %v8728_v32 = vld [vmem:[%s11764_s0 + $0x10] sm:$0xff]   ;;  %v8746_v34 = vld [vmem:[#allocation7 + $0x68] ss:$16 sps:$4 sm:$0xff]   ;;  %v8755_v35 = vld [vmem:[#allocation7 + $0x8c] ss:$16 sps:$4 sm:$0xff]  }
  0x2e   :  { %v8745_v33 = vld [vmem:[#allocation7 + $0x84] ss:$16 sps:$4 sm:$0xff]   ;;  %v8743_v36 = vld [vmem:[#allocation7 + $0x80] ss:$16 sps:$4 sm:$0xff]   ;;  %v8753_v38 = vld [vmem:[#allocation7 + $0x88] ss:$16 sps:$4 sm:$0xff]  }
  0x2f   :  { %v158_v10 = vcombine.high %v150_v8, %v150_v8  ;;  %v187_v11 = vsel %vm185_vm0, %v150_v8, 0  ;;  %v159_v14 = vcombine.high %v157_v12, %v157_v12  ;;  %v193_v15 = vsel %vm185_vm0, %v157_v12, 0  ;;  %v8752_v37 = vld [vmem:[#allocation7 + $0xa4] ss:$16 sps:$4 sm:$0xff]   ;;  %v8762_v39 = vld [vmem:[#allocation7 + $0xac] ss:$16 sps:$4 sm:$0xff]  }
  0x30   :  { %v8750_v40 = vld [vmem:[#allocation7 + $0xa0] ss:$16 sps:$4 sm:$0xff]   ;;  %v8759_v41 = vld [vmem:[#allocation7 + $0xc4] ss:$16 sps:$4 sm:$0xff]   ;;  %v8735_v42 = vld [vmem:[%s11764_s0 + $0x18] sm:$0xff]  }
  0x31   :  { %7697 = vmatprep.subr.msk.bf16.mxu0 %vm185_vm0, %v158_v10  ;;  %7706 = vmatprep.subr.msk.bf16.mxu1 %vm185_vm0, %v159_v14  ;;  %v8760_v43 = vld [vmem:[#allocation7 + $0xa8] ss:$16 sps:$4 sm:$0xff]   ;;  %v8769_v44 = vld [vmem:[#allocation7 + $0xcc] ss:$16 sps:$4 sm:$0xff]   ;;  %v8757_v45 = vld [vmem:[#allocation7 + $0xc0] ss:$16 sps:$4 sm:$0xff]  }
  0x32   :  { %199 = vmatpush1.bf16.msra.mxu0 %v187_v11  ;;  %312 = vmatpush1.bf16.msra.mxu1 %v193_v15  ;;  %v8766_v46 = vld [vmem:[#allocation7 + $0xe4] ss:$16 sps:$4 sm:$0xff]   ;;  %v8767_v47 = vld [vmem:[#allocation7 + $0xc8] ss:$16 sps:$4 sm:$0xff]   ;;  %v8772_v48 = vld [vmem:[#allocation7 + $0xec] ss:$16 sps:$4 sm:$0xff]  }
  0x33   :  { %689 = vmatprep.subr.bf16.mxu0 %v8720_v13  ;;  %732 = vmatprep.subr.bf16.mxu1 %v8727_v18  ;;  %v8764_v49 = vld [vmem:[#allocation7 + $0xe0] ss:$16 sps:$4 sm:$0xff]   ;;  %v8775_v50 = vld [vmem:[#allocation10 + $0x4] ss:$16 sps:$4 sm:$0xff]   ;;  %v8770_v52 = vld [vmem:[#allocation7 + $0xe8] ss:$16 sps:$4 sm:$0xff]  }
  0x34   :  { %v8742_v51 = vld [vmem:[%s11764_s0 + $0x20] sm:$0xff]   ;;  %v8778_v53 = vld [vmem:[#allocation10 + $0xc] ss:$16 sps:$4 sm:$0xff]   ;;  %v8756_v55 = vld [vmem:[%s11764_s0 + $0x30] sm:$0xff]  }
  0x35   :  { %7698 = vmatmul.mubr.msk.bf16.vlgmr.msra.gmra.mrb[0].mxu0 %vm160_vm1, %v8717_v16  ;;  %7707 = vmatmul.mubr.msk.bf16.vlgmr.msra.gmra.mrb[0].mxu1 %vm160_vm1, %v8717_v16  ;;  %v8749_v54 = vld [vmem:[%s11764_s0 + $0x28] sm:$0xff]   ;;  %v8763_v56 = vld [vmem:[%s11764_s0 + $0x38] sm:$0xff]   ;;  %v10051_v57 = vld [vmem:[#allocation10] ss:$16 sps:$4 sm:$0xff]  }
  0x36   :  { %690 = vmatpush1.bf16.msra.mxu0 %v8718_v17  ;;  %240 = vmatprep.mubr.bf16.mxu0 %v11771_v3  ;;  %v10053_v58 = vld [vmem:[#allocation10 + $0x24] ss:$16 sps:$4 sm:$0xff]   ;;  %v10055_v59 = vld [vmem:[#allocation10 + $0x8] ss:$16 sps:$4 sm:$0xff]   ;;  %v10057_v60 = vld [vmem:[#allocation10 + $0x2c] ss:$16 sps:$4 sm:$0xff]  }
  0x37   :  { %691 = vmatprep.subr.bf16.mxu0 %v8724_v19  ;;  %353 = vmatprep.mubr.bf16.mxu1 %v11771_v3  ;;  %v10059_v61 = vld [vmem:[#allocation10 + $0x20] ss:$16 sps:$4 sm:$0xff]   ;;  %v10062_v62 = vld [vmem:[#allocation10 + $0x44] ss:$16 sps:$4 sm:$0xff]   ;;  %v10065_v63 = vld [vmem:[#allocation10 + $0x28] ss:$16 sps:$4 sm:$0xff]  }
  0x38   :  { %733 = vmatpush1.bf16.msra.mxu1 %v8725_v20  ;;  %v10070_v0 = vld [vmem:[#allocation10 + $0x4c] ss:$16 sps:$4 sm:$0xff]   ;;  %v10073_v1 = vld [vmem:[#allocation10 + $0x40] ss:$16 sps:$4 sm:$0xff]   ;;  %v10077_v2 = vld [vmem:[#allocation10 + $0x64] ss:$16 sps:$4 sm:$0xff]  }
  0x39   :  { %734 = vmatprep.subr.bf16.mxu1 %v8734_v21  ;;  %v10080_v5 = vld [vmem:[#allocation10 + $0x48] ss:$16 sps:$4 sm:$0xff]   ;;  %v10083_v6 = vld [vmem:[#allocation10 + $0x6c] ss:$16 sps:$4 sm:$0xff]   ;;  %v10086_v7 = vld [vmem:[#allocation10 + $0x60] ss:$16 sps:$4 sm:$0xff]  }
  0x3a   :  { %692 = vmatpush1.bf16.msra.mxu0 %v8722_v22  ;;  %v10090_v8 = vld [vmem:[#allocation10 + $0x68] ss:$16 sps:$4 sm:$0xff]   ;;  %v10097_v9 = vld [vmem:[#allocation10 + $0x84] ss:$16 sps:$4 sm:$0xff]   ;;  %v10099_v10 = vld [vmem:[#allocation10 + $0x8c] ss:$16 sps:$4 sm:$0xff]  }
  0x3b   :  { %693 = vmatprep.subr.bf16.mxu0 %v8731_v23  ;;  %v10101_v11 = vld [vmem:[#allocation10 + $0x80] ss:$16 sps:$4 sm:$0xff]   ;;  %v10103_v12 = vld [vmem:[#allocation10 + $0x88] ss:$16 sps:$4 sm:$0xff]   ;;  %v10109_v13 = vld [vmem:[#allocation10 + $0xa4] ss:$16 sps:$4 sm:$0xff]  }
  0x3c   :  { %735 = vmatpush1.bf16.msra.mxu1 %v8732_v25  ;;  %v10111_v14 = vld [vmem:[#allocation10 + $0xac] ss:$16 sps:$4 sm:$0xff]   ;;  %v10113_v15 = vld [vmem:[#allocation10 + $0xa0] ss:$16 sps:$4 sm:$0xff]   ;;  %v10115_v16 = vld [vmem:[#allocation10 + $0xa8] ss:$16 sps:$4 sm:$0xff]  }
  0x3d   :  { %7699 = vmatmul.mubr.msk.bf16.gmra.mrb[4].mxu0 %vm160_vm1, %v8721_v24  ;;  %736 = vmatprep.subr.bf16.mxu1 %v8741_v26  ;;  %v10121_v17 = vld [vmem:[#allocation10 + $0xc4] ss:$16 sps:$4 sm:$0xff]   ;;  %v10123_v18 = vld [vmem:[#allocation10 + $0xcc] ss:$16 sps:$4 sm:$0xff]   ;;  %v10125_v19 = vld [vmem:[#allocation10 + $0xc0] ss:$16 sps:$4 sm:$0xff]  }
  0x3e   :  { %250 = vmatprep.mubr.bf16.mxu0 %v11771_v3  ;;  %694 = vmatpush1.bf16.msra.mxu0 %v8729_v27  ;;  %v10127_v20 = vld [vmem:[#allocation10 + $0xc8] ss:$16 sps:$4 sm:$0xff]   ;;  %v10133_v21 = vld [vmem:[#allocation10 + $0xe4] ss:$16 sps:$4 sm:$0xff]   ;;  %v10135_v22 = vld [vmem:[#allocation10 + $0xec] ss:$16 sps:$4 sm:$0xff]  }
  0x3f   :  { %7708 = vmatmul.mubr.msk.bf16.gmra.mrb[4].mxu1 %vm160_vm1, %v8721_v24  ;;  %695 = vmatprep.subr.bf16.mxu0 %v8738_v28  ;;  %v10137_v23 = vld [vmem:[#allocation10 + $0xe0] ss:$16 sps:$4 sm:$0xff]   ;;  %v10139_v24 = vld [vmem:[#allocation10 + $0xe8] ss:$16 sps:$4 sm:$0xff]   ;;  %v10145_v25 = vld [vmem:[#allocation10 + $0x104] ss:$16 sps:$4 sm:$0xff]  }
  0x40   :  { %363 = vmatprep.mubr.bf16.mxu1 %v11771_v3  ;;  %737 = vmatpush1.bf16.msra.mxu1 %v8739_v29  ;;  %v10147_v26 = vld [vmem:[#allocation10 + $0x10c] ss:$16 sps:$4 sm:$0xff]   ;;  %v10149_v27 = vld [vmem:[#allocation10 + $0x100] ss:$16 sps:$4 sm:$0xff]   ;;  %v10151_v28 = vld [vmem:[#allocation10 + $0x108] ss:$16 sps:$4 sm:$0xff]  }
  0x41   :  { %738 = vmatprep.subr.bf16.mxu1 %v8748_v30  ;;  %v10157_v29 = vld [vmem:[#allocation10 + $0x124] ss:$16 sps:$4 sm:$0xff]   ;;  %v10159_v30 = vld [vmem:[#allocation10 + $0x12c] ss:$16 sps:$4 sm:$0xff]  }
  0x42   :  { %696 = vmatpush1.bf16.msra.mxu0 %v8736_v31  ;;  %v10161_v31 = vld [vmem:[#allocation10 + $0x120] ss:$16 sps:$4 sm:$0xff]  }
  0x43   :  { %697 = vmatprep.subr.bf16.mxu0 %v8745_v33  ;;  %v10169_v33 = vld [vmem:[#allocation10 + $0x144] ss:$16 sps:$4 sm:$0xff]  }
  0x44   :  { %739 = vmatpush1.bf16.msra.mxu1 %v8746_v34  ;;  %v10171_v34 = vld [vmem:[#allocation10 + $0x14c] ss:$16 sps:$4 sm:$0xff]  }
  0x45   :  { %7700 = vmatmul.mubr.msk.bf16.gmra.mrb[8].mxu0 %vm160_vm1, %v8728_v32  ;;  %740 = vmatprep.subr.bf16.mxu1 %v8755_v35  ;;  %v10173_v35 = vld [vmem:[#allocation10 + $0x140] ss:$16 sps:$4 sm:$0xff]  }
  0x46   :  { %260 = vmatprep.mubr.bf16.mxu0 %v11771_v3  ;;  %698 = vmatpush1.bf16.msra.mxu0 %v8743_v36  ;;  %v10175_v36 = vld [vmem:[#allocation10 + $0x148] ss:$16 sps:$4 sm:$0xff]  }
  0x47   :  { %7709 = vmatmul.mubr.msk.bf16.gmra.mrb[8].mxu1 %vm160_vm1, %v8728_v32  ;;  %699 = vmatprep.subr.bf16.mxu0 %v8752_v37  ;;  %v10163_v32 = vld [vmem:[#allocation10 + $0x128] ss:$16 sps:$4 sm:$0xff]   ;;  %v10181_v37 = vld [vmem:[#allocation10 + $0x164] ss:$16 sps:$4 sm:$0xff]  }
  0x48   :  { %373 = vmatprep.mubr.bf16.mxu1 %v11771_v3  ;;  %741 = vmatpush1.bf16.msra.mxu1 %v8753_v38  ;;  %12004 = vst [vmem:[#allocation16_spill] sm:$0xff] %v10181_v37  ;;  %v10183_v38 = vld [vmem:[#allocation10 + $0x16c] ss:$16 sps:$4 sm:$0xff]  }
  0x49   :  { %742 = vmatprep.subr.bf16.mxu1 %v8762_v39  ;;  %12005 = vst [vmem:[#allocation17_spill] sm:$0xff] %v10183_v38  ;;  %v10185_v39 = vld [vmem:[#allocation10 + $0x160] ss:$16 sps:$4 sm:$0xff]  }
  0x4a   :  { %700 = vmatpush1.bf16.msra.mxu0 %v8750_v40  ;;  %12006 = vst [vmem:[#allocation18_spill] sm:$0xff] %v10185_v39  ;;  %v10187_v40 = vld [vmem:[#allocation10 + $0x168] ss:$16 sps:$4 sm:$0xff]  }
  0x4b   :  { %701 = vmatprep.subr.bf16.mxu0 %v8759_v41  ;;  %12007 = vst [vmem:[#allocation19_spill] sm:$0xff] %v10187_v40  ;;  %v10193_v41 = vld [vmem:[#allocation10 + $0x184] ss:$16 sps:$4 sm:$0xff]  }
  0x4c   :  { %743 = vmatpush1.bf16.msra.mxu1 %v8760_v43  ;;  %12008 = vst [vmem:[#allocation20_spill] sm:$0xff] %v10193_v41  ;;  %v10197_v43 = vld [vmem:[#allocation10 + $0x180] ss:$16 sps:$4 sm:$0xff]  }
  0x4d   :  { %7701 = vmatmul.mubr.msk.bf16.gmra.mrb[12].mxu0 %vm160_vm1, %v8735_v42  ;;  %744 = vmatprep.subr.bf16.mxu1 %v8769_v44  ;;  %12010 = vst [vmem:[#allocation22_spill] sm:$0xff] %v10197_v43  ;;  %v10199_v44 = vld [vmem:[#allocation10 + $0x188] ss:$16 sps:$4 sm:$0xff]  }
  0x4e   :  { %270 = vmatprep.mubr.bf16.mxu0 %v11771_v3  ;;  %702 = vmatpush1.bf16.msra.mxu0 %v8757_v45  ;;  %12011 = vst [vmem:[#allocation23_spill] sm:$0xff] %v10199_v44  ;;  %v10203_v45 = vld [vmem:[#allocation10 + $0x1a4] ss:$16 sps:$4 sm:$0xff]  }
  0x4f   :  { %7710 = vmatmul.mubr.msk.bf16.gmra.mrb[12].mxu1 %vm160_vm1, %v8735_v42  ;;  %703 = vmatprep.subr.bf16.mxu0 %v8766_v46  ;;  %v10195_v42 = vld [vmem:[#allocation10 + $0x18c] ss:$16 sps:$4 sm:$0xff]   ;;  %12012 = vst [vmem:[#allocation24_spill] sm:$0xff] %v10203_v45 }
  0x50   :  { %383 = vmatprep.mubr.bf16.mxu1 %v11771_v3  ;;  %745 = vmatpush1.bf16.msra.mxu1 %v8767_v47  ;;  %12009 = vst [vmem:[#allocation21_spill] sm:$0xff] %v10195_v42  ;;  %v10205_v46 = vld [vmem:[#allocation10 + $0x1ac] ss:$16 sps:$4 sm:$0xff]   ;;  %v10209_v47 = vld [vmem:[#allocation10 + $0x1a0] ss:$16 sps:$4 sm:$0xff]  }
  0x51   :  { %746 = vmatprep.subr.bf16.mxu1 %v8772_v48  ;;  %12013 = vst [vmem:[#allocation25_spill] sm:$0xff] %v10205_v46  ;;  %12014 = vst [vmem:[#allocation26_spill] sm:$0xff] %v10209_v47  ;;  %v10211_v48 = vld [vmem:[#allocation10 + $0x1a8] ss:$16 sps:$4 sm:$0xff]  }
  0x52   :  { %704 = vmatpush1.bf16.msra.mxu0 %v8764_v49  ;;  %12015 = vst [vmem:[#allocation27_spill] sm:$0xff] %v10211_v48  ;;  %v10215_v49 = vld [vmem:[#allocation10 + $0x1c4] ss:$16 sps:$4 sm:$0xff]  }
  0x53   :  { %1244 = vmatprep.subr.bf16.mxu0 %v8775_v50  ;;  %12016 = vst [vmem:[#allocation28_spill] sm:$0xff] %v10215_v49  ;;  %v10217_v50 = vld [vmem:[#allocation10 + $0x1cc] ss:$16 sps:$4 sm:$0xff]  }
  0x54   :  { %747 = vmatpush1.bf16.msra.mxu1 %v8770_v52  ;;  %12017 = vst [vmem:[#allocation29_spill] sm:$0xff] %v10217_v50  ;;  %v10223_v52 = vld [vmem:[#allocation10 + $0x1c8] ss:$16 sps:$4 sm:$0xff]  }
  0x55   :  { %7702 = vmatmul.mubr.msk.bf16.gmra.mrb[16].mxu0 %vm160_vm1, %v8742_v51  ;;  %1287 = vmatprep.subr.bf16.mxu1 %v8778_v53  ;;  %12019 = vst [vmem:[#allocation31_spill] sm:$0xff] %v10223_v52  ;;  %v10227_v53 = vld [vmem:[#allocation10 + $0x1e4] ss:$16 sps:$4 sm:$0xff]  }
  0x56   :  { %280 = vmatprep.mubr.bf16.mxu0 %v11771_v3  ;;  %12020 = vst [vmem:[#allocation32_spill] sm:$0xff] %v10227_v53 }
  0x57   :  { %7711 = vmatmul.mubr.msk.bf16.gmra.mrb[16].mxu1 %vm160_vm1, %v8742_v51  ;;  %v10221_v51 = vld [vmem:[#allocation10 + $0x1c0] ss:$16 sps:$4 sm:$0xff]  }
  0x58   :  { %393 = vmatprep.mubr.bf16.mxu1 %v11771_v3  ;;  %12018 = vst [vmem:[#allocation30_spill] sm:$0xff] %v10221_v51 }
  0x5d   :  { %7703 = vmatmul.mubr.msk.bf16.gmra.mrb[20].mxu0 %vm160_vm1, %v8749_v54 }
  0x5e   :  { %290 = vmatprep.mubr.bf16.mxu0 %v11771_v3 }
  0x5f   :  { %7712 = vmatmul.mubr.msk.bf16.gmra.mrb[20].mxu1 %vm160_vm1, %v8749_v54  ;;  %v10229_v54 = vld [vmem:[#allocation10 + $0x1ec] ss:$16 sps:$4 sm:$0xff]  }
  0x60   :  { %403 = vmatprep.mubr.bf16.mxu1 %v11771_v3  ;;  %12021 = vst [vmem:[#allocation33_spill] sm:$0xff] %v10229_v54 }
  0x65   :  { %7704 = vmatmul.mubr.msk.bf16.gmra.mrb[24].mxu0 %vm160_vm1, %v8756_v55 }
  0x66   :  { %300 = vmatprep.mubr.bf16.mxu0 %v11771_v3 }
  0x67   :  { %7713 = vmatmul.mubr.msk.bf16.gmra.mrb[24].mxu1 %vm160_vm1, %v8756_v55  ;;  %v10233_v55 = vld [vmem:[#allocation10 + $0x1e0] ss:$16 sps:$4 sm:$0xff]  }
  0x68   :  { %413 = vmatprep.mubr.bf16.mxu1 %v11771_v3  ;;  %12022 = vst [vmem:[#allocation34_spill] sm:$0xff] %v10233_v55 }
  0x6d   :  { %7705 = vmatmul.mubr.msk.bf16.gmra.mrb[28].mxu0 %vm160_vm1, %v8763_v56 }
  0x6e   :  { %721 = vmatprep.mubr.bf16.mxu0 %v11771_v3 }
  0x6f   :  { %7714 = vmatmul.mubr.msk.bf16.gmra.mrb[28].mxu1 %vm160_vm1, %v8763_v56  ;;  %v10235_v56 = vld [vmem:[#allocation10 + $0x1e8] ss:$16 sps:$4 sm:$0xff]  }
  0x70   :  { %764 = vmatprep.mubr.bf16.mxu1 %v11771_v3  ;;  %12023 = vst [vmem:[#allocation35_spill] sm:$0xff] %v10235_v56 }
  0x75   :  { %722 = vmatmul.mubr.bf16.vlgmr.msra.gmra.mrb[0].mxu0 %v11771_v3 }
  0x76   :  { %1245 = vmatpush1.bf16.msra.mxu0 %v10051_v57  ;;  %1276 = vmatprep.mubr.bf16.mxu0 %v11771_v3 }
  0x77   :  { %765 = vmatmul.mubr.bf16.vlgmr.msra.gmra.mrb[0].mxu1 %v11771_v3  ;;  %1246 = vmatprep.subr.bf16.mxu0 %v10053_v58 }
  0x78   :  { %1288 = vmatpush1.bf16.msra.mxu1 %v10055_v59  ;;  %1319 = vmatprep.mubr.bf16.mxu1 %v11771_v3  ;;  %v9813_v3 = vld [vmem:[#allocation7 + $0x4] ss:$16 sps:$4 sm:$0xff]  }
  0x79   :  { %1289 = vmatprep.subr.bf16.mxu1 %v10057_v60 }
  0x7a   :  { %1247 = vmatpush1.bf16.msra.mxu0 %v10059_v61 }
  0x7b   :  { %1248 = vmatprep.subr.bf16.mxu0 %v10062_v62 }
  0x7c   :  { %1290 = vmatpush1.bf16.msra.mxu1 %v10065_v63 }
  0x7d   :  { %1291 = vmatprep.subr.bf16.mxu1 %v10070_v0 }
  0x7e   :  { %1249 = vmatpush1.bf16.msra.mxu0 %v10073_v1 }
  0x7f   :  { %1250 = vmatprep.subr.bf16.mxu0 %v10077_v2 }
  0x80   :  { %1292 = vmatpush1.bf16.msra.mxu1 %v10080_v5 }
  0x81   :  { %1293 = vmatprep.subr.bf16.mxu1 %v10083_v6 }
  0x82   :  { %1251 = vmatpush1.bf16.msra.mxu0 %v10086_v7 }
  0x83   :  { %1252 = vmatprep.subr.bf16.mxu0 %v10097_v9 }
  0x84   :  { %1294 = vmatpush1.bf16.msra.mxu1 %v10090_v8 }
  0x85   :  { %1295 = vmatprep.subr.bf16.mxu1 %v10099_v10 }
  0x86   :  { %1253 = vmatpush1.bf16.msra.mxu0 %v10101_v11 }
  0x87   :  { %1254 = vmatprep.subr.bf16.mxu0 %v10109_v13 }
  0x88   :  { %1296 = vmatpush1.bf16.msra.mxu1 %v10103_v12 }
  0x89   :  { %1297 = vmatprep.subr.bf16.mxu1 %v10111_v14 }
  0x8a   :  { %1255 = vmatpush1.bf16.msra.mxu0 %v10113_v15 }
  0x8b   :  { %1256 = vmatprep.subr.bf16.mxu0 %v10121_v17 }
  0x8c   :  { %1298 = vmatpush1.bf16.msra.mxu1 %v10115_v16 }
  0x8d   :  { %1299 = vmatprep.subr.bf16.mxu1 %v10123_v18 }
  0x8e   :  { %1257 = vmatpush1.bf16.msra.mxu0 %v10125_v19 }
  0x8f   :  { %1258 = vmatprep.subr.bf16.mxu0 %v10133_v21 }
  0x90   :  { %1300 = vmatpush1.bf16.msra.mxu1 %v10127_v20 }
  0x91   :  { %1301 = vmatprep.subr.bf16.mxu1 %v10135_v22 }
  0x92   :  { %1259 = vmatpush1.bf16.msra.mxu0 %v10137_v23 }
  0x93   :  { %1260 = vmatprep.subr.bf16.mxu0 %v10145_v25 }
  0x94   :  { %1302 = vmatpush1.bf16.msra.mxu1 %v10139_v24 }
  0x95   :  { %1303 = vmatprep.subr.bf16.mxu1 %v10147_v26 }
  0x96   :  { %1261 = vmatpush1.bf16.msra.mxu0 %v10149_v27 }
  0x97   :  { %1262 = vmatprep.subr.bf16.mxu0 %v10157_v29 }
  0x98   :  { %1304 = vmatpush1.bf16.msra.mxu1 %v10151_v28 }
  0x99   :  { %1305 = vmatprep.subr.bf16.mxu1 %v10159_v30 }
  0x9a   :  { %1263 = vmatpush1.bf16.msra.mxu0 %v10161_v31 }
  0x9b   :  { %1264 = vmatprep.subr.bf16.mxu0 %v10169_v33 }
  0x9c   :  { %1306 = vmatpush1.bf16.msra.mxu1 %v10163_v32 }
  0x9d   :  { %1307 = vmatprep.subr.bf16.mxu1 %v10171_v34 }
  0x9e   :  { %1265 = vmatpush1.bf16.msra.mxu0 %v10173_v35 }
  0x9f   :  { %1266 = vmatprep.subr.bf16.mxu0 %v10181_v37 }
  0xa0   :  { %1308 = vmatpush1.bf16.msra.mxu1 %v10175_v36 }
  0xa1   :  { %1309 = vmatprep.subr.bf16.mxu1 %v10183_v38 }
  0xa2   :  { %1267 = vmatpush1.bf16.msra.mxu0 %v10185_v39 }
  0xa3   :  { %1268 = vmatprep.subr.bf16.mxu0 %v10193_v41 }
  0xa4   :  { %1310 = vmatpush1.bf16.msra.mxu1 %v10187_v40 }
  0xa5   :  { %1311 = vmatprep.subr.bf16.mxu1 %v10195_v42 }
  0xa6   :  { %1269 = vmatpush1.bf16.msra.mxu0 %v10197_v43 }
  0xa7   :  { %1270 = vmatprep.subr.bf16.mxu0 %v10203_v45 }
  0xa8   :  { %1312 = vmatpush1.bf16.msra.mxu1 %v10199_v44 }
  0xa9   :  { %1313 = vmatprep.subr.bf16.mxu1 %v10205_v46 }
  0xaa   :  { %1271 = vmatpush1.bf16.msra.mxu0 %v10209_v47 }
  0xab   :  { %1272 = vmatprep.subr.bf16.mxu0 %v10215_v49  ;;  %v10248_v49 = vsub.s32 1, %v9989_v4 }
  0xac   :  { %1314 = vmatpush1.bf16.msra.mxu1 %v10211_v48 }
  0xad   :  { %1315 = vmatprep.subr.bf16.mxu1 %v10217_v50  ;;  %v9814_v50 = vld [vmem:[#allocation7 + $0xc] ss:$16 sps:$4 sm:$0xff]   ;;  %12025 = vst [vmem:[#allocation37_spill] sm:$0xff] %v10248_v49 }
  0xae   :  { %1273 = vmatpush1.bf16.msra.mxu0 %v10221_v51  ;;  %v10242_v51 = vsub.s32 0, %v9989_v4 }
  0xaf   :  { %1274 = vmatprep.subr.bf16.mxu0 %v10227_v53 }
  0xb0   :  { %1316 = vmatpush1.bf16.msra.mxu1 %v10223_v52  ;;  %12024 = vst [vmem:[#allocation36_spill] sm:$0xff] %v10242_v51  ;;  %v80_v52 = vld [vmem:[%s11767_s3] sm:$0xf] }
  0xb1   :  { %1317 = vmatprep.subr.bf16.mxu1 %v10229_v54  ;;  %v10251_v54 = vrot.slane %v80_v52, %v10242_v51  ;;  %v10265_v51 = vsub.s32 3, %v9989_v4 }
  0xb2   :  { %1275 = vmatpush1.bf16.msra.mxu0 %v10233_v55  ;;  %v10254_v55 = vrot.slane %v80_v52, %v10248_v49 }
  0xb3   :  { %1586 = vmatprep.subr.bf16.mxu0 %v9813_v3  ;;  %v10257_v3 = vsub.s32 2, %v9989_v4  ;;  %v10271_v37 = vrot.slane %v80_v52, %v10265_v51 }
  0xb4   :  { %1318 = vmatpush1.bf16.msra.mxu1 %v10235_v56 }
  0xb5   :  { %1629 = vmatprep.subr.bf16.mxu1 %v9814_v50  ;;  %12026 = vst [vmem:[#allocation38_spill] sm:$0xff] %v10257_v3  ;;  %v10261_v48 = vrot.slane %v80_v52, %v10257_v3  ;;  %12028 = vst [vmem:[#allocation40_spill] sm:$0xff] %v10271_v37 }
  0xb7   :  { %12027 = vst [vmem:[#allocation39_spill] sm:$0xff] %v10261_v48 }
 0x148   :  { %v723_v50 = vpop.f32.mrb[0].mxu0 }
 0x149   :  { %v8579_v56 = vadd.f32 %v723_v50, %v10251_v54  ;;  %v725_v53 = vpop.f32.mrb[1].mxu0 }
 0x14a   :  { %v8580_v47 = vadd.f32 %v725_v53, %v10254_v55  ;;  %v727_v46 = vpop.f32.mrb[2].mxu0  ;;  %v766_v45 = vpop.f32.mrb[0].mxu1 }
 0x14b   :  { %v7747_v44 = vmul.f32 -1.442695, %v8579_v56  ;;  %v8581_v49 = vadd.f32 %v727_v46, %v10251_v54  ;;  %v729_v43 = vpop.f32.mrb[3].mxu0  ;;  %v768_v42 = vpop.f32.mrb[1].mxu1  ;;  %v8611_v53 = vadd.f32 %v766_v45, %v10261_v48 }
 0x14c   :  { %v7748_v41 = vmul.f32 -1.442695, %v8580_v47  ;;  %v8582_v40 = vadd.f32 %v729_v43, %v10254_v55  ;;  %v770_v50 = vpop.f32.mrb[2].mxu1  ;;  %v8612_v47 = vadd.f32 %v768_v42, %v10271_v37 }
 0x14d   :  { %9301 = vpow2.f32 %v7747_v44  ;;  %v7750_v39 = vmul.f32 -1.442695, %v8581_v49  ;;  %v772_v3 = vpop.f32.mrb[3].mxu1  ;;  %v8613_v4 = vadd.f32 %v770_v50, %v10261_v48  ;;  %v7749_v46 = vmul.f32 -1.442695, %v8611_v53 }
 0x14e   :  { %9303 = vpow2.f32 %v7748_v41  ;;  %v7751_v38 = vmul.f32 -1.442695, %v8582_v40  ;;  %v8614_v43 = vadd.f32 %v772_v3, %v10271_v37 }
 0x14f   :  { %9305 = vpow2.f32 %v7750_v39  ;;  %v7752_v56 = vmul.f32 -1.442695, %v8613_v4 }
 0x150   :  { %9307 = vpow2.f32 %v7751_v38 }
 0x151   :  { %9309 = vpow2.f32 %v7749_v46 }
 0x152   :  { %9311 = vtanh.f32 %v8612_v47 }
 0x153   :  { %9313 = vpow2.f32 %v7752_v56 }
 0x154   :  { %9315 = vtanh.f32 %v8614_v43 }
 0x157   :  { %v9302_v44 = vpop.eup %9301 }
 0x158   :  { %v9304_v41 = vpop.eup %9303  ;;  %v801_v49 = vadd.f32 1.0, %v9302_v44 }
 0x159   :  { %v9306_v40 = vpop.eup %9305  ;;  %v802_v45 = vadd.f32 1.0, %v9304_v41 }
 0x15a   :  { %9317 = vrcp.f32 %v801_v49  ;;  %v804_v39 = vadd.f32 1.0, %v9306_v40  ;;  %v9308_v52 = vpop.eup %9307 }
 0x15b   :  { %9319 = vrcp.f32 %v802_v45  ;;  %v805_v38 = vadd.f32 1.0, %v9308_v52  ;;  %v9310_v42 = vpop.eup %9309 }
 0x15c   :  { %9321 = vrcp.f32 %v804_v39  ;;  %v9312_v50 = vpop.eup %9311  ;;  %v803_v56 = vadd.f32 1.0, %v9310_v42 }
 0x15d   :  { %9323 = vrcp.f32 %v805_v38  ;;  %v9314_v53 = vpop.eup %9313 }
 0x15e   :  { %v9316_v3 = vpop.eup %9315  ;;  %v806_v49 = vadd.f32 1.0, %v9314_v53  ;;  %9325 = vrcp.f32 %v803_v56  ;;  %v9815_v53 = vld [vmem:[#allocation7] ss:$16 sps:$4 sm:$0xff]   ;;  %v9820_v56 = vld [vmem:[#allocation7 + $0x28] ss:$16 sps:$4 sm:$0xff]  }
 0x164   :  { %v9318_v4 = vpop.eup %9317 }
 0x165   :  { %v9320_v46 = vpop.eup %9319  ;;  %v825_v47 = vmul.f32 %v9318_v4, %v9312_v50 }
 0x166   :  { %v9322_v37 = vpop.eup %9321  ;;  %v823_v44 = vmul.f32 0.0, %v9320_v46  ;;  %v9818_v46 = vld [vmem:[#allocation7 + $0x2c] ss:$16 sps:$4 sm:$0xff]  }
 0x167   :  { %v826_v48 = vmul.f32 %v9322_v37, %v9316_v3  ;;  %v9324_v41 = vpop.eup %9323  ;;  %v9816_v3 = vld [vmem:[#allocation7 + $0x8] ss:$16 sps:$4 sm:$0xff]  }
 0x168   :  { %v10276_v43 = vadd.f32 %v825_v47, %v823_v44  ;;  %v824_v40 = vmul.f32 0.0, %v9324_v41  ;;  %v9326_v39 = vpop.eup %9325  ;;  %v12029_v47 = vmov 0   ;;  %v9819_v44 = vld [vmem:[#allocation7 + $0x20] ss:$16 sps:$4 sm:$0xff]   ;;  %v9821_v41 = vld [vmem:[#allocation7 + $0x44] ss:$16 sps:$4 sm:$0xff]  }
 0x16a   :  { %9327 = vtanh.f32 %v10276_v43  ;;  %v10279_v45 = vadd.f32 %v826_v48, %v824_v40  ;;  %v9817_v48 = vld [vmem:[#allocation7 + $0x24] ss:$16 sps:$4 sm:$0xff]   ;;  %v9823_v40 = vld [vmem:[#allocation7 + $0x40] ss:$16 sps:$4 sm:$0xff]  }
 0x16b   :  { %9329 = vrcp.f32 %v806_v49  ;;  %v9822_v49 = vld [vmem:[#allocation7 + $0x4c] ss:$16 sps:$4 sm:$0xff]  }
 0x16c   :  { %9331 = vtanh.f32 %v10279_v45 }
 0x174   :  { %v9328_v52 = vpop.eup %9327 }
 0x175   :  { %v9330_v38 = vpop.eup %9329  ;;  %v831_v4 = vmul.f32 %v9328_v52, %v9326_v39  ;;  %v9824_v39 = vld [vmem:[#allocation7 + $0x48] ss:$16 sps:$4 sm:$0xff]   ;;  %v9825_v52 = vld [vmem:[#allocation7 + $0x64] ss:$16 sps:$4 sm:$0xff]  }
 0x176   :  { %v9332_v50 = vpop.eup %9331 }
 0x177   :  { %v832_v42 = vmul.f32 %v9332_v50, %v9330_v38  ;;  %v9826_v38 = vld [vmem:[#allocation7 + $0x6c] ss:$16 sps:$4 sm:$0xff]   ;;  %v9827_v50 = vld [vmem:[#allocation7 + $0x60] ss:$16 sps:$4 sm:$0xff]  }
 0x179   :  { %v10282_v37 = vpack.c.bf16 %v832_v42, %v831_v4  ;;  %v9828_v4 = vld [vmem:[#allocation7 + $0x68] ss:$16 sps:$4 sm:$0xff]   ;;  %v9829_v42 = vld [vmem:[#allocation7 + $0x84] ss:$16 sps:$4 sm:$0xff]  }
 0x17b   :  { %1277 = vmatmul.mubr.bf16.vlgmr.msra.gmra.mrb[32].mxu0 %v10282_v37  ;;  %1320 = vmatmul.mubr.bf16.vlgmr.msra.gmra.mrb[32].mxu1 %v10282_v37 }
 0x17c   :  { %1587 = vmatpush1.bf16.msra.mxu0 %v9815_v53  ;;  %1630 = vmatpush1.bf16.msra.mxu1 %v9816_v3  ;;  %v9830_v53 = vld [vmem:[#allocation7 + $0x8c] ss:$16 sps:$4 sm:$0xff]   ;;  %v9831_v3 = vld [vmem:[#allocation7 + $0x80] ss:$16 sps:$4 sm:$0xff]  }
 0x17d   :  { %1588 = vmatprep.subr.bf16.mxu0 %v9817_v48  ;;  %1631 = vmatprep.subr.bf16.mxu1 %v9818_v46  ;;  %v9832_v48 = vld [vmem:[#allocation7 + $0x88] ss:$16 sps:$4 sm:$0xff]   ;;  %v9833_v46 = vld [vmem:[#allocation7 + $0xa4] ss:$16 sps:$4 sm:$0xff]  }
 0x17e   :  { %1618 = vmatprep.mubr.bf16.mxu0 %v12029_v47  ;;  %1661 = vmatprep.mubr.bf16.mxu1 %v12029_v47 }
 0x180   :  { %1589 = vmatpush1.bf16.msra.mxu0 %v9819_v44  ;;  %1632 = vmatpush1.bf16.msra.mxu1 %v9820_v56  ;;  %v9834_v44 = vld [vmem:[#allocation7 + $0xac] ss:$16 sps:$4 sm:$0xff]   ;;  %v9835_v56 = vld [vmem:[#allocation7 + $0xa0] ss:$16 sps:$4 sm:$0xff]  }
 0x181   :  { %1590 = vmatprep.subr.bf16.mxu0 %v9821_v41  ;;  %1633 = vmatprep.subr.bf16.mxu1 %v9822_v49  ;;  %v9836_v41 = vld [vmem:[#allocation7 + $0xa8] ss:$16 sps:$4 sm:$0xff]   ;;  %v9837_v49 = vld [vmem:[#allocation7 + $0xc4] ss:$16 sps:$4 sm:$0xff]  }
 0x184   :  { %1591 = vmatpush1.bf16.msra.mxu0 %v9823_v40  ;;  %1634 = vmatpush1.bf16.msra.mxu1 %v9824_v39  ;;  %v9838_v40 = vld [vmem:[#allocation7 + $0xcc] ss:$16 sps:$4 sm:$0xff]   ;;  %v9839_v39 = vld [vmem:[#allocation7 + $0xc0] ss:$16 sps:$4 sm:$0xff]  }
 0x185   :  { %1592 = vmatprep.subr.bf16.mxu0 %v9825_v52  ;;  %1635 = vmatprep.subr.bf16.mxu1 %v9826_v38  ;;  %v9840_v52 = vld [vmem:[#allocation7 + $0xc8] ss:$16 sps:$4 sm:$0xff]   ;;  %v9841_v38 = vld [vmem:[#allocation7 + $0xe4] ss:$16 sps:$4 sm:$0xff]  }
 0x188   :  { %1593 = vmatpush1.bf16.msra.mxu0 %v9827_v50  ;;  %1636 = vmatpush1.bf16.msra.mxu1 %v9828_v4  ;;  %v9842_v50 = vld [vmem:[#allocation7 + $0xec] ss:$16 sps:$4 sm:$0xff]   ;;  %v9843_v4 = vld [vmem:[#allocation7 + $0xe0] ss:$16 sps:$4 sm:$0xff]  }
 0x189   :  { %1594 = vmatprep.subr.bf16.mxu0 %v9829_v42  ;;  %1637 = vmatprep.subr.bf16.mxu1 %v9830_v53  ;;  %v9844_v42 = vld [vmem:[#allocation7 + $0xe8] ss:$16 sps:$4 sm:$0xff]   ;;  %v9845_v53 = vld [vmem:[#allocation10 + $0x4] ss:$16 sps:$4 sm:$0xff]  }
 0x18c   :  { %1595 = vmatpush1.bf16.msra.mxu0 %v9831_v3  ;;  %1638 = vmatpush1.bf16.msra.mxu1 %v9832_v48  ;;  %v9846_v3 = vld [vmem:[#allocation10 + $0xc] ss:$16 sps:$4 sm:$0xff]  }
 0x18d   :  { %1596 = vmatprep.subr.bf16.mxu0 %v9833_v46  ;;  %1639 = vmatprep.subr.bf16.mxu1 %v9834_v44 }
 0x190   :  { %1597 = vmatpush1.bf16.msra.mxu0 %v9835_v56  ;;  %1640 = vmatpush1.bf16.msra.mxu1 %v9836_v41 }
 0x191   :  { %1598 = vmatprep.subr.bf16.mxu0 %v9837_v49  ;;  %1641 = vmatprep.subr.bf16.mxu1 %v9838_v40 }
 0x194   :  { %1599 = vmatpush1.bf16.msra.mxu0 %v9839_v39  ;;  %1642 = vmatpush1.bf16.msra.mxu1 %v9840_v52 }
 0x195   :  { %1600 = vmatprep.subr.bf16.mxu0 %v9841_v38  ;;  %1643 = vmatprep.subr.bf16.mxu1 %v9842_v50 }
 0x198   :  { %1601 = vmatpush1.bf16.msra.mxu0 %v9843_v4  ;;  %1644 = vmatpush1.bf16.msra.mxu1 %v9844_v42 }
 0x199   :  { %2141 = vmatprep.subr.bf16.mxu0 %v9845_v53  ;;  %2184 = vmatprep.subr.bf16.mxu1 %v9846_v3 }
 0x19b   :  { %1619 = vmatmul.mubr.bf16.vlgmr.msra.gmra.mrb[4].mxu0 %v10282_v37  ;;  %1662 = vmatmul.mubr.bf16.vlgmr.msra.gmra.mrb[4].mxu1 %v10282_v37 }
 0x19c   :  { %2142 = vmatpush1.bf16.msra.mxu0 %v10051_v57  ;;  %2185 = vmatpush1.bf16.msra.mxu1 %v10055_v59  ;;  %v12030_v57 = vld [vmem:[#allocation16_spill] sm:$0xff]  ;;  %v12032_v59 = vld [vmem:[#allocation18_spill] sm:$0xff] }
 0x19d   :  { %2143 = vmatprep.subr.bf16.mxu0 %v10053_v58  ;;  %2186 = vmatprep.subr.bf16.mxu1 %v10057_v60  ;;  %v12031_v58 = vld [vmem:[#allocation17_spill] sm:$0xff]  ;;  %v12033_v60 = vld [vmem:[#allocation19_spill] sm:$0xff] }
 0x1a0   :  { %2144 = vmatpush1.bf16.msra.mxu0 %v10059_v61  ;;  %2187 = vmatpush1.bf16.msra.mxu1 %v10065_v63  ;;  %v12034_v61 = vld [vmem:[#allocation20_spill] sm:$0xff]  ;;  %v12036_v63 = vld [vmem:[#allocation22_spill] sm:$0xff] }
 0x1a1   :  { %2145 = vmatprep.subr.bf16.mxu0 %v10062_v62  ;;  %2188 = vmatprep.subr.bf16.mxu1 %v10070_v0  ;;  %v12035_v62 = vld [vmem:[#allocation21_spill] sm:$0xff]  ;;  %v12037_v0 = vld [vmem:[#allocation23_spill] sm:$0xff] }
 0x1a4   :  { %2146 = vmatpush1.bf16.msra.mxu0 %v10073_v1  ;;  %2189 = vmatpush1.bf16.msra.mxu1 %v10080_v5  ;;  %v12038_v1 = vld [vmem:[#allocation24_spill] sm:$0xff]  ;;  %v12040_v5 = vld [vmem:[#allocation26_spill] sm:$0xff] }
 0x1a5   :  { %2147 = vmatprep.subr.bf16.mxu0 %v10077_v2  ;;  %2190 = vmatprep.subr.bf16.mxu1 %v10083_v6  ;;  %v12039_v2 = vld [vmem:[#allocation25_spill] sm:$0xff]  ;;  %v12041_v6 = vld [vmem:[#allocation27_spill] sm:$0xff] }
 0x1a8   :  { %2148 = vmatpush1.bf16.msra.mxu0 %v10086_v7  ;;  %2191 = vmatpush1.bf16.msra.mxu1 %v10090_v8  ;;  %v12042_v7 = vld [vmem:[#allocation28_spill] sm:$0xff]  ;;  %v12043_v8 = vld [vmem:[#allocation29_spill] sm:$0xff] }
 0x1a9   :  { %2149 = vmatprep.subr.bf16.mxu0 %v10097_v9  ;;  %2192 = vmatprep.subr.bf16.mxu1 %v10099_v10  ;;  %v12044_v9 = vld [vmem:[#allocation30_spill] sm:$0xff]  ;;  %v12045_v10 = vld [vmem:[#allocation31_spill] sm:$0xff] }
 0x1ac   :  { %2150 = vmatpush1.bf16.msra.mxu0 %v10101_v11  ;;  %2193 = vmatpush1.bf16.msra.mxu1 %v10103_v12  ;;  %v12046_v11 = vld [vmem:[#allocation32_spill] sm:$0xff]  ;;  %v12047_v12 = vld [vmem:[#allocation33_spill] sm:$0xff] }
 0x1ad   :  { %2151 = vmatprep.subr.bf16.mxu0 %v10109_v13  ;;  %2194 = vmatprep.subr.bf16.mxu1 %v10111_v14  ;;  %v12048_v13 = vld [vmem:[#allocation34_spill] sm:$0xff]  ;;  %v12049_v14 = vld [vmem:[#allocation35_spill] sm:$0xff] }
 0x1b0   :  { %2152 = vmatpush1.bf16.msra.mxu0 %v10113_v15  ;;  %2195 = vmatpush1.bf16.msra.mxu1 %v10115_v16  ;;  %v10352_v15 = vld [vmem:[#allocation7 + $0x4] ss:$16 sps:$4 sm:$0xff]   ;;  %v10354_v16 = vld [vmem:[#allocation7 + $0xc] ss:$16 sps:$4 sm:$0xff]  }
 0x1b1   :  { %2153 = vmatprep.subr.bf16.mxu0 %v10121_v17  ;;  %2196 = vmatprep.subr.bf16.mxu1 %v10123_v18  ;;  %v902_v17 = vld [vmem:[%s11769_s5] sm:$0xf]  ;;  %v12050_v18 = vld [vmem:[#allocation36_spill] sm:$0xff] }
 0x1b2   :  { %v919_v44 = vrot.slane %v902_v17, %v10265_v51 }
 0x1b4   :  { %2154 = vmatpush1.bf16.msra.mxu0 %v10125_v19  ;;  %2197 = vmatpush1.bf16.msra.mxu1 %v10127_v20  ;;  %v907_v19 = vrot.slane %v902_v17, %v12050_v18  ;;  %v12051_v20 = vld [vmem:[#allocation37_spill] sm:$0xff] }
 0x1b5   :  { %2155 = vmatprep.subr.bf16.mxu0 %v10133_v21  ;;  %2198 = vmatprep.subr.bf16.mxu1 %v10135_v22  ;;  %v911_v21 = vrot.slane %v902_v17, %v12051_v20 }
 0x1b8   :  { %2156 = vmatpush1.bf16.msra.mxu0 %v10137_v23  ;;  %2199 = vmatpush1.bf16.msra.mxu1 %v10139_v24 }
 0x1b9   :  { %2157 = vmatprep.subr.bf16.mxu0 %v10145_v25  ;;  %2200 = vmatprep.subr.bf16.mxu1 %v10147_v26 }
 0x1bc   :  { %2158 = vmatpush1.bf16.msra.mxu0 %v10149_v27  ;;  %2201 = vmatpush1.bf16.msra.mxu1 %v10151_v28 }
 0x1bd   :  { %2159 = vmatprep.subr.bf16.mxu0 %v10157_v29  ;;  %2202 = vmatprep.subr.bf16.mxu1 %v10159_v30 }
 0x1c0   :  { %2160 = vmatpush1.bf16.msra.mxu0 %v10161_v31  ;;  %2203 = vmatpush1.bf16.msra.mxu1 %v10163_v32 }
 0x1c1   :  { %2161 = vmatprep.subr.bf16.mxu0 %v10169_v33  ;;  %2204 = vmatprep.subr.bf16.mxu1 %v10171_v34  ;;  %v12052_v34 = vld [vmem:[#allocation38_spill] sm:$0xff] }
 0x1c4   :  { %2162 = vmatpush1.bf16.msra.mxu0 %v10173_v35  ;;  %2205 = vmatpush1.bf16.msra.mxu1 %v10175_v36  ;;  %v915_v35 = vrot.slane %v902_v17, %v12052_v34 }
 0x1c5   :  { %2163 = vmatprep.subr.bf16.mxu0 %v12030_v57  ;;  %2206 = vmatprep.subr.bf16.mxu1 %v12031_v58 }
 0x1c8   :  { %2164 = vmatpush1.bf16.msra.mxu0 %v12032_v59  ;;  %2207 = vmatpush1.bf16.msra.mxu1 %v12033_v60 }
 0x1c9   :  { %2165 = vmatprep.subr.bf16.mxu0 %v12034_v61  ;;  %2208 = vmatprep.subr.bf16.mxu1 %v12035_v62 }
 0x1cc   :  { %2166 = vmatpush1.bf16.msra.mxu0 %v12036_v63  ;;  %2209 = vmatpush1.bf16.msra.mxu1 %v12037_v0 }
 0x1cd   :  { %2167 = vmatprep.subr.bf16.mxu0 %v12038_v1  ;;  %2210 = vmatprep.subr.bf16.mxu1 %v12039_v2 }
 0x1d0   :  { %2168 = vmatpush1.bf16.msra.mxu0 %v12040_v5  ;;  %2211 = vmatpush1.bf16.msra.mxu1 %v12041_v6 }
 0x1d1   :  { %2169 = vmatprep.subr.bf16.mxu0 %v12042_v7  ;;  %2212 = vmatprep.subr.bf16.mxu1 %v12043_v8 }
 0x1d4   :  { %2170 = vmatpush1.bf16.msra.mxu0 %v12044_v9  ;;  %2213 = vmatpush1.bf16.msra.mxu1 %v12045_v10 }
 0x1d5   :  { %2171 = vmatprep.subr.bf16.mxu0 %v12046_v11  ;;  %2214 = vmatprep.subr.bf16.mxu1 %v12047_v12 }
 0x1d8   :  { %2172 = vmatpush1.bf16.msra.mxu0 %v12048_v13  ;;  %2215 = vmatpush1.bf16.msra.mxu1 %v12049_v14 }
 0x1d9   :  { %2483 = vmatprep.subr.bf16.mxu0 %v10352_v15  ;;  %2526 = vmatprep.subr.bf16.mxu1 %v10354_v16 }
 0x24e   :  { %v1278_v22 = vpop.f32.mrb[32].mxu0  ;;  %v1321_v23 = vpop.f32.mrb[32].mxu1 }
 0x24f   :  { %v1279_v24 = vadd.f32 %v1278_v22, %v907_v19  ;;  %v1280_v25 = vpop.f32.mrb[33].mxu0  ;;  %v1323_v26 = vpop.f32.mrb[33].mxu1  ;;  %v1322_v56 = vadd.f32 %v1321_v23, %v915_v35 }
 0x250   :  { %v1281_v27 = vadd.f32 %v1280_v25, %v911_v21  ;;  %v1282_v28 = vpop.f32.mrb[34].mxu0  ;;  %v1325_v29 = vpop.f32.mrb[34].mxu1  ;;  %v1324_v49 = vadd.f32 %v1323_v26, %v919_v44 }
 0x251   :  { %v7817_v30 = vmul.f32 -1.442695, %v1279_v24  ;;  %v1283_v31 = vadd.f32 %v1282_v28, %v907_v19  ;;  %v1284_v32 = vpop.f32.mrb[35].mxu0  ;;  %v1327_v33 = vpop.f32.mrb[35].mxu1  ;;  %v1326_v41 = vadd.f32 %v1325_v29, %v915_v35  ;;  %v7819_v40 = vmul.f32 -1.442695, %v1322_v56 }
 0x252   :  { %v7818_v36 = vmul.f32 -1.442695, %v1281_v27  ;;  %v1285_v37 = vadd.f32 %v1284_v32, %v911_v21  ;;  %v1328_v38 = vadd.f32 %v1327_v33, %v919_v44  ;;  %v12053_v33 = vld [vmem:[#allocation39_spill] sm:$0xff] }
 0x253   :  { %9333 = vpow2.f32 %v7817_v30  ;;  %v7820_v48 = vmul.f32 -1.442695, %v1283_v31  ;;  %v7822_v39 = vmul.f32 -1.442695, %v1326_v41 }
 0x254   :  { %v7821_v46 = vmul.f32 -1.442695, %v1285_v37  ;;  %9335 = vpow2.f32 %v7818_v36 }
 0x255   :  { %9337 = vpow2.f32 %v7820_v48  ;;  %v12054_v48 = vld [vmem:[#allocation40_spill] sm:$0xff] }
 0x256   :  { %9339 = vpow2.f32 %v7821_v46 }
 0x257   :  { %9341 = vtanh.f32 %v1324_v49 }
 0x258   :  { %9343 = vpow2.f32 %v7819_v40 }
 0x259   :  { %9345 = vpow2.f32 %v7822_v39 }
 0x25d   :  { %v9334_v52 = vpop.eup %9333 }
 0x25e   :  { %v1348_v50 = vadd.f32 1.0, %v9334_v52  ;;  %v9336_v4 = vpop.eup %9335 }
 0x25f   :  { %v9338_v42 = vpop.eup %9337  ;;  %v1349_v53 = vadd.f32 1.0, %v9336_v4 }
 0x260   :  { %9347 = vrcp.f32 %v1348_v50  ;;  %v1351_v3 = vadd.f32 1.0, %v9338_v42  ;;  %v9340_v57 = vpop.eup %9339 }
 0x261   :  { %9349 = vtanh.f32 %v1328_v38  ;;  %v1352_v58 = vadd.f32 1.0, %v9340_v57  ;;  %v9342_v59 = vpop.eup %9341 }
 0x262   :  { %9351 = vrcp.f32 %v1349_v53  ;;  %v9344_v60 = vpop.eup %9343 }
 0x263   :  { %9353 = vrcp.f32 %v1351_v3  ;;  %v9346_v61 = vpop.eup %9345  ;;  %v1350_v2 = vadd.f32 1.0, %v9344_v60 }
 0x264   :  { %9355 = vrcp.f32 %v1352_v58  ;;  %v1353_v7 = vadd.f32 1.0, %v9346_v61 }
 0x265   :  { %9357 = vrcp.f32 %v1350_v2 }
 0x266   :  { %9359 = vrcp.f32 %v1353_v7 }
 0x26a   :  { %v9348_v62 = vpop.eup %9347 }
 0x26b   :  { %v9350_v63 = vpop.eup %9349  ;;  %v1372_v0 = vmul.f32 %v9348_v62, %v9342_v59 }
 0x26c   :  { %v9352_v1 = vpop.eup %9351 }
 0x26d   :  { %v9354_v5 = vpop.eup %9353  ;;  %v1370_v6 = vmul.f32 0.0, %v9352_v1 }
 0x26e   :  { %v1373_v8 = vmul.f32 %v9354_v5, %v9350_v63  ;;  %v1620_v9 = vpop.f32.mrb[4].mxu0  ;;  %v1663_v10 = vpop.f32.mrb[4].mxu1 }
 0x26f   :  { %v9356_v11 = vpop.eup %9355  ;;  %v10365_v12 = vadd.f32 %v1372_v0, %v1370_v6  ;;  %v8583_v13 = vadd.f32 %v1620_v9, %v10251_v54  ;;  %v1622_v14 = vpop.f32.mrb[5].mxu0  ;;  %v8615_v35 = vadd.f32 %v1663_v10, %v12053_v33 }
 0x270   :  { %v1665_v17 = vpop.f32.mrb[5].mxu1  ;;  %v1371_v19 = vmul.f32 0.0, %v9356_v11  ;;  %v8584_v21 = vadd.f32 %v1622_v14, %v10254_v55  ;;  %v1624_v22 = vpop.f32.mrb[6].mxu0 }
 0x271   :  { %v1667_v23 = vpop.f32.mrb[6].mxu1  ;;  %v7855_v24 = vmul.f32 -1.442695, %v8583_v13  ;;  %v8585_v25 = vadd.f32 %v1624_v22, %v10251_v54  ;;  %v1626_v26 = vpop.f32.mrb[7].mxu0  ;;  %9361 = vtanh.f32 %v10365_v12  ;;  %v8616_v46 = vadd.f32 %v1665_v17, %v12054_v48 }
 0x272   :  { %v1669_v27 = vpop.f32.mrb[7].mxu1  ;;  %v10371_v28 = vadd.f32 %v1373_v8, %v1371_v19  ;;  %v7856_v29 = vmul.f32 -1.442695, %v8584_v21  ;;  %v8586_v31 = vadd.f32 %v1626_v26, %v10254_v55  ;;  %v8617_v36 = vadd.f32 %v1667_v23, %v12053_v33  ;;  %v9358_v37 = vpop.eup %9357  ;;  %v10389_v26 = vld [vmem:[#allocation7 + $0x8] ss:$16 sps:$4 sm:$0xff]  }
 0x273   :  { %9363 = vpow2.f32 %v7855_v24  ;;  %v7858_v30 = vmul.f32 -1.442695, %v8585_v25  ;;  %v9360_v44 = vpop.eup %9359  ;;  %v7857_v56 = vmul.f32 -1.442695, %v8615_v35  ;;  %v8618_v38 = vadd.f32 %v1669_v27, %v12054_v48  ;;  %v10387_v25 = vld [vmem:[#allocation7] ss:$16 sps:$4 sm:$0xff]  }
 0x274   :  { %9365 = vtanh.f32 %v10371_v28  ;;  %v7859_v32 = vmul.f32 -1.442695, %v8586_v31  ;;  %v7860_v40 = vmul.f32 -1.442695, %v8617_v36  ;;  %v10403_v31 = vld [vmem:[#allocation7 + $0x28] ss:$16 sps:$4 sm:$0xff]  }
 0x275   :  { %9367 = vpow2.f32 %v7856_v29  ;;  %v10395_v29 = vld [vmem:[#allocation7 + $0x2c] ss:$16 sps:$4 sm:$0xff]   ;;  %v10415_v36 = vld [vmem:[#allocation7 + $0x40] ss:$16 sps:$4 sm:$0xff]  }
 0x276   :  { %9369 = vpow2.f32 %v7858_v30  ;;  %v10401_v30 = vld [vmem:[#allocation7 + $0x20] ss:$16 sps:$4 sm:$0xff]   ;;  %v10409_v35 = vld [vmem:[#allocation7 + $0x4c] ss:$16 sps:$4 sm:$0xff]  }
 0x277   :  { %9371 = vpow2.f32 %v7859_v32  ;;  %v10407_v32 = vld [vmem:[#allocation7 + $0x44] ss:$16 sps:$4 sm:$0xff]  }
 0x278   :  { %9373 = vtanh.f32 %v8616_v46  ;;  %v10421_v46 = vld [vmem:[#allocation7 + $0x64] ss:$16 sps:$4 sm:$0xff]  }
 0x279   :  { %9375 = vpow2.f32 %v7857_v56  ;;  %v10427_v56 = vld [vmem:[#allocation7 + $0x60] ss:$16 sps:$4 sm:$0xff]  }
 0x27b   :  { %v9362_v41 = vpop.eup %9361 }
 0x27c   :  { %v1378_v50 = vmul.f32 %v9362_v41, %v9358_v37  ;;  %v10417_v37 = vld [vmem:[#allocation7 + $0x48] ss:$16 sps:$4 sm:$0xff]  }
 0x27d   :  { %v9364_v49 = vpop.eup %9363  ;;  %v10429_v41 = vld [vmem:[#allocation7 + $0x68] ss:$16 sps:$4 sm:$0xff]  }
 0x27e   :  { %v9366_v39 = vpop.eup %9365  ;;  %v1698_v52 = vadd.f32 1.0, %v9364_v49  ;;  %v10433_v49 = vld [vmem:[#allocation7 + $0x84] ss:$16 sps:$4 sm:$0xff]  }
 0x27f   :  { %v1379_v4 = vmul.f32 %v9366_v39, %v9360_v44  ;;  %v9368_v42 = vpop.eup %9367  ;;  %v10423_v44 = vld [vmem:[#allocation7 + $0x6c] ss:$16 sps:$4 sm:$0xff]   ;;  %v10439_v39 = vld [vmem:[#allocation7 + $0x80] ss:$16 sps:$4 sm:$0xff]  }
 0x280   :  { %9377 = vrcp.f32 %v1698_v52  ;;  %v9370_v53 = vpop.eup %9369  ;;  %v1699_v3 = vadd.f32 1.0, %v9368_v42  ;;  %v10441_v52 = vld [vmem:[#allocation7 + $0x88] ss:$16 sps:$4 sm:$0xff]  }
 0x281   :  { %9379 = vpow2.f32 %v7860_v40  ;;  %v1380_v57 = vpack.c.bf16 %v1379_v4, %v1378_v50  ;;  %v1701_v58 = vadd.f32 1.0, %v9370_v53  ;;  %v9372_v59 = vpop.eup %9371  ;;  %v10435_v40 = vld [vmem:[#allocation7 + $0x8c] ss:$16 sps:$4 sm:$0xff]   ;;  %v10451_v4 = vld [vmem:[#allocation7 + $0xa0] ss:$16 sps:$4 sm:$0xff]  }
 0x282   :  { %9381 = vtanh.f32 %v8618_v38  ;;  %v1702_v60 = vadd.f32 1.0, %v9372_v59  ;;  %v9374_v61 = vpop.eup %9373  ;;  %v10445_v38 = vld [vmem:[#allocation7 + $0xa4] ss:$16 sps:$4 sm:$0xff]   ;;  %v10447_v50 = vld [vmem:[#allocation7 + $0xac] ss:$16 sps:$4 sm:$0xff]  }
 0x283   :  { %9383 = vrcp.f32 %v1699_v3  ;;  %2173 = vmatprep.mubr.bf16.mxu0 %v1380_v57  ;;  %2216 = vmatprep.mubr.bf16.mxu1 %v1380_v57  ;;  %v9376_v62 = vpop.eup %9375  ;;  %v10453_v42 = vld [vmem:[#allocation7 + $0xa8] ss:$16 sps:$4 sm:$0xff]   ;;  %v10457_v53 = vld [vmem:[#allocation7 + $0xc4] ss:$16 sps:$4 sm:$0xff]   ;;  %v10459_v3 = vld [vmem:[#allocation7 + $0xcc] ss:$16 sps:$4 sm:$0xff]  }
 0x284   :  { %9385 = vrcp.f32 %v1701_v58  ;;  %v1700_v7 = vadd.f32 1.0, %v9376_v62  ;;  %v10463_v57 = vld [vmem:[#allocation7 + $0xc0] ss:$16 sps:$4 sm:$0xff]   ;;  %v10465_v58 = vld [vmem:[#allocation7 + $0xc8] ss:$16 sps:$4 sm:$0xff]  }
 0x285   :  { %9387 = vrcp.f32 %v1702_v60  ;;  %v10469_v59 = vld [vmem:[#allocation7 + $0xe4] ss:$16 sps:$4 sm:$0xff]   ;;  %v10471_v60 = vld [vmem:[#allocation7 + $0xec] ss:$16 sps:$4 sm:$0xff]   ;;  %v10477_v62 = vld [vmem:[#allocation7 + $0xe8] ss:$16 sps:$4 sm:$0xff]  }
 0x286   :  { %9389 = vrcp.f32 %v1700_v7  ;;  %12055 = vst [vmem:[#allocation16_spill] sm:$0xff] %v10477_v62  ;;  %v10501_v7 = vld [vmem:[#allocation10 + $0x20] ss:$16 sps:$4 sm:$0xff]  }
 0x287   :  { %12062 = vst [vmem:[#allocation23_spill] sm:$0xff] %v10501_v7 }
 0x28a   :  { %v9378_v63 = vpop.eup %9377 }
 0x28b   :  { %v9380_v0 = vpop.eup %9379  ;;  %v1722_v1 = vmul.f32 %v9378_v63, %v9374_v61  ;;  %v10475_v61 = vld [vmem:[#allocation7 + $0xe0] ss:$16 sps:$4 sm:$0xff]   ;;  %v10485_v63 = vld [vmem:[#allocation10 + $0x4] ss:$16 sps:$4 sm:$0xff]  }
 0x28c   :  { %v9382_v2 = vpop.eup %9381  ;;  %v1703_v13 = vadd.f32 1.0, %v9380_v0  ;;  %12056 = vst [vmem:[#allocation17_spill] sm:$0xff] %v10485_v63  ;;  %v10487_v0 = vld [vmem:[#allocation10 + $0xc] ss:$16 sps:$4 sm:$0xff]  }
 0x28d   :  { %v9384_v5 = vpop.eup %9383  ;;  %12057 = vst [vmem:[#allocation18_spill] sm:$0xff] %v10487_v0 }
 0x28e   :  { %v9386_v6 = vpop.eup %9385  ;;  %v1720_v8 = vmul.f32 %v9384_v5, %v10276_v43  ;;  %v10497_v5 = vld [vmem:[#allocation10 + $0x24] ss:$16 sps:$4 sm:$0xff]  }
 0x28f   :  { %v1723_v9 = vmul.f32 %v9386_v6, %v9382_v2  ;;  %v9388_v10 = vpop.eup %9387  ;;  %v10491_v2 = vld [vmem:[#allocation10 + $0x8] ss:$16 sps:$4 sm:$0xff]   ;;  %12060 = vst [vmem:[#allocation21_spill] sm:$0xff] %v10497_v5  ;;  %v10499_v6 = vld [vmem:[#allocation10 + $0x2c] ss:$16 sps:$4 sm:$0xff]  }
 0x290   :  { %v10380_v11 = vadd.f32 %v1722_v1, %v1720_v8  ;;  %v1721_v14 = vmul.f32 %v9388_v10, %v10279_v45  ;;  %v9390_v19 = vpop.eup %9389  ;;  %v10393_v45 = vld [vmem:[#allocation7 + $0x24] ss:$16 sps:$4 sm:$0xff]   ;;  %v10489_v1 = vld [vmem:[#allocation10] ss:$16 sps:$4 sm:$0xff]   ;;  %12059 = vst [vmem:[#allocation20_spill] sm:$0xff] %v10491_v2  ;;  %12061 = vst [vmem:[#allocation22_spill] sm:$0xff] %v10499_v6 }
 0x291   :  { %12058 = vst [vmem:[#allocation19_spill] sm:$0xff] %v10489_v1  ;;  %v10503_v8 = vld [vmem:[#allocation10 + $0x28] ss:$16 sps:$4 sm:$0xff]   ;;  %v10511_v10 = vld [vmem:[#allocation10 + $0x4c] ss:$16 sps:$4 sm:$0xff]  }
 0x292   :  { %9391 = vtanh.f32 %v10380_v11  ;;  %v10384_v17 = vadd.f32 %v1723_v9, %v1721_v14  ;;  %12063 = vst [vmem:[#allocation24_spill] sm:$0xff] %v10503_v8  ;;  %v10509_v9 = vld [vmem:[#allocation10 + $0x44] ss:$16 sps:$4 sm:$0xff]   ;;  %12065 = vst [vmem:[#allocation26_spill] sm:$0xff] %v10511_v10  ;;  %v10515_v14 = vld [vmem:[#allocation10 + $0x48] ss:$16 sps:$4 sm:$0xff]  }
 0x293   :  { %9393 = vrcp.f32 %v1703_v13  ;;  %12064 = vst [vmem:[#allocation25_spill] sm:$0xff] %v10509_v9  ;;  %v10513_v13 = vld [vmem:[#allocation10 + $0x40] ss:$16 sps:$4 sm:$0xff]   ;;  %12067 = vst [vmem:[#allocation28_spill] sm:$0xff] %v10515_v14 }
 0x294   :  { %9395 = vtanh.f32 %v10384_v17  ;;  %12066 = vst [vmem:[#allocation27_spill] sm:$0xff] %v10513_v13 }
 0x29c   :  { %v9392_v21 = vpop.eup %9391 }
 0x29d   :  { %v9394_v22 = vpop.eup %9393  ;;  %v1728_v43 = vmul.f32 %v9392_v21, %v9390_v19  ;;  %v10521_v19 = vld [vmem:[#allocation10 + $0x64] ss:$16 sps:$4 sm:$0xff]   ;;  %v10523_v21 = vld [vmem:[#allocation10 + $0x6c] ss:$16 sps:$4 sm:$0xff]  }
 0x29e   :  { %v9396_v23 = vpop.eup %9395  ;;  %12068 = vst [vmem:[#allocation29_spill] sm:$0xff] %v10521_v19  ;;  %12069 = vst [vmem:[#allocation30_spill] sm:$0xff] %v10523_v21 }
 0x29f   :  { %v1729_v24 = vmul.f32 %v9396_v23, %v9394_v22  ;;  %v10525_v22 = vld [vmem:[#allocation10 + $0x60] ss:$16 sps:$4 sm:$0xff]   ;;  %v10527_v23 = vld [vmem:[#allocation10 + $0x68] ss:$16 sps:$4 sm:$0xff]  }
 0x2a0   :  { %12070 = vst [vmem:[#allocation31_spill] sm:$0xff] %v10525_v22  ;;  %12071 = vst [vmem:[#allocation32_spill] sm:$0xff] %v10527_v23 }
 0x2a1   :  { %v10391_v27 = vpack.c.bf16 %v1729_v24, %v1728_v43  ;;  %v10533_v43 = vld [vmem:[#allocation10 + $0x84] ss:$16 sps:$4 sm:$0xff]   ;;  %v10535_v24 = vld [vmem:[#allocation10 + $0x8c] ss:$16 sps:$4 sm:$0xff]  }
 0x2a2   :  { %12072 = vst [vmem:[#allocation33_spill] sm:$0xff] %v10533_v43  ;;  %12073 = vst [vmem:[#allocation34_spill] sm:$0xff] %v10535_v24 }
 0x2a3   :  { %2174 = vmatmul.mubr.bf16.vlgmr.msra.gmra.mrb[36].mxu0 %v10391_v27  ;;  %2217 = vmatmul.mubr.bf16.vlgmr.msra.gmra.mrb[36].mxu1 %v10391_v27 }
 0x2a4   :  { %2484 = vmatpush1.bf16.msra.mxu0 %v10387_v25  ;;  %2527 = vmatpush1.bf16.msra.mxu1 %v10389_v26 }
 0x2a5   :  { %2485 = vmatprep.subr.bf16.mxu0 %v10393_v45  ;;  %2528 = vmatprep.subr.bf16.mxu1 %v10395_v29 }
 0x2a6   :  { %2515 = vmatprep.mubr.bf16.mxu0 %v12029_v47  ;;  %2558 = vmatprep.mubr.bf16.mxu1 %v12029_v47 }
 0x2a8   :  { %2486 = vmatpush1.bf16.msra.mxu0 %v10401_v30  ;;  %2529 = vmatpush1.bf16.msra.mxu1 %v10403_v31 }
 0x2a9   :  { %2487 = vmatprep.subr.bf16.mxu0 %v10407_v32  ;;  %2530 = vmatprep.subr.bf16.mxu1 %v10409_v35 }
 0x2ac   :  { %2488 = vmatpush1.bf16.msra.mxu0 %v10415_v36  ;;  %2531 = vmatpush1.bf16.msra.mxu1 %v10417_v37 }
 0x2ad   :  { %2489 = vmatprep.subr.bf16.mxu0 %v10421_v46  ;;  %2532 = vmatprep.subr.bf16.mxu1 %v10423_v44 }
 0x2b0   :  { %2490 = vmatpush1.bf16.msra.mxu0 %v10427_v56  ;;  %2533 = vmatpush1.bf16.msra.mxu1 %v10429_v41 }
 0x2b1   :  { %2491 = vmatprep.subr.bf16.mxu0 %v10433_v49  ;;  %2534 = vmatprep.subr.bf16.mxu1 %v10435_v40 }
 0x2b4   :  { %2492 = vmatpush1.bf16.msra.mxu0 %v10439_v39  ;;  %2535 = vmatpush1.bf16.msra.mxu1 %v10441_v52 }
 0x2b5   :  { %2493 = vmatprep.subr.bf16.mxu0 %v10445_v38  ;;  %2536 = vmatprep.subr.bf16.mxu1 %v10447_v50 }
 0x2b8   :  { %2494 = vmatpush1.bf16.msra.mxu0 %v10451_v4  ;;  %2537 = vmatpush1.bf16.msra.mxu1 %v10453_v42 }
 0x2b9   :  { %2495 = vmatprep.subr.bf16.mxu0 %v10457_v53  ;;  %2538 = vmatprep.subr.bf16.mxu1 %v10459_v3 }
 0x2bc   :  { %2496 = vmatpush1.bf16.msra.mxu0 %v10463_v57  ;;  %2539 = vmatpush1.bf16.msra.mxu1 %v10465_v58 }
 0x2bd   :  { %2497 = vmatprep.subr.bf16.mxu0 %v10469_v59  ;;  %2540 = vmatprep.subr.bf16.mxu1 %v10471_v60 }
 0x2c0   :  { %2498 = vmatpush1.bf16.msra.mxu0 %v10475_v61  ;;  %2541 = vmatpush1.bf16.msra.mxu1 %v10477_v62 }
 0x2c1   :  { %3038 = vmatprep.subr.bf16.mxu0 %v10485_v63  ;;  %3081 = vmatprep.subr.bf16.mxu1 %v10487_v0 }
 0x2c3   :  { %2516 = vmatmul.mubr.bf16.vlgmr.msra.gmra.mrb[8].mxu0 %v10391_v27  ;;  %2559 = vmatmul.mubr.bf16.vlgmr.msra.gmra.mrb[8].mxu1 %v10391_v27  ;;  %v10537_v27 = vld [vmem:[#allocation10 + $0x80] ss:$16 sps:$4 sm:$0xff]  }
 0x2c4   :  { %3039 = vmatpush1.bf16.msra.mxu0 %v10489_v1  ;;  %3082 = vmatpush1.bf16.msra.mxu1 %v10491_v2  ;;  %12074 = vst [vmem:[#allocation35_spill] sm:$0xff] %v10537_v27 }
 0x2c5   :  { %3040 = vmatprep.subr.bf16.mxu0 %v10497_v5  ;;  %3083 = vmatprep.subr.bf16.mxu1 %v10499_v6 }
 0x2c8   :  { %3041 = vmatpush1.bf16.msra.mxu0 %v10501_v7  ;;  %3084 = vmatpush1.bf16.msra.mxu1 %v10503_v8 }
 0x2c9   :  { %3042 = vmatprep.subr.bf16.mxu0 %v10509_v9  ;;  %3085 = vmatprep.subr.bf16.mxu1 %v10511_v10 }
 0x2cc   :  { %3043 = vmatpush1.bf16.msra.mxu0 %v10513_v13  ;;  %3086 = vmatpush1.bf16.msra.mxu1 %v10515_v14  ;;  %v10539_v14 = vld [vmem:[#allocation10 + $0x88] ss:$16 sps:$4 sm:$0xff]   ;;  %v10639_v13 = vld [vmem:[#allocation10 + $0x1a4] ss:$16 sps:$4 sm:$0xff]  }
 0x2cd   :  { %3044 = vmatprep.subr.bf16.mxu0 %v10521_v19  ;;  %3087 = vmatprep.subr.bf16.mxu1 %v10523_v21  ;;  %12075 = vst [vmem:[#allocation38_spill] sm:$0xff] %v10539_v14  ;;  %v10545_v21 = vld [vmem:[#allocation10 + $0xa4] ss:$16 sps:$4 sm:$0xff]   ;;  %v10551_v19 = vld [vmem:[#allocation10 + $0xa8] ss:$16 sps:$4 sm:$0xff]   ;;  %12108 = vst [vmem:[#allocation71_spill] sm:$0xff] %v10639_v13 }
 0x2ce   :  { %12076 = vst [vmem:[#allocation39_spill] sm:$0xff] %v10545_v21  ;;  %12079 = vst [vmem:[#allocation42_spill] sm:$0xff] %v10551_v19 }
 0x2d0   :  { %3045 = vmatpush1.bf16.msra.mxu0 %v10525_v22  ;;  %3088 = vmatpush1.bf16.msra.mxu1 %v10527_v23  ;;  %v10547_v22 = vld [vmem:[#allocation10 + $0xac] ss:$16 sps:$4 sm:$0xff]   ;;  %v10549_v23 = vld [vmem:[#allocation10 + $0xa0] ss:$16 sps:$4 sm:$0xff]  }
 0x2d1   :  { %3046 = vmatprep.subr.bf16.mxu0 %v10533_v43  ;;  %3089 = vmatprep.subr.bf16.mxu1 %v10535_v24  ;;  %12077 = vst [vmem:[#allocation40_spill] sm:$0xff] %v10547_v22  ;;  %12078 = vst [vmem:[#allocation41_spill] sm:$0xff] %v10549_v23  ;;  %v10557_v24 = vld [vmem:[#allocation10 + $0xc4] ss:$16 sps:$4 sm:$0xff]   ;;  %v10563_v43 = vld [vmem:[#allocation10 + $0xc8] ss:$16 sps:$4 sm:$0xff]  }
 0x2d2   :  { %12080 = vst [vmem:[#allocation43_spill] sm:$0xff] %v10557_v24  ;;  %12083 = vst [vmem:[#allocation46_spill] sm:$0xff] %v10563_v43 }
 0x2d4   :  { %3047 = vmatpush1.bf16.msra.mxu0 %v10537_v27  ;;  %3090 = vmatpush1.bf16.msra.mxu1 %v10539_v14  ;;  %v10559_v27 = vld [vmem:[#allocation10 + $0xcc] ss:$16 sps:$4 sm:$0xff]   ;;  %v10561_v14 = vld [vmem:[#allocation10 + $0xc0] ss:$16 sps:$4 sm:$0xff]  }
 0x2d5   :  { %3048 = vmatprep.subr.bf16.mxu0 %v10545_v21  ;;  %3091 = vmatprep.subr.bf16.mxu1 %v10547_v22  ;;  %12081 = vst [vmem:[#allocation44_spill] sm:$0xff] %v10559_v27  ;;  %12082 = vst [vmem:[#allocation45_spill] sm:$0xff] %v10561_v14  ;;  %v10569_v22 = vld [vmem:[#allocation10 + $0xe4] ss:$16 sps:$4 sm:$0xff]   ;;  %v10575_v21 = vld [vmem:[#allocation10 + $0xe8] ss:$16 sps:$4 sm:$0xff]  }
 0x2d6   :  { %12084 = vst [vmem:[#allocation47_spill] sm:$0xff] %v10569_v22  ;;  %12087 = vst [vmem:[#allocation50_spill] sm:$0xff] %v10575_v21 }
 0x2d8   :  { %3049 = vmatpush1.bf16.msra.mxu0 %v10549_v23  ;;  %3092 = vmatpush1.bf16.msra.mxu1 %v10551_v19  ;;  %v10571_v23 = vld [vmem:[#allocation10 + $0xec] ss:$16 sps:$4 sm:$0xff]   ;;  %v10573_v19 = vld [vmem:[#allocation10 + $0xe0] ss:$16 sps:$4 sm:$0xff]  }
 0x2d9   :  { %3050 = vmatprep.subr.bf16.mxu0 %v10557_v24  ;;  %3093 = vmatprep.subr.bf16.mxu1 %v10559_v27  ;;  %12085 = vst [vmem:[#allocation48_spill] sm:$0xff] %v10571_v23  ;;  %12086 = vst [vmem:[#allocation49_spill] sm:$0xff] %v10573_v19  ;;  %v10581_v27 = vld [vmem:[#allocation10 + $0x104] ss:$16 sps:$4 sm:$0xff]   ;;  %v10587_v24 = vld [vmem:[#allocation10 + $0x108] ss:$16 sps:$4 sm:$0xff]  }
 0x2da   :  { %12088 = vst [vmem:[#allocation51_spill] sm:$0xff] %v10581_v27  ;;  %12091 = vst [vmem:[#allocation54_spill] sm:$0xff] %v10587_v24 }
 0x2dc   :  { %3051 = vmatpush1.bf16.msra.mxu0 %v10561_v14  ;;  %3094 = vmatpush1.bf16.msra.mxu1 %v10563_v43  ;;  %v10583_v14 = vld [vmem:[#allocation10 + $0x10c] ss:$16 sps:$4 sm:$0xff]   ;;  %v10585_v43 = vld [vmem:[#allocation10 + $0x100] ss:$16 sps:$4 sm:$0xff]  }
 0x2dd   :  { %3052 = vmatprep.subr.bf16.mxu0 %v10569_v22  ;;  %3095 = vmatprep.subr.bf16.mxu1 %v10571_v23  ;;  %12089 = vst [vmem:[#allocation52_spill] sm:$0xff] %v10583_v14  ;;  %12090 = vst [vmem:[#allocation53_spill] sm:$0xff] %v10585_v43  ;;  %v10593_v23 = vld [vmem:[#allocation10 + $0x124] ss:$16 sps:$4 sm:$0xff]   ;;  %v10599_v22 = vld [vmem:[#allocation10 + $0x128] ss:$16 sps:$4 sm:$0xff]  }
 0x2de   :  { %12092 = vst [vmem:[#allocation55_spill] sm:$0xff] %v10593_v23  ;;  %12095 = vst [vmem:[#allocation58_spill] sm:$0xff] %v10599_v22 }
 0x2e0   :  { %3053 = vmatpush1.bf16.msra.mxu0 %v10573_v19  ;;  %3096 = vmatpush1.bf16.msra.mxu1 %v10575_v21  ;;  %v10595_v19 = vld [vmem:[#allocation10 + $0x12c] ss:$16 sps:$4 sm:$0xff]   ;;  %v10597_v21 = vld [vmem:[#allocation10 + $0x120] ss:$16 sps:$4 sm:$0xff]  }
 0x2e1   :  { %3054 = vmatprep.subr.bf16.mxu0 %v10581_v27  ;;  %3097 = vmatprep.subr.bf16.mxu1 %v10583_v14  ;;  %12093 = vst [vmem:[#allocation56_spill] sm:$0xff] %v10595_v19  ;;  %12094 = vst [vmem:[#allocation57_spill] sm:$0xff] %v10597_v21  ;;  %v10605_v14 = vld [vmem:[#allocation10 + $0x144] ss:$16 sps:$4 sm:$0xff]   ;;  %v10611_v27 = vld [vmem:[#allocation10 + $0x148] ss:$16 sps:$4 sm:$0xff]  }
 0x2e2   :  { %12096 = vst [vmem:[#allocation59_spill] sm:$0xff] %v10605_v14  ;;  %12099 = vst [vmem:[#allocation62_spill] sm:$0xff] %v10611_v27 }
 0x2e4   :  { %3055 = vmatpush1.bf16.msra.mxu0 %v10585_v43  ;;  %3098 = vmatpush1.bf16.msra.mxu1 %v10587_v24  ;;  %v10607_v43 = vld [vmem:[#allocation10 + $0x14c] ss:$16 sps:$4 sm:$0xff]   ;;  %v10609_v24 = vld [vmem:[#allocation10 + $0x140] ss:$16 sps:$4 sm:$0xff]  }
 0x2e5   :  { %3056 = vmatprep.subr.bf16.mxu0 %v10593_v23  ;;  %3099 = vmatprep.subr.bf16.mxu1 %v10595_v19  ;;  %12097 = vst [vmem:[#allocation60_spill] sm:$0xff] %v10607_v43  ;;  %12098 = vst [vmem:[#allocation61_spill] sm:$0xff] %v10609_v24  ;;  %v10617_v19 = vld [vmem:[#allocation10 + $0x164] ss:$16 sps:$4 sm:$0xff]   ;;  %v10623_v23 = vld [vmem:[#allocation10 + $0x168] ss:$16 sps:$4 sm:$0xff]  }
 0x2e6   :  { %12100 = vst [vmem:[#allocation63_spill] sm:$0xff] %v10617_v19  ;;  %12103 = vst [vmem:[#allocation66_spill] sm:$0xff] %v10623_v23 }
 0x2e8   :  { %3057 = vmatpush1.bf16.msra.mxu0 %v10597_v21  ;;  %3100 = vmatpush1.bf16.msra.mxu1 %v10599_v22  ;;  %v10619_v21 = vld [vmem:[#allocation10 + $0x16c] ss:$16 sps:$4 sm:$0xff]   ;;  %v10621_v22 = vld [vmem:[#allocation10 + $0x160] ss:$16 sps:$4 sm:$0xff]  }
 0x2e9   :  { %3058 = vmatprep.subr.bf16.mxu0 %v10605_v14  ;;  %3101 = vmatprep.subr.bf16.mxu1 %v10607_v43  ;;  %12101 = vst [vmem:[#allocation64_spill] sm:$0xff] %v10619_v21  ;;  %12102 = vst [vmem:[#allocation65_spill] sm:$0xff] %v10621_v22  ;;  %v10629_v43 = vld [vmem:[#allocation10 + $0x184] ss:$16 sps:$4 sm:$0xff]   ;;  %v10635_v14 = vld [vmem:[#allocation10 + $0x188] ss:$16 sps:$4 sm:$0xff]  }
 0x2ea   :  { %12104 = vst [vmem:[#allocation67_spill] sm:$0xff] %v10629_v43  ;;  %12107 = vst [vmem:[#allocation70_spill] sm:$0xff] %v10635_v14 }
 0x2ec   :  { %3059 = vmatpush1.bf16.msra.mxu0 %v10609_v24  ;;  %3102 = vmatpush1.bf16.msra.mxu1 %v10611_v27  ;;  %v10631_v24 = vld [vmem:[#allocation10 + $0x18c] ss:$16 sps:$4 sm:$0xff]   ;;  %v10633_v27 = vld [vmem:[#allocation10 + $0x180] ss:$16 sps:$4 sm:$0xff]  }
 0x2ed   :  { %3060 = vmatprep.subr.bf16.mxu0 %v10617_v19  ;;  %3103 = vmatprep.subr.bf16.mxu1 %v10619_v21  ;;  %12105 = vst [vmem:[#allocation68_spill] sm:$0xff] %v10631_v24  ;;  %12106 = vst [vmem:[#allocation69_spill] sm:$0xff] %v10633_v27  ;;  %v10641_v19 = vld [vmem:[#allocation10 + $0x1ac] ss:$16 sps:$4 sm:$0xff]   ;;  %v10651_v21 = vld [vmem:[#allocation10 + $0x1c4] ss:$16 sps:$4 sm:$0xff]  }
 0x2ee   :  { %12109 = vst [vmem:[#allocation72_spill] sm:$0xff] %v10641_v19  ;;  %12112 = vst [vmem:[#allocation75_spill] sm:$0xff] %v10651_v21 }
 0x2f0   :  { %3061 = vmatpush1.bf16.msra.mxu0 %v10621_v22  ;;  %3104 = vmatpush1.bf16.msra.mxu1 %v10623_v23  ;;  %v10645_v23 = vld [vmem:[#allocation10 + $0x1a0] ss:$16 sps:$4 sm:$0xff]   ;;  %v10647_v22 = vld [vmem:[#allocation10 + $0x1a8] ss:$16 sps:$4 sm:$0xff]  }
 0x2f1   :  { %3062 = vmatprep.subr.bf16.mxu0 %v10629_v43  ;;  %3105 = vmatprep.subr.bf16.mxu1 %v10631_v24  ;;  %12110 = vst [vmem:[#allocation73_spill] sm:$0xff] %v10645_v23  ;;  %12111 = vst [vmem:[#allocation74_spill] sm:$0xff] %v10647_v22  ;;  %v10653_v43 = vld [vmem:[#allocation10 + $0x1cc] ss:$16 sps:$4 sm:$0xff]   ;;  %v10657_v24 = vld [vmem:[#allocation10 + $0x1c0] ss:$16 sps:$4 sm:$0xff]  }
 0x2f2   :  { %12113 = vst [vmem:[#allocation76_spill] sm:$0xff] %v10653_v43  ;;  %12114 = vst [vmem:[#allocation77_spill] sm:$0xff] %v10657_v24 }
 0x2f4   :  { %3063 = vmatpush1.bf16.msra.mxu0 %v10633_v27  ;;  %3106 = vmatpush1.bf16.msra.mxu1 %v10635_v14  ;;  %v10659_v27 = vld [vmem:[#allocation10 + $0x1c8] ss:$16 sps:$4 sm:$0xff]   ;;  %v10663_v14 = vld [vmem:[#allocation10 + $0x1e4] ss:$16 sps:$4 sm:$0xff]  }
 0x2f5   :  { %3064 = vmatprep.subr.bf16.mxu0 %v10639_v13  ;;  %3107 = vmatprep.subr.bf16.mxu1 %v10641_v19  ;;  %12115 = vst [vmem:[#allocation78_spill] sm:$0xff] %v10659_v27  ;;  %12116 = vst [vmem:[#allocation79_spill] sm:$0xff] %v10663_v14  ;;  %v10665_v13 = vld [vmem:[#allocation10 + $0x1ec] ss:$16 sps:$4 sm:$0xff]   ;;  %v10669_v19 = vld [vmem:[#allocation10 + $0x1e0] ss:$16 sps:$4 sm:$0xff]  }
 0x2f6   :  { %12117 = vst [vmem:[#allocation80_spill] sm:$0xff] %v10665_v13  ;;  %12118 = vst [vmem:[#allocation81_spill] sm:$0xff] %v10669_v19 }
 0x2f8   :  { %3065 = vmatpush1.bf16.msra.mxu0 %v10645_v23  ;;  %3108 = vmatpush1.bf16.msra.mxu1 %v10647_v22  ;;  %v10671_v23 = vld [vmem:[#allocation10 + $0x1e8] ss:$16 sps:$4 sm:$0xff]  }
 0x2f9   :  { %3066 = vmatprep.subr.bf16.mxu0 %v10651_v21  ;;  %3109 = vmatprep.subr.bf16.mxu1 %v10653_v43  ;;  %12119 = vst [vmem:[#allocation82_spill] sm:$0xff] %v10671_v23 }
 0x2fc   :  { %3067 = vmatpush1.bf16.msra.mxu0 %v10657_v24  ;;  %3110 = vmatpush1.bf16.msra.mxu1 %v10659_v27  ;;  %v1799_v27 = vld [vmem:[%s11769_s5] sm:$0xf] }
 0x2fd   :  { %3068 = vmatprep.subr.bf16.mxu0 %v10663_v14  ;;  %3111 = vmatprep.subr.bf16.mxu1 %v10665_v13  ;;  %v1804_v24 = vrot.slane %v1799_v27, %v12050_v18  ;;  %v1808_v43 = vrot.slane %v1799_v27, %v12051_v20  ;;  %v1812_v6 = vrot.slane %v1799_v27, %v12052_v34 }
 0x2fe   :  { %v1816_v20 = vrot.slane %v1799_v27, %v10265_v51 }
 0x300   :  { %3069 = vmatpush1.bf16.msra.mxu0 %v10669_v19  ;;  %3112 = vmatpush1.bf16.msra.mxu1 %v10671_v23 }
 0x301   :  { %3380 = vmatprep.subr.bf16.mxu0 %v10352_v15  ;;  %3423 = vmatprep.subr.bf16.mxu1 %v10354_v16 }
 0x376   :  { %v2175_v21 = vpop.f32.mrb[36].mxu0  ;;  %v2218_v14 = vpop.f32.mrb[36].mxu1 }
 0x377   :  { %v2176_v22 = vadd.f32 %v2175_v21, %v1804_v24  ;;  %v2177_v13 = vpop.f32.mrb[37].mxu0  ;;  %v2220_v10 = vpop.f32.mrb[37].mxu1  ;;  %v2219_v21 = vadd.f32 %v2218_v14, %v1812_v6 }
 0x378   :  { %v2178_v19 = vadd.f32 %v2177_v13, %v1808_v43  ;;  %v2179_v9 = vpop.f32.mrb[38].mxu0  ;;  %v2222_v23 = vpop.f32.mrb[38].mxu1  ;;  %v2221_v13 = vadd.f32 %v2220_v10, %v1816_v20 }
 0x379   :  { %v7925_v8 = vmul.f32 -1.442695, %v2176_v22  ;;  %v2180_v15 = vadd.f32 %v2179_v9, %v1804_v24  ;;  %v2181_v7 = vpop.f32.mrb[39].mxu0  ;;  %v2224_v16 = vpop.f32.mrb[39].mxu1  ;;  %v2223_v0 = vadd.f32 %v2222_v23, %v1812_v6  ;;  %v7927_v63 = vmul.f32 -1.442695, %v2219_v21 }
 0x37a   :  { %v7926_v5 = vmul.f32 -1.442695, %v2178_v19  ;;  %v2182_v2 = vadd.f32 %v2181_v7, %v1808_v43  ;;  %v2225_v24 = vadd.f32 %v2224_v16, %v1816_v20 }
 0x37b   :  { %9397 = vpow2.f32 %v7925_v8  ;;  %v7928_v18 = vmul.f32 -1.442695, %v2180_v15  ;;  %v7930_v22 = vmul.f32 -1.442695, %v2223_v0 }
 0x37c   :  { %v7929_v1 = vmul.f32 -1.442695, %v2182_v2  ;;  %9399 = vpow2.f32 %v7926_v5 }
 0x37d   :  { %9401 = vpow2.f32 %v7928_v18 }
 0x37e   :  { %9403 = vpow2.f32 %v7929_v1 }
 0x37f   :  { %9405 = vtanh.f32 %v2221_v13 }
 0x380   :  { %9407 = vpow2.f32 %v7927_v63 }
 0x381   :  { %9409 = vpow2.f32 %v7930_v22 }
 0x385   :  { %v9398_v9 = vpop.eup %9397 }
 0x386   :  { %v2245_v62 = vadd.f32 1.0, %v9398_v9  ;;  %v9400_v19 = vpop.eup %9399 }
 0x387   :  { %v9402_v7 = vpop.eup %9401  ;;  %v2246_v2 = vadd.f32 1.0, %v9400_v19 }
 0x388   :  { %9411 = vrcp.f32 %v2245_v62  ;;  %v2248_v5 = vadd.f32 1.0, %v9402_v7  ;;  %v9404_v8 = vpop.eup %9403 }
 0x389   :  { %9413 = vtanh.f32 %v2225_v24  ;;  %v2249_v18 = vadd.f32 1.0, %v9404_v8  ;;  %v9406_v1 = vpop.eup %9405 }
 0x38a   :  { %9415 = vrcp.f32 %v2246_v2  ;;  %v9408_v6 = vpop.eup %9407 }
 0x38b   :  { %9417 = vrcp.f32 %v2248_v5  ;;  %v9410_v0 = vpop.eup %9409  ;;  %v2247_v63 = vadd.f32 1.0, %v9408_v6 }
 0x38c   :  { %9419 = vrcp.f32 %v2249_v18  ;;  %v2250_v62 = vadd.f32 1.0, %v9410_v0 }
 0x38d   :  { %9421 = vrcp.f32 %v2247_v63 }
 0x38e   :  { %9423 = vrcp.f32 %v2250_v62 }
 0x392   :  { %v9412_v10 = vpop.eup %9411 }
 0x393   :  { %v9414_v14 = vpop.eup %9413  ;;  %v2269_v20 = vmul.f32 %v9412_v10, %v9406_v1 }
 0x394   :  { %v9416_v23 = vpop.eup %9415 }
 0x395   :  { %v9418_v43 = vpop.eup %9417  ;;  %v2267_v27 = vmul.f32 %v9416_v23, %v10365_v12 }
 0x396   :  { %v2270_v15 = vmul.f32 %v9418_v43, %v9414_v14  ;;  %v2517_v16 = vpop.f32.mrb[8].mxu0  ;;  %v2560_v21 = vpop.f32.mrb[8].mxu1 }
 0x397   :  { %v9420_v13 = vpop.eup %9419  ;;  %v10687_v22 = vadd.f32 %v2269_v20, %v2267_v27  ;;  %v8587_v9 = vadd.f32 %v2517_v16, %v10251_v54  ;;  %v2519_v24 = vpop.f32.mrb[9].mxu0  ;;  %v8619_v23 = vadd.f32 %v2560_v21, %v12053_v33 }
 0x398   :  { %v2562_v19 = vpop.f32.mrb[9].mxu1  ;;  %v2268_v7 = vmul.f32 %v9420_v13, %v10371_v28  ;;  %v8588_v2 = vadd.f32 %v2519_v24, %v10254_v55  ;;  %v2521_v5 = vpop.f32.mrb[10].mxu0 }
 0x399   :  { %v2564_v8 = vpop.f32.mrb[10].mxu1  ;;  %v7963_v12 = vmul.f32 -1.442695, %v8587_v9  ;;  %v8589_v18 = vadd.f32 %v2521_v5, %v10251_v54  ;;  %v2523_v1 = vpop.f32.mrb[11].mxu0  ;;  %9425 = vtanh.f32 %v10687_v22  ;;  %v8620_v27 = vadd.f32 %v2562_v19, %v12054_v48 }
 0x39a   :  { %v2566_v6 = vpop.f32.mrb[11].mxu1  ;;  %v10694_v0 = vadd.f32 %v2270_v15, %v2268_v7  ;;  %v7964_v10 = vmul.f32 -1.442695, %v8588_v2  ;;  %v8590_v20 = vadd.f32 %v2523_v1, %v10254_v55  ;;  %v8621_v63 = vadd.f32 %v2564_v8, %v12053_v33  ;;  %v9422_v43 = vpop.eup %9421 }
 0x39b   :  { %9427 = vpow2.f32 %v7963_v12  ;;  %v7966_v14 = vmul.f32 -1.442695, %v8589_v18  ;;  %v9424_v62 = vpop.eup %9423  ;;  %v7965_v15 = vmul.f32 -1.442695, %v8619_v23  ;;  %v8622_v2 = vadd.f32 %v2566_v6, %v12054_v48 }
 0x39c   :  { %9429 = vtanh.f32 %v10694_v0  ;;  %v7967_v28 = vmul.f32 -1.442695, %v8590_v20  ;;  %v7968_v9 = vmul.f32 -1.442695, %v8621_v63 }
 0x39d   :  { %9431 = vpow2.f32 %v7964_v10 }
 0x39e   :  { %9433 = vpow2.f32 %v7966_v14 }
 0x39f   :  { %9435 = vpow2.f32 %v7967_v28 }
 0x3a0   :  { %9437 = vtanh.f32 %v8620_v27 }
 0x3a1   :  { %9439 = vpow2.f32 %v7965_v15 }
 0x3a3   :  { %v9426_v16 = vpop.eup %9425 }
 0x3a4   :  { %v2275_v5 = vmul.f32 %v9426_v16, %v9422_v43 }
 0x3a5   :  { %v9428_v13 = vpop.eup %9427 }
 0x3a6   :  { %v9430_v24 = vpop.eup %9429  ;;  %v2595_v7 = vadd.f32 1.0, %v9428_v13 }
 0x3a7   :  { %v2276_v21 = vmul.f32 %v9430_v24, %v9424_v62  ;;  %v9432_v12 = vpop.eup %9431 }
 0x3a8   :  { %9441 = vrcp.f32 %v2595_v7  ;;  %v9434_v8 = vpop.eup %9433  ;;  %v2596_v18 = vadd.f32 1.0, %v9432_v12 }
 0x3a9   :  { %9443 = vpow2.f32 %v7968_v9  ;;  %v2277_v1 = vpack.c.bf16 %v2276_v21, %v2275_v5  ;;  %v2598_v19 = vadd.f32 1.0, %v9434_v8  ;;  %v9436_v10 = vpop.eup %9435 }
 0x3aa   :  { %9445 = vtanh.f32 %v8622_v2  ;;  %v2599_v14 = vadd.f32 1.0, %v9436_v10  ;;  %v9438_v20 = vpop.eup %9437  ;;  %v12150_v10 = vld [vmem:[#allocation48_spill] sm:$0xff] }
 0x3ab   :  { %9447 = vrcp.f32 %v2596_v18  ;;  %3070 = vmatprep.mubr.bf16.mxu0 %v2277_v1  ;;  %3113 = vmatprep.mubr.bf16.mxu1 %v2277_v1  ;;  %v9440_v6 = vpop.eup %9439 }
 0x3ac   :  { %9449 = vrcp.f32 %v2598_v19  ;;  %v2597_v15 = vadd.f32 1.0, %v9440_v6  ;;  %v12153_v6 = vld [vmem:[#allocation51_spill] sm:$0xff] }
 0x3ad   :  { %9451 = vrcp.f32 %v2599_v14  ;;  %v12151_v14 = vld [vmem:[#allocation49_spill] sm:$0xff] }
 0x3ae   :  { %9453 = vrcp.f32 %v2597_v15  ;;  %v12160_v15 = vld [vmem:[#allocation58_spill] sm:$0xff] }
 0x3b2   :  { %v9442_v28 = vpop.eup %9441 }
 0x3b3   :  { %v9444_v23 = vpop.eup %9443  ;;  %v2619_v63 = vmul.f32 %v9442_v28, %v9438_v20  ;;  %v12152_v20 = vld [vmem:[#allocation50_spill] sm:$0xff]  ;;  %v12154_v28 = vld [vmem:[#allocation52_spill] sm:$0xff] }
 0x3b4   :  { %v9446_v43 = vpop.eup %9445  ;;  %v2600_v7 = vadd.f32 1.0, %v9444_v23  ;;  %v12155_v23 = vld [vmem:[#allocation53_spill] sm:$0xff] }
 0x3b5   :  { %v9448_v27 = vpop.eup %9447 }
 0x3b6   :  { %v9450_v62 = vpop.eup %9449  ;;  %v2617_v16 = vmul.f32 %v9448_v27, %v10380_v11  ;;  %v12158_v27 = vld [vmem:[#allocation56_spill] sm:$0xff] }
 0x3b7   :  { %v2620_v13 = vmul.f32 %v9450_v62, %v9446_v43  ;;  %v9452_v9 = vpop.eup %9451  ;;  %v12157_v43 = vld [vmem:[#allocation55_spill] sm:$0xff]  ;;  %v12159_v62 = vld [vmem:[#allocation57_spill] sm:$0xff] }
 0x3b8   :  { %v10703_v24 = vadd.f32 %v2619_v63, %v2617_v16  ;;  %v2618_v2 = vmul.f32 %v9452_v9, %v10384_v17  ;;  %v9454_v21 = vpop.eup %9453  ;;  %v12120_v17 = vld [vmem:[#allocation16_spill] sm:$0xff]  ;;  %v12156_v63 = vld [vmem:[#allocation54_spill] sm:$0xff]  ;;  %v12161_v16 = vld [vmem:[#allocation59_spill] sm:$0xff] }
 0x3b9   :  { %v12163_v9 = vld [vmem:[#allocation61_spill] sm:$0xff] }
 0x3ba   :  { %9455 = vtanh.f32 %v10703_v24  ;;  %v10707_v5 = vadd.f32 %v2620_v13, %v2618_v2  ;;  %v12162_v13 = vld [vmem:[#allocation60_spill] sm:$0xff]  ;;  %v12165_v2 = vld [vmem:[#allocation63_spill] sm:$0xff] }
 0x3bb   :  { %9457 = vrcp.f32 %v2600_v7  ;;  %v12164_v7 = vld [vmem:[#allocation62_spill] sm:$0xff] }
 0x3bc   :  { %9459 = vtanh.f32 %v10707_v5 }
 0x3c4   :  { %v9456_v12 = vpop.eup %9455 }
 0x3c5   :  { %v9458_v8 = vpop.eup %9457  ;;  %v2625_v11 = vmul.f32 %v9456_v12, %v9454_v21  ;;  %v12166_v21 = vld [vmem:[#allocation64_spill] sm:$0xff]  ;;  %v12167_v12 = vld [vmem:[#allocation65_spill] sm:$0xff] }
 0x3c6   :  { %v9460_v18 = vpop.eup %9459 }
 0x3c7   :  { %v2626_v1 = vmul.f32 %v9460_v18, %v9458_v8  ;;  %v12168_v8 = vld [vmem:[#allocation66_spill] sm:$0xff]  ;;  %v12169_v18 = vld [vmem:[#allocation67_spill] sm:$0xff] }
 0x3c9   :  { %v2627_v19 = vpack.c.bf16 %v2626_v1, %v2625_v11  ;;  %v12170_v11 = vld [vmem:[#allocation68_spill] sm:$0xff]  ;;  %v12171_v1 = vld [vmem:[#allocation69_spill] sm:$0xff] }
 0x3cb   :  { %3071 = vmatmul.mubr.bf16.vlgmr.msra.gmra.mrb[40].mxu0 %v2627_v19  ;;  %3114 = vmatmul.mubr.bf16.vlgmr.msra.gmra.mrb[40].mxu1 %v2627_v19 }
 0x3cc   :  { %3381 = vmatpush1.bf16.msra.mxu0 %v10387_v25  ;;  %3424 = vmatpush1.bf16.msra.mxu1 %v10389_v26  ;;  %v12121_v25 = vld [vmem:[#allocation17_spill] sm:$0xff]  ;;  %v12122_v26 = vld [vmem:[#allocation18_spill] sm:$0xff] }
 0x3cd   :  { %3382 = vmatprep.subr.bf16.mxu0 %v10393_v45  ;;  %3425 = vmatprep.subr.bf16.mxu1 %v10395_v29  ;;  %v12123_v45 = vld [vmem:[#allocation19_spill] sm:$0xff]  ;;  %v12124_v29 = vld [vmem:[#allocation20_spill] sm:$0xff] }
 0x3ce   :  { %3412 = vmatprep.mubr.bf16.mxu0 %v12029_v47  ;;  %3455 = vmatprep.mubr.bf16.mxu1 %v12029_v47 }
 0x3d0   :  { %3383 = vmatpush1.bf16.msra.mxu0 %v10401_v30  ;;  %3426 = vmatpush1.bf16.msra.mxu1 %v10403_v31  ;;  %v12125_v30 = vld [vmem:[#allocation21_spill] sm:$0xff]  ;;  %v12126_v31 = vld [vmem:[#allocation22_spill] sm:$0xff] }
 0x3d1   :  { %3384 = vmatprep.subr.bf16.mxu0 %v10407_v32  ;;  %3427 = vmatprep.subr.bf16.mxu1 %v10409_v35  ;;  %v12127_v32 = vld [vmem:[#allocation23_spill] sm:$0xff]  ;;  %v12128_v35 = vld [vmem:[#allocation24_spill] sm:$0xff] }
 0x3d4   :  { %3385 = vmatpush1.bf16.msra.mxu0 %v10415_v36  ;;  %3428 = vmatpush1.bf16.msra.mxu1 %v10417_v37  ;;  %v12129_v36 = vld [vmem:[#allocation25_spill] sm:$0xff]  ;;  %v12130_v37 = vld [vmem:[#allocation26_spill] sm:$0xff] }
 0x3d5   :  { %3386 = vmatprep.subr.bf16.mxu0 %v10421_v46  ;;  %3429 = vmatprep.subr.bf16.mxu1 %v10423_v44  ;;  %v12131_v46 = vld [vmem:[#allocation27_spill] sm:$0xff]  ;;  %v12132_v44 = vld [vmem:[#allocation28_spill] sm:$0xff] }
 0x3d8   :  { %3387 = vmatpush1.bf16.msra.mxu0 %v10427_v56  ;;  %3430 = vmatpush1.bf16.msra.mxu1 %v10429_v41  ;;  %v12133_v56 = vld [vmem:[#allocation29_spill] sm:$0xff]  ;;  %v12134_v41 = vld [vmem:[#allocation30_spill] sm:$0xff] }
 0x3d9   :  { %3388 = vmatprep.subr.bf16.mxu0 %v10433_v49  ;;  %3431 = vmatprep.subr.bf16.mxu1 %v10435_v40  ;;  %v12135_v49 = vld [vmem:[#allocation31_spill] sm:$0xff]  ;;  %v12136_v40 = vld [vmem:[#allocation32_spill] sm:$0xff] }
 0x3dc   :  { %3389 = vmatpush1.bf16.msra.mxu0 %v10439_v39  ;;  %3432 = vmatpush1.bf16.msra.mxu1 %v10441_v52  ;;  %v12137_v39 = vld [vmem:[#allocation33_spill] sm:$0xff]  ;;  %v12138_v52 = vld [vmem:[#allocation34_spill] sm:$0xff] }
 0x3dd   :  { %3390 = vmatprep.subr.bf16.mxu0 %v10445_v38  ;;  %3433 = vmatprep.subr.bf16.mxu1 %v10447_v50  ;;  %v12139_v38 = vld [vmem:[#allocation35_spill] sm:$0xff]  ;;  %v12140_v50 = vld [vmem:[#allocation38_spill] sm:$0xff] }
 0x3e0   :  { %3391 = vmatpush1.bf16.msra.mxu0 %v10451_v4  ;;  %3434 = vmatpush1.bf16.msra.mxu1 %v10453_v42  ;;  %v12141_v4 = vld [vmem:[#allocation39_spill] sm:$0xff]  ;;  %v12142_v42 = vld [vmem:[#allocation40_spill] sm:$0xff] }
 0x3e1   :  { %3392 = vmatprep.subr.bf16.mxu0 %v10457_v53  ;;  %3435 = vmatprep.subr.bf16.mxu1 %v10459_v3  ;;  %v12143_v53 = vld [vmem:[#allocation41_spill] sm:$0xff]  ;;  %v12144_v3 = vld [vmem:[#allocation42_spill] sm:$0xff] }
 0x3e4   :  { %3393 = vmatpush1.bf16.msra.mxu0 %v10463_v57  ;;  %3436 = vmatpush1.bf16.msra.mxu1 %v10465_v58  ;;  %v12145_v57 = vld [vmem:[#allocation43_spill] sm:$0xff]  ;;  %v12146_v58 = vld [vmem:[#allocation44_spill] sm:$0xff] }
 0x3e5   :  { %3394 = vmatprep.subr.bf16.mxu0 %v10469_v59  ;;  %3437 = vmatprep.subr.bf16.mxu1 %v10471_v60  ;;  %v12147_v59 = vld [vmem:[#allocation45_spill] sm:$0xff]  ;;  %v12148_v60 = vld [vmem:[#allocation46_spill] sm:$0xff] }
 0x3e8   :  { %3395 = vmatpush1.bf16.msra.mxu0 %v10475_v61  ;;  %3438 = vmatpush1.bf16.msra.mxu1 %v12120_v17  ;;  %v12149_v61 = vld [vmem:[#allocation47_spill] sm:$0xff] }
 0x3e9   :  { %3935 = vmatprep.subr.bf16.mxu0 %v12121_v25  ;;  %3978 = vmatprep.subr.bf16.mxu1 %v12122_v26  ;;  %v12173_v17 = vld [vmem:[#allocation71_spill] sm:$0xff]  ;;  %v12174_v25 = vld [vmem:[#allocation72_spill] sm:$0xff]  ;;  %v12175_v26 = vld [vmem:[#allocation73_spill] sm:$0xff] }
 0x3eb   :  { %3413 = vmatmul.mubr.bf16.vlgmr.msra.gmra.mrb[12].mxu0 %v2627_v19  ;;  %3456 = vmatmul.mubr.bf16.vlgmr.msra.gmra.mrb[12].mxu1 %v2627_v19  ;;  %v12172_v19 = vld [vmem:[#allocation70_spill] sm:$0xff] }
 0x3ec   :  { %3936 = vmatpush1.bf16.msra.mxu0 %v12123_v45  ;;  %3979 = vmatpush1.bf16.msra.mxu1 %v12124_v29  ;;  %v12176_v45 = vld [vmem:[#allocation74_spill] sm:$0xff]  ;;  %v12177_v29 = vld [vmem:[#allocation75_spill] sm:$0xff] }
 0x3ed   :  { %3937 = vmatprep.subr.bf16.mxu0 %v12125_v30  ;;  %3980 = vmatprep.subr.bf16.mxu1 %v12126_v31  ;;  %v12178_v30 = vld [vmem:[#allocation76_spill] sm:$0xff]  ;;  %v12179_v31 = vld [vmem:[#allocation77_spill] sm:$0xff] }
 0x3f0   :  { %3938 = vmatpush1.bf16.msra.mxu0 %v12127_v32  ;;  %3981 = vmatpush1.bf16.msra.mxu1 %v12128_v35  ;;  %v12180_v32 = vld [vmem:[#allocation78_spill] sm:$0xff]  ;;  %v12181_v35 = vld [vmem:[#allocation79_spill] sm:$0xff] }
 0x3f1   :  { %3939 = vmatprep.subr.bf16.mxu0 %v12129_v36  ;;  %3982 = vmatprep.subr.bf16.mxu1 %v12130_v37  ;;  %v12182_v36 = vld [vmem:[#allocation80_spill] sm:$0xff]  ;;  %v12183_v37 = vld [vmem:[#allocation81_spill] sm:$0xff] }
 0x3f4   :  { %3940 = vmatpush1.bf16.msra.mxu0 %v12131_v46  ;;  %3983 = vmatpush1.bf16.msra.mxu1 %v12132_v44  ;;  %v12184_v46 = vld [vmem:[#allocation82_spill] sm:$0xff] }
 0x3f5   :  { %3941 = vmatprep.subr.bf16.mxu0 %v12133_v56  ;;  %3984 = vmatprep.subr.bf16.mxu1 %v12134_v41  ;;  %v10806_v44 = vld [vmem:[#allocation7 + $0x4] ss:$16 sps:$4 sm:$0xff]   ;;  %v10808_v56 = vld [vmem:[#allocation7 + $0xc] ss:$16 sps:$4 sm:$0xff]   ;;  %v2696_v41 = vld [vmem:[%s11769_s5] sm:$0xf] }
 0x3f8   :  { %3942 = vmatpush1.bf16.msra.mxu0 %v12135_v49  ;;  %3985 = vmatpush1.bf16.msra.mxu1 %v12136_v40  ;;  %v12185_v49 = vld [vmem:[#allocation36_spill] sm:$0xff] }
 0x3f9   :  { %3943 = vmatprep.subr.bf16.mxu0 %v12137_v39  ;;  %3986 = vmatprep.subr.bf16.mxu1 %v12138_v52  ;;  %v2701_v40 = vrot.slane %v2696_v41, %v12185_v49  ;;  %v12186_v39 = vld [vmem:[#allocation37_spill] sm:$0xff] }
 0x3fa   :  { %v2705_v52 = vrot.slane %v2696_v41, %v12186_v39 }
 0x3fc   :  { %3944 = vmatpush1.bf16.msra.mxu0 %v12139_v38  ;;  %3987 = vmatpush1.bf16.msra.mxu1 %v12140_v50 }
 0x3fd   :  { %3945 = vmatprep.subr.bf16.mxu0 %v12141_v4  ;;  %3988 = vmatprep.subr.bf16.mxu1 %v12142_v42 }
 0x400   :  { %3946 = vmatpush1.bf16.msra.mxu0 %v12143_v53  ;;  %3989 = vmatpush1.bf16.msra.mxu1 %v12144_v3 }
 0x401   :  { %3947 = vmatprep.subr.bf16.mxu0 %v12145_v57  ;;  %3990 = vmatprep.subr.bf16.mxu1 %v12146_v58 }
 0x404   :  { %3948 = vmatpush1.bf16.msra.mxu0 %v12147_v59  ;;  %3991 = vmatpush1.bf16.msra.mxu1 %v12148_v60 }
 0x405   :  { %3949 = vmatprep.subr.bf16.mxu0 %v12149_v61  ;;  %3992 = vmatprep.subr.bf16.mxu1 %v12150_v10 }
 0x408   :  { %3950 = vmatpush1.bf16.msra.mxu0 %v12151_v14  ;;  %3993 = vmatpush1.bf16.msra.mxu1 %v12152_v20  ;;  %v2709_v14 = vrot.slane %v2696_v41, %v12052_v34 }
 0x409   :  { %3951 = vmatprep.subr.bf16.mxu0 %v12153_v6  ;;  %3994 = vmatprep.subr.bf16.mxu1 %v12154_v28 }
 0x40c   :  { %3952 = vmatpush1.bf16.msra.mxu0 %v12155_v23  ;;  %3995 = vmatpush1.bf16.msra.mxu1 %v12156_v63  ;;  %v2713_v63 = vrot.slane %v2696_v41, %v10265_v51 }
 0x40d   :  { %3953 = vmatprep.subr.bf16.mxu0 %v12157_v43  ;;  %3996 = vmatprep.subr.bf16.mxu1 %v12158_v27 }
 0x410   :  { %3954 = vmatpush1.bf16.msra.mxu0 %v12159_v62  ;;  %3997 = vmatpush1.bf16.msra.mxu1 %v12160_v15 }
 0x411   :  { %3955 = vmatprep.subr.bf16.mxu0 %v12161_v16  ;;  %3998 = vmatprep.subr.bf16.mxu1 %v12162_v13 }
 0x414   :  { %3956 = vmatpush1.bf16.msra.mxu0 %v12163_v9  ;;  %3999 = vmatpush1.bf16.msra.mxu1 %v12164_v7 }
 0x415   :  { %3957 = vmatprep.subr.bf16.mxu0 %v12165_v2  ;;  %4000 = vmatprep.subr.bf16.mxu1 %v12166_v21 }
 0x418   :  { %3958 = vmatpush1.bf16.msra.mxu0 %v12167_v12  ;;  %4001 = vmatpush1.bf16.msra.mxu1 %v12168_v8 }
 0x419   :  { %3959 = vmatprep.subr.bf16.mxu0 %v12169_v18  ;;  %4002 = vmatprep.subr.bf16.mxu1 %v12170_v11 }
 0x41c   :  { %3960 = vmatpush1.bf16.msra.mxu0 %v12171_v1  ;;  %4003 = vmatpush1.bf16.msra.mxu1 %v12172_v19 }
 0x41d   :  { %3961 = vmatprep.subr.bf16.mxu0 %v12173_v17  ;;  %4004 = vmatprep.subr.bf16.mxu1 %v12174_v25 }
 0x420   :  { %3962 = vmatpush1.bf16.msra.mxu0 %v12175_v26  ;;  %4005 = vmatpush1.bf16.msra.mxu1 %v12176_v45 }
 0x421   :  { %3963 = vmatprep.subr.bf16.mxu0 %v12177_v29  ;;  %4006 = vmatprep.subr.bf16.mxu1 %v12178_v30 }
 0x424   :  { %3964 = vmatpush1.bf16.msra.mxu0 %v12179_v31  ;;  %4007 = vmatpush1.bf16.msra.mxu1 %v12180_v32 }
 0x425   :  { %3965 = vmatprep.subr.bf16.mxu0 %v12181_v35  ;;  %4008 = vmatprep.subr.bf16.mxu1 %v12182_v36 }
 0x428   :  { %3966 = vmatpush1.bf16.msra.mxu0 %v12183_v37  ;;  %4009 = vmatpush1.bf16.msra.mxu1 %v12184_v46 }
 0x429   :  { %4277 = vmatprep.subr.bf16.mxu0 %v10806_v44  ;;  %4320 = vmatprep.subr.bf16.mxu1 %v10808_v56 }
 0x49e   :  { %v3072_v38 = vpop.f32.mrb[40].mxu0  ;;  %v3115_v50 = vpop.f32.mrb[40].mxu1 }
 0x49f   :  { %v3073_v4 = vadd.f32 %v3072_v38, %v2701_v40  ;;  %v3074_v42 = vpop.f32.mrb[41].mxu0  ;;  %v3117_v53 = vpop.f32.mrb[41].mxu1  ;;  %v3116_v43 = vadd.f32 %v3115_v50, %v2709_v14 }
 0x4a0   :  { %v3075_v3 = vadd.f32 %v3074_v42, %v2705_v52  ;;  %v3076_v57 = vpop.f32.mrb[42].mxu0  ;;  %v3119_v58 = vpop.f32.mrb[42].mxu1  ;;  %v3118_v62 = vadd.f32 %v3117_v53, %v2713_v63 }
 0x4a1   :  { %v8033_v59 = vmul.f32 -1.442695, %v3073_v4  ;;  %v3077_v60 = vadd.f32 %v3076_v57, %v2701_v40  ;;  %v3078_v61 = vpop.f32.mrb[43].mxu0  ;;  %v3121_v10 = vpop.f32.mrb[43].mxu1  ;;  %v3120_v27 = vadd.f32 %v3119_v58, %v2709_v14  ;;  %v8035_v15 = vmul.f32 -1.442695, %v3116_v43 }
 0x4a2   :  { %v8034_v20 = vmul.f32 -1.442695, %v3075_v3  ;;  %v3079_v6 = vadd.f32 %v3078_v61, %v2705_v52  ;;  %v3122_v9 = vadd.f32 %v3121_v10, %v2713_v63 }
 0x4a3   :  { %9461 = vpow2.f32 %v8033_v59  ;;  %v8036_v28 = vmul.f32 -1.442695, %v3077_v60  ;;  %v8038_v16 = vmul.f32 -1.442695, %v3120_v27 }
 0x4a4   :  { %v8037_v23 = vmul.f32 -1.442695, %v3079_v6  ;;  %9463 = vpow2.f32 %v8034_v20 }
 0x4a5   :  { %9465 = vpow2.f32 %v8036_v28 }
 0x4a6   :  { %9467 = vpow2.f32 %v8037_v23 }
 0x4a7   :  { %9469 = vtanh.f32 %v3118_v62 }
 0x4a8   :  { %9471 = vpow2.f32 %v8035_v15 }
 0x4a9   :  { %9473 = vpow2.f32 %v8038_v16 }
 0x4ad   :  { %v9462_v13 = vpop.eup %9461 }
 0x4ae   :  { %v3142_v7 = vadd.f32 1.0, %v9462_v13  ;;  %v9464_v2 = vpop.eup %9463 }
 0x4af   :  { %v9466_v21 = vpop.eup %9465  ;;  %v3143_v12 = vadd.f32 1.0, %v9464_v2 }
 0x4b0   :  { %9475 = vrcp.f32 %v3142_v7  ;;  %v3145_v8 = vadd.f32 1.0, %v9466_v21  ;;  %v9468_v18 = vpop.eup %9467 }
 0x4b1   :  { %9477 = vtanh.f32 %v3122_v9  ;;  %v3146_v11 = vadd.f32 1.0, %v9468_v18  ;;  %v9470_v1 = vpop.eup %9469 }
 0x4b2   :  { %9479 = vrcp.f32 %v3143_v12  ;;  %v9472_v19 = vpop.eup %9471 }
 0x4b3   :  { %9481 = vrcp.f32 %v3145_v8  ;;  %v9474_v17 = vpop.eup %9473  ;;  %v3144_v30 = vadd.f32 1.0, %v9472_v19 }
 0x4b4   :  { %9483 = vrcp.f32 %v3146_v11  ;;  %v3147_v35 = vadd.f32 1.0, %v9474_v17 }
 0x4b5   :  { %9485 = vrcp.f32 %v3144_v30 }
 0x4b6   :  { %9487 = vrcp.f32 %v3147_v35 }
 0x4ba   :  { %v9476_v25 = vpop.eup %9475 }
 0x4bb   :  { %v9478_v26 = vpop.eup %9477  ;;  %v3166_v45 = vmul.f32 %v9476_v25, %v9470_v1 }
 0x4bc   :  { %v9480_v29 = vpop.eup %9479 }
 0x4bd   :  { %v9482_v31 = vpop.eup %9481  ;;  %v3164_v32 = vmul.f32 %v9480_v29, %v10687_v22 }
 0x4be   :  { %v3167_v36 = vmul.f32 %v9482_v31, %v9478_v26  ;;  %v3414_v37 = vpop.f32.mrb[12].mxu0  ;;  %v3457_v46 = vpop.f32.mrb[12].mxu1 }
 0x4bf   :  { %v9484_v41 = vpop.eup %9483  ;;  %v10820_v40 = vadd.f32 %v3166_v45, %v3164_v32  ;;  %v8591_v52 = vadd.f32 %v3414_v37, %v10251_v54  ;;  %v3416_v38 = vpop.f32.mrb[13].mxu0  ;;  %v8623_v20 = vadd.f32 %v3457_v46, %v12053_v33 }
 0x4c0   :  { %v3459_v50 = vpop.f32.mrb[13].mxu1  ;;  %v3165_v4 = vmul.f32 %v9484_v41, %v10694_v0  ;;  %v8592_v42 = vadd.f32 %v3416_v38, %v10254_v55  ;;  %v3418_v53 = vpop.f32.mrb[14].mxu0 }
 0x4c1   :  { %v3461_v3 = vpop.f32.mrb[14].mxu1  ;;  %v8071_v22 = vmul.f32 -1.442695, %v8591_v52  ;;  %v8593_v57 = vadd.f32 %v3418_v53, %v10251_v54  ;;  %v3420_v58 = vpop.f32.mrb[15].mxu0  ;;  %9489 = vtanh.f32 %v10820_v40  ;;  %v8624_v23 = vadd.f32 %v3459_v50, %v12054_v48 }
 0x4c2   :  { %v3463_v59 = vpop.f32.mrb[15].mxu1  ;;  %v10827_v60 = vadd.f32 %v3167_v36, %v3165_v4  ;;  %v8072_v61 = vmul.f32 -1.442695, %v8592_v42  ;;  %v8594_v14 = vadd.f32 %v3420_v58, %v10254_v55  ;;  %v8625_v6 = vadd.f32 %v3461_v3, %v12053_v33  ;;  %v9486_v28 = vpop.eup %9485  ;;  %v10845_v58 = vld [vmem:[#allocation7 + $0x8] ss:$16 sps:$4 sm:$0xff]  }
 0x4c3   :  { %9491 = vpow2.f32 %v8071_v22  ;;  %v8074_v10 = vmul.f32 -1.442695, %v8593_v57  ;;  %v9488_v63 = vpop.eup %9487  ;;  %v8073_v43 = vmul.f32 -1.442695, %v8623_v20  ;;  %v8626_v9 = vadd.f32 %v3463_v59, %v12054_v48  ;;  %v10843_v57 = vld [vmem:[#allocation7] ss:$16 sps:$4 sm:$0xff]  }
 0x4c4   :  { %9493 = vtanh.f32 %v10827_v60  ;;  %v8075_v0 = vmul.f32 -1.442695, %v8594_v14  ;;  %v8076_v15 = vmul.f32 -1.442695, %v8625_v6  ;;  %v10859_v14 = vld [vmem:[#allocation7 + $0x28] ss:$16 sps:$4 sm:$0xff]  }
 0x4c5   :  { %9495 = vpow2.f32 %v8072_v61  ;;  %v10851_v61 = vld [vmem:[#allocation7 + $0x2c] ss:$16 sps:$4 sm:$0xff]   ;;  %v10871_v6 = vld [vmem:[#allocation7 + $0x40] ss:$16 sps:$4 sm:$0xff]  }
 0x4c6   :  { %9497 = vpow2.f32 %v8074_v10  ;;  %v10857_v10 = vld [vmem:[#allocation7 + $0x20] ss:$16 sps:$4 sm:$0xff]   ;;  %v10865_v20 = vld [vmem:[#allocation7 + $0x4c] ss:$16 sps:$4 sm:$0xff]  }
 0x4c7   :  { %9499 = vpow2.f32 %v8075_v0  ;;  %v10863_v0 = vld [vmem:[#allocation7 + $0x44] ss:$16 sps:$4 sm:$0xff]  }
 0x4c8   :  { %9501 = vtanh.f32 %v8624_v23  ;;  %v10877_v23 = vld [vmem:[#allocation7 + $0x64] ss:$16 sps:$4 sm:$0xff]  }
 0x4c9   :  { %9503 = vpow2.f32 %v8073_v43  ;;  %v10883_v43 = vld [vmem:[#allocation7 + $0x60] ss:$16 sps:$4 sm:$0xff]  }
 0x4cb   :  { %v9490_v27 = vpop.eup %9489 }
 0x4cc   :  { %v3172_v7 = vmul.f32 %v9490_v27, %v9486_v28  ;;  %v10873_v28 = vld [vmem:[#allocation7 + $0x48] ss:$16 sps:$4 sm:$0xff]  }
 0x4cd   :  { %v9492_v62 = vpop.eup %9491  ;;  %v10885_v27 = vld [vmem:[#allocation7 + $0x68] ss:$16 sps:$4 sm:$0xff]  }
 0x4ce   :  { %v9494_v16 = vpop.eup %9493  ;;  %v3492_v13 = vadd.f32 1.0, %v9492_v62  ;;  %v10889_v62 = vld [vmem:[#allocation7 + $0x84] ss:$16 sps:$4 sm:$0xff]  }
 0x4cf   :  { %v3173_v2 = vmul.f32 %v9494_v16, %v9488_v63  ;;  %v9496_v21 = vpop.eup %9495  ;;  %v10879_v63 = vld [vmem:[#allocation7 + $0x6c] ss:$16 sps:$4 sm:$0xff]   ;;  %v10895_v16 = vld [vmem:[#allocation7 + $0x80] ss:$16 sps:$4 sm:$0xff]  }
 0x4d0   :  { %9505 = vrcp.f32 %v3492_v13  ;;  %v9498_v12 = vpop.eup %9497  ;;  %v3493_v8 = vadd.f32 1.0, %v9496_v21  ;;  %v10897_v13 = vld [vmem:[#allocation7 + $0x88] ss:$16 sps:$4 sm:$0xff]  }
 0x4d1   :  { %9507 = vpow2.f32 %v8076_v15  ;;  %v3174_v18 = vpack.c.bf16 %v3173_v2, %v3172_v7  ;;  %v3495_v11 = vadd.f32 1.0, %v9498_v12  ;;  %v9500_v1 = vpop.eup %9499  ;;  %v10891_v15 = vld [vmem:[#allocation7 + $0x8c] ss:$16 sps:$4 sm:$0xff]   ;;  %v10907_v2 = vld [vmem:[#allocation7 + $0xa0] ss:$16 sps:$4 sm:$0xff]  }
 0x4d2   :  { %9509 = vtanh.f32 %v8626_v9  ;;  %v3496_v19 = vadd.f32 1.0, %v9500_v1  ;;  %v9502_v17 = vpop.eup %9501  ;;  %v10901_v9 = vld [vmem:[#allocation7 + $0xa4] ss:$16 sps:$4 sm:$0xff]   ;;  %v10903_v7 = vld [vmem:[#allocation7 + $0xac] ss:$16 sps:$4 sm:$0xff]  }
 0x4d3   :  { %9511 = vrcp.f32 %v3493_v8  ;;  %3967 = vmatprep.mubr.bf16.mxu0 %v3174_v18  ;;  %4010 = vmatprep.mubr.bf16.mxu1 %v3174_v18  ;;  %v9504_v25 = vpop.eup %9503  ;;  %v10909_v21 = vld [vmem:[#allocation7 + $0xa8] ss:$16 sps:$4 sm:$0xff]   ;;  %v10913_v12 = vld [vmem:[#allocation7 + $0xc4] ss:$16 sps:$4 sm:$0xff]   ;;  %v10915_v8 = vld [vmem:[#allocation7 + $0xcc] ss:$16 sps:$4 sm:$0xff]  }
 0x4d4   :  { %9513 = vrcp.f32 %v3495_v11  ;;  %v3494_v35 = vadd.f32 1.0, %v9504_v25  ;;  %v10919_v18 = vld [vmem:[#allocation7 + $0xc0] ss:$16 sps:$4 sm:$0xff]   ;;  %v10921_v11 = vld [vmem:[#allocation7 + $0xc8] ss:$16 sps:$4 sm:$0xff]  }
 0x4d5   :  { %9515 = vrcp.f32 %v3496_v19  ;;  %v10925_v1 = vld [vmem:[#allocation7 + $0xe4] ss:$16 sps:$4 sm:$0xff]   ;;  %v10927_v19 = vld [vmem:[#allocation7 + $0xec] ss:$16 sps:$4 sm:$0xff]   ;;  %v10933_v25 = vld [vmem:[#allocation7 + $0xe8] ss:$16 sps:$4 sm:$0xff]  }
 0x4d6   :  { %9517 = vrcp.f32 %v3494_v35  ;;  %12187 = vst [vmem:[#allocation16_spill] sm:$0xff] %v10933_v25  ;;  %v10957_v35 = vld [vmem:[#allocation10 + $0x20] ss:$16 sps:$4 sm:$0xff]  }
 0x4d7   :  { %12194 = vst [vmem:[#allocation23_spill] sm:$0xff] %v10957_v35 }
 0x4da   :  { %v9506_v26 = vpop.eup %9505 }
 0x4db   :  { %v9508_v45 = vpop.eup %9507  ;;  %v3516_v29 = vmul.f32 %v9506_v26, %v9502_v17  ;;  %v10931_v17 = vld [vmem:[#allocation7 + $0xe0] ss:$16 sps:$4 sm:$0xff]   ;;  %v10941_v26 = vld [vmem:[#allocation10 + $0x4] ss:$16 sps:$4 sm:$0xff]  }
 0x4dc   :  { %v9510_v30 = vpop.eup %9509  ;;  %v3497_v52 = vadd.f32 1.0, %v9508_v45  ;;  %12188 = vst [vmem:[#allocation17_spill] sm:$0xff] %v10941_v26  ;;  %v10943_v45 = vld [vmem:[#allocation10 + $0xc] ss:$16 sps:$4 sm:$0xff]  }
 0x4dd   :  { %v9512_v31 = vpop.eup %9511  ;;  %12189 = vst [vmem:[#allocation18_spill] sm:$0xff] %v10943_v45 }
 0x4de   :  { %v9514_v32 = vpop.eup %9513  ;;  %v3514_v36 = vmul.f32 %v9512_v31, %v10703_v24  ;;  %v10953_v31 = vld [vmem:[#allocation10 + $0x24] ss:$16 sps:$4 sm:$0xff]  }
 0x4df   :  { %v3517_v37 = vmul.f32 %v9514_v32, %v9510_v30  ;;  %v9516_v46 = vpop.eup %9515  ;;  %v10947_v30 = vld [vmem:[#allocation10 + $0x8] ss:$16 sps:$4 sm:$0xff]   ;;  %12192 = vst [vmem:[#allocation21_spill] sm:$0xff] %v10953_v31  ;;  %v10955_v32 = vld [vmem:[#allocation10 + $0x2c] ss:$16 sps:$4 sm:$0xff]  }
 0x4e0   :  { %v10836_v41 = vadd.f32 %v3516_v29, %v3514_v36  ;;  %v3515_v38 = vmul.f32 %v9516_v46, %v10707_v5  ;;  %v9518_v4 = vpop.eup %9517  ;;  %v10849_v5 = vld [vmem:[#allocation7 + $0x24] ss:$16 sps:$4 sm:$0xff]   ;;  %v10945_v29 = vld [vmem:[#allocation10] ss:$16 sps:$4 sm:$0xff]   ;;  %12191 = vst [vmem:[#allocation20_spill] sm:$0xff] %v10947_v30  ;;  %12193 = vst [vmem:[#allocation22_spill] sm:$0xff] %v10955_v32 }
 0x4e1   :  { %12190 = vst [vmem:[#allocation19_spill] sm:$0xff] %v10945_v29  ;;  %v10959_v36 = vld [vmem:[#allocation10 + $0x28] ss:$16 sps:$4 sm:$0xff]   ;;  %v10967_v46 = vld [vmem:[#allocation10 + $0x4c] ss:$16 sps:$4 sm:$0xff]  }
 0x4e2   :  { %9519 = vtanh.f32 %v10836_v41  ;;  %v10840_v50 = vadd.f32 %v3517_v37, %v3515_v38  ;;  %12195 = vst [vmem:[#allocation24_spill] sm:$0xff] %v10959_v36  ;;  %v10965_v37 = vld [vmem:[#allocation10 + $0x44] ss:$16 sps:$4 sm:$0xff]   ;;  %12197 = vst [vmem:[#allocation26_spill] sm:$0xff] %v10967_v46  ;;  %v10971_v38 = vld [vmem:[#allocation10 + $0x48] ss:$16 sps:$4 sm:$0xff]  }
 0x4e3   :  { %9521 = vrcp.f32 %v3497_v52  ;;  %12196 = vst [vmem:[#allocation25_spill] sm:$0xff] %v10965_v37  ;;  %v10969_v52 = vld [vmem:[#allocation10 + $0x40] ss:$16 sps:$4 sm:$0xff]   ;;  %12199 = vst [vmem:[#allocation28_spill] sm:$0xff] %v10971_v38 }
 0x4e4   :  { %9523 = vtanh.f32 %v10840_v50  ;;  %12198 = vst [vmem:[#allocation27_spill] sm:$0xff] %v10969_v52 }
 0x4ec   :  { %v9520_v42 = vpop.eup %9519 }
 0x4ed   :  { %v9522_v53 = vpop.eup %9521  ;;  %v3522_v24 = vmul.f32 %v9520_v42, %v9518_v4  ;;  %v10977_v4 = vld [vmem:[#allocation10 + $0x64] ss:$16 sps:$4 sm:$0xff]   ;;  %v10979_v42 = vld [vmem:[#allocation10 + $0x6c] ss:$16 sps:$4 sm:$0xff]  }
 0x4ee   :  { %v9524_v3 = vpop.eup %9523  ;;  %12200 = vst [vmem:[#allocation29_spill] sm:$0xff] %v10977_v4  ;;  %12201 = vst [vmem:[#allocation30_spill] sm:$0xff] %v10979_v42 }
 0x4ef   :  { %v3523_v22 = vmul.f32 %v9524_v3, %v9522_v53  ;;  %v10981_v53 = vld [vmem:[#allocation10 + $0x60] ss:$16 sps:$4 sm:$0xff]   ;;  %v10983_v3 = vld [vmem:[#allocation10 + $0x68] ss:$16 sps:$4 sm:$0xff]  }
 0x4f0   :  { %12202 = vst [vmem:[#allocation31_spill] sm:$0xff] %v10981_v53  ;;  %12203 = vst [vmem:[#allocation32_spill] sm:$0xff] %v10983_v3 }
 0x4f1   :  { %v10847_v59 = vpack.c.bf16 %v3523_v22, %v3522_v24  ;;  %v10989_v24 = vld [vmem:[#allocation10 + $0x84] ss:$16 sps:$4 sm:$0xff]   ;;  %v10991_v22 = vld [vmem:[#allocation10 + $0x8c] ss:$16 sps:$4 sm:$0xff]  }
 0x4f2   :  { %12204 = vst [vmem:[#allocation33_spill] sm:$0xff] %v10989_v24  ;;  %12205 = vst [vmem:[#allocation34_spill] sm:$0xff] %v10991_v22 }
 0x4f3   :  { %3968 = vmatmul.mubr.bf16.vlgmr.msra.gmra.mrb[44].mxu0 %v10847_v59  ;;  %4011 = vmatmul.mubr.bf16.vlgmr.msra.gmra.mrb[44].mxu1 %v10847_v59 }
 0x4f4   :  { %4278 = vmatpush1.bf16.msra.mxu0 %v10843_v57  ;;  %4321 = vmatpush1.bf16.msra.mxu1 %v10845_v58 }
 0x4f5   :  { %4279 = vmatprep.subr.bf16.mxu0 %v10849_v5  ;;  %4322 = vmatprep.subr.bf16.mxu1 %v10851_v61 }
 0x4f6   :  { %4309 = vmatprep.mubr.bf16.mxu0 %v12029_v47  ;;  %4352 = vmatprep.mubr.bf16.mxu1 %v12029_v47 }
 0x4f8   :  { %4280 = vmatpush1.bf16.msra.mxu0 %v10857_v10  ;;  %4323 = vmatpush1.bf16.msra.mxu1 %v10859_v14 }
 0x4f9   :  { %4281 = vmatprep.subr.bf16.mxu0 %v10863_v0  ;;  %4324 = vmatprep.subr.bf16.mxu1 %v10865_v20 }
 0x4fc   :  { %4282 = vmatpush1.bf16.msra.mxu0 %v10871_v6  ;;  %4325 = vmatpush1.bf16.msra.mxu1 %v10873_v28 }
 0x4fd   :  { %4283 = vmatprep.subr.bf16.mxu0 %v10877_v23  ;;  %4326 = vmatprep.subr.bf16.mxu1 %v10879_v63 }
 0x500   :  { %4284 = vmatpush1.bf16.msra.mxu0 %v10883_v43  ;;  %4327 = vmatpush1.bf16.msra.mxu1 %v10885_v27 }
 0x501   :  { %4285 = vmatprep.subr.bf16.mxu0 %v10889_v62  ;;  %4328 = vmatprep.subr.bf16.mxu1 %v10891_v15 }
 0x504   :  { %4286 = vmatpush1.bf16.msra.mxu0 %v10895_v16  ;;  %4329 = vmatpush1.bf16.msra.mxu1 %v10897_v13 }
 0x505   :  { %4287 = vmatprep.subr.bf16.mxu0 %v10901_v9  ;;  %4330 = vmatprep.subr.bf16.mxu1 %v10903_v7 }
 0x508   :  { %4288 = vmatpush1.bf16.msra.mxu0 %v10907_v2  ;;  %4331 = vmatpush1.bf16.msra.mxu1 %v10909_v21 }
 0x509   :  { %4289 = vmatprep.subr.bf16.mxu0 %v10913_v12  ;;  %4332 = vmatprep.subr.bf16.mxu1 %v10915_v8 }
 0x50c   :  { %4290 = vmatpush1.bf16.msra.mxu0 %v10919_v18  ;;  %4333 = vmatpush1.bf16.msra.mxu1 %v10921_v11 }
 0x50d   :  { %4291 = vmatprep.subr.bf16.mxu0 %v10925_v1  ;;  %4334 = vmatprep.subr.bf16.mxu1 %v10927_v19 }
 0x510   :  { %4292 = vmatpush1.bf16.msra.mxu0 %v10931_v17  ;;  %4335 = vmatpush1.bf16.msra.mxu1 %v10933_v25 }
 0x511   :  { %4832 = vmatprep.subr.bf16.mxu0 %v10941_v26  ;;  %4875 = vmatprep.subr.bf16.mxu1 %v10943_v45 }
 0x513   :  { %4310 = vmatmul.mubr.bf16.vlgmr.msra.gmra.mrb[16].mxu0 %v10847_v59  ;;  %4353 = vmatmul.mubr.bf16.vlgmr.msra.gmra.mrb[16].mxu1 %v10847_v59  ;;  %v10993_v59 = vld [vmem:[#allocation10 + $0x80] ss:$16 sps:$4 sm:$0xff]  }
 0x514   :  { %4833 = vmatpush1.bf16.msra.mxu0 %v10945_v29  ;;  %4876 = vmatpush1.bf16.msra.mxu1 %v10947_v30  ;;  %12206 = vst [vmem:[#allocation35_spill] sm:$0xff] %v10993_v59 }
 0x515   :  { %4834 = vmatprep.subr.bf16.mxu0 %v10953_v31  ;;  %4877 = vmatprep.subr.bf16.mxu1 %v10955_v32 }
 0x518   :  { %4835 = vmatpush1.bf16.msra.mxu0 %v10957_v35  ;;  %4878 = vmatpush1.bf16.msra.mxu1 %v10959_v36 }
 0x519   :  { %4836 = vmatprep.subr.bf16.mxu0 %v10965_v37  ;;  %4879 = vmatprep.subr.bf16.mxu1 %v10967_v46 }
 0x51c   :  { %4837 = vmatpush1.bf16.msra.mxu0 %v10969_v52  ;;  %4880 = vmatpush1.bf16.msra.mxu1 %v10971_v38  ;;  %v10995_v38 = vld [vmem:[#allocation10 + $0x88] ss:$16 sps:$4 sm:$0xff]   ;;  %v11095_v52 = vld [vmem:[#allocation10 + $0x1a4] ss:$16 sps:$4 sm:$0xff]  }
 0x51d   :  { %4838 = vmatprep.subr.bf16.mxu0 %v10977_v4  ;;  %4881 = vmatprep.subr.bf16.mxu1 %v10979_v42  ;;  %12207 = vst [vmem:[#allocation38_spill] sm:$0xff] %v10995_v38  ;;  %v11001_v42 = vld [vmem:[#allocation10 + $0xa4] ss:$16 sps:$4 sm:$0xff]   ;;  %v11007_v4 = vld [vmem:[#allocation10 + $0xa8] ss:$16 sps:$4 sm:$0xff]   ;;  %12240 = vst [vmem:[#allocation71_spill] sm:$0xff] %v11095_v52 }
 0x51e   :  { %12208 = vst [vmem:[#allocation39_spill] sm:$0xff] %v11001_v42  ;;  %12211 = vst [vmem:[#allocation42_spill] sm:$0xff] %v11007_v4 }
 0x520   :  { %4839 = vmatpush1.bf16.msra.mxu0 %v10981_v53  ;;  %4882 = vmatpush1.bf16.msra.mxu1 %v10983_v3  ;;  %v11003_v53 = vld [vmem:[#allocation10 + $0xac] ss:$16 sps:$4 sm:$0xff]   ;;  %v11005_v3 = vld [vmem:[#allocation10 + $0xa0] ss:$16 sps:$4 sm:$0xff]  }
 0x521   :  { %4840 = vmatprep.subr.bf16.mxu0 %v10989_v24  ;;  %4883 = vmatprep.subr.bf16.mxu1 %v10991_v22  ;;  %12209 = vst [vmem:[#allocation40_spill] sm:$0xff] %v11003_v53  ;;  %12210 = vst [vmem:[#allocation41_spill] sm:$0xff] %v11005_v3  ;;  %v11013_v22 = vld [vmem:[#allocation10 + $0xc4] ss:$16 sps:$4 sm:$0xff]   ;;  %v11019_v24 = vld [vmem:[#allocation10 + $0xc8] ss:$16 sps:$4 sm:$0xff]  }
 0x522   :  { %12212 = vst [vmem:[#allocation43_spill] sm:$0xff] %v11013_v22  ;;  %12215 = vst [vmem:[#allocation46_spill] sm:$0xff] %v11019_v24 }
 0x524   :  { %4841 = vmatpush1.bf16.msra.mxu0 %v10993_v59  ;;  %4884 = vmatpush1.bf16.msra.mxu1 %v10995_v38  ;;  %v11015_v59 = vld [vmem:[#allocation10 + $0xcc] ss:$16 sps:$4 sm:$0xff]   ;;  %v11017_v38 = vld [vmem:[#allocation10 + $0xc0] ss:$16 sps:$4 sm:$0xff]  }
 0x525   :  { %4842 = vmatprep.subr.bf16.mxu0 %v11001_v42  ;;  %4885 = vmatprep.subr.bf16.mxu1 %v11003_v53  ;;  %12213 = vst [vmem:[#allocation44_spill] sm:$0xff] %v11015_v59  ;;  %12214 = vst [vmem:[#allocation45_spill] sm:$0xff] %v11017_v38  ;;  %v11025_v53 = vld [vmem:[#allocation10 + $0xe4] ss:$16 sps:$4 sm:$0xff]   ;;  %v11031_v42 = vld [vmem:[#allocation10 + $0xe8] ss:$16 sps:$4 sm:$0xff]  }
 0x526   :  { %12216 = vst [vmem:[#allocation47_spill] sm:$0xff] %v11025_v53  ;;  %12219 = vst [vmem:[#allocation50_spill] sm:$0xff] %v11031_v42 }
 0x528   :  { %4843 = vmatpush1.bf16.msra.mxu0 %v11005_v3  ;;  %4886 = vmatpush1.bf16.msra.mxu1 %v11007_v4  ;;  %v11027_v3 = vld [vmem:[#allocation10 + $0xec] ss:$16 sps:$4 sm:$0xff]   ;;  %v11029_v4 = vld [vmem:[#allocation10 + $0xe0] ss:$16 sps:$4 sm:$0xff]  }
 0x529   :  { %4844 = vmatprep.subr.bf16.mxu0 %v11013_v22  ;;  %4887 = vmatprep.subr.bf16.mxu1 %v11015_v59  ;;  %12217 = vst [vmem:[#allocation48_spill] sm:$0xff] %v11027_v3  ;;  %12218 = vst [vmem:[#allocation49_spill] sm:$0xff] %v11029_v4  ;;  %v11037_v59 = vld [vmem:[#allocation10 + $0x104] ss:$16 sps:$4 sm:$0xff]   ;;  %v11043_v22 = vld [vmem:[#allocation10 + $0x108] ss:$16 sps:$4 sm:$0xff]  }
 0x52a   :  { %12220 = vst [vmem:[#allocation51_spill] sm:$0xff] %v11037_v59  ;;  %12223 = vst [vmem:[#allocation54_spill] sm:$0xff] %v11043_v22 }
 0x52c   :  { %4845 = vmatpush1.bf16.msra.mxu0 %v11017_v38  ;;  %4888 = vmatpush1.bf16.msra.mxu1 %v11019_v24  ;;  %v11039_v38 = vld [vmem:[#allocation10 + $0x10c] ss:$16 sps:$4 sm:$0xff]   ;;  %v11041_v24 = vld [vmem:[#allocation10 + $0x100] ss:$16 sps:$4 sm:$0xff]  }
 0x52d   :  { %4846 = vmatprep.subr.bf16.mxu0 %v11025_v53  ;;  %4889 = vmatprep.subr.bf16.mxu1 %v11027_v3  ;;  %12221 = vst [vmem:[#allocation52_spill] sm:$0xff] %v11039_v38  ;;  %12222 = vst [vmem:[#allocation53_spill] sm:$0xff] %v11041_v24  ;;  %v11049_v3 = vld [vmem:[#allocation10 + $0x124] ss:$16 sps:$4 sm:$0xff]   ;;  %v11055_v53 = vld [vmem:[#allocation10 + $0x128] ss:$16 sps:$4 sm:$0xff]  }
 0x52e   :  { %12224 = vst [vmem:[#allocation55_spill] sm:$0xff] %v11049_v3  ;;  %12227 = vst [vmem:[#allocation58_spill] sm:$0xff] %v11055_v53 }
 0x530   :  { %4847 = vmatpush1.bf16.msra.mxu0 %v11029_v4  ;;  %4890 = vmatpush1.bf16.msra.mxu1 %v11031_v42  ;;  %v11051_v4 = vld [vmem:[#allocation10 + $0x12c] ss:$16 sps:$4 sm:$0xff]   ;;  %v11053_v42 = vld [vmem:[#allocation10 + $0x120] ss:$16 sps:$4 sm:$0xff]  }
 0x531   :  { %4848 = vmatprep.subr.bf16.mxu0 %v11037_v59  ;;  %4891 = vmatprep.subr.bf16.mxu1 %v11039_v38  ;;  %12225 = vst [vmem:[#allocation56_spill] sm:$0xff] %v11051_v4  ;;  %12226 = vst [vmem:[#allocation57_spill] sm:$0xff] %v11053_v42  ;;  %v11061_v38 = vld [vmem:[#allocation10 + $0x144] ss:$16 sps:$4 sm:$0xff]   ;;  %v11067_v59 = vld [vmem:[#allocation10 + $0x148] ss:$16 sps:$4 sm:$0xff]  }
 0x532   :  { %12228 = vst [vmem:[#allocation59_spill] sm:$0xff] %v11061_v38  ;;  %12231 = vst [vmem:[#allocation62_spill] sm:$0xff] %v11067_v59 }
 0x534   :  { %4849 = vmatpush1.bf16.msra.mxu0 %v11041_v24  ;;  %4892 = vmatpush1.bf16.msra.mxu1 %v11043_v22  ;;  %v11063_v24 = vld [vmem:[#allocation10 + $0x14c] ss:$16 sps:$4 sm:$0xff]   ;;  %v11065_v22 = vld [vmem:[#allocation10 + $0x140] ss:$16 sps:$4 sm:$0xff]  }
 0x535   :  { %4850 = vmatprep.subr.bf16.mxu0 %v11049_v3  ;;  %4893 = vmatprep.subr.bf16.mxu1 %v11051_v4  ;;  %12229 = vst [vmem:[#allocation60_spill] sm:$0xff] %v11063_v24  ;;  %12230 = vst [vmem:[#allocation61_spill] sm:$0xff] %v11065_v22  ;;  %v11073_v4 = vld [vmem:[#allocation10 + $0x164] ss:$16 sps:$4 sm:$0xff]   ;;  %v11079_v3 = vld [vmem:[#allocation10 + $0x168] ss:$16 sps:$4 sm:$0xff]  }
 0x536   :  { %12232 = vst [vmem:[#allocation63_spill] sm:$0xff] %v11073_v4  ;;  %12235 = vst [vmem:[#allocation66_spill] sm:$0xff] %v11079_v3 }
 0x538   :  { %4851 = vmatpush1.bf16.msra.mxu0 %v11053_v42  ;;  %4894 = vmatpush1.bf16.msra.mxu1 %v11055_v53  ;;  %v11075_v42 = vld [vmem:[#allocation10 + $0x16c] ss:$16 sps:$4 sm:$0xff]   ;;  %v11077_v53 = vld [vmem:[#allocation10 + $0x160] ss:$16 sps:$4 sm:$0xff]  }
 0x539   :  { %4852 = vmatprep.subr.bf16.mxu0 %v11061_v38  ;;  %4895 = vmatprep.subr.bf16.mxu1 %v11063_v24  ;;  %12233 = vst [vmem:[#allocation64_spill] sm:$0xff] %v11075_v42  ;;  %12234 = vst [vmem:[#allocation65_spill] sm:$0xff] %v11077_v53  ;;  %v11085_v24 = vld [vmem:[#allocation10 + $0x184] ss:$16 sps:$4 sm:$0xff]   ;;  %v11091_v38 = vld [vmem:[#allocation10 + $0x188] ss:$16 sps:$4 sm:$0xff]  }
 0x53a   :  { %12236 = vst [vmem:[#allocation67_spill] sm:$0xff] %v11085_v24  ;;  %12239 = vst [vmem:[#allocation70_spill] sm:$0xff] %v11091_v38 }
 0x53c   :  { %4853 = vmatpush1.bf16.msra.mxu0 %v11065_v22  ;;  %4896 = vmatpush1.bf16.msra.mxu1 %v11067_v59  ;;  %v11087_v22 = vld [vmem:[#allocation10 + $0x18c] ss:$16 sps:$4 sm:$0xff]   ;;  %v11089_v59 = vld [vmem:[#allocation10 + $0x180] ss:$16 sps:$4 sm:$0xff]  }
 0x53d   :  { %4854 = vmatprep.subr.bf16.mxu0 %v11073_v4  ;;  %4897 = vmatprep.subr.bf16.mxu1 %v11075_v42  ;;  %12237 = vst [vmem:[#allocation68_spill] sm:$0xff] %v11087_v22  ;;  %12238 = vst [vmem:[#allocation69_spill] sm:$0xff] %v11089_v59  ;;  %v11097_v4 = vld [vmem:[#allocation10 + $0x1ac] ss:$16 sps:$4 sm:$0xff]   ;;  %v11107_v42 = vld [vmem:[#allocation10 + $0x1c4] ss:$16 sps:$4 sm:$0xff]  }
 0x53e   :  { %12241 = vst [vmem:[#allocation72_spill] sm:$0xff] %v11097_v4  ;;  %12244 = vst [vmem:[#allocation75_spill] sm:$0xff] %v11107_v42 }
 0x540   :  { %4855 = vmatpush1.bf16.msra.mxu0 %v11077_v53  ;;  %4898 = vmatpush1.bf16.msra.mxu1 %v11079_v3  ;;  %v11101_v3 = vld [vmem:[#allocation10 + $0x1a0] ss:$16 sps:$4 sm:$0xff]   ;;  %v11103_v53 = vld [vmem:[#allocation10 + $0x1a8] ss:$16 sps:$4 sm:$0xff]  }
 0x541   :  { %4856 = vmatprep.subr.bf16.mxu0 %v11085_v24  ;;  %4899 = vmatprep.subr.bf16.mxu1 %v11087_v22  ;;  %12242 = vst [vmem:[#allocation73_spill] sm:$0xff] %v11101_v3  ;;  %12243 = vst [vmem:[#allocation74_spill] sm:$0xff] %v11103_v53  ;;  %v11109_v24 = vld [vmem:[#allocation10 + $0x1cc] ss:$16 sps:$4 sm:$0xff]   ;;  %v11113_v22 = vld [vmem:[#allocation10 + $0x1c0] ss:$16 sps:$4 sm:$0xff]  }
 0x542   :  { %12245 = vst [vmem:[#allocation76_spill] sm:$0xff] %v11109_v24  ;;  %12246 = vst [vmem:[#allocation77_spill] sm:$0xff] %v11113_v22 }
 0x544   :  { %4857 = vmatpush1.bf16.msra.mxu0 %v11089_v59  ;;  %4900 = vmatpush1.bf16.msra.mxu1 %v11091_v38  ;;  %v11115_v59 = vld [vmem:[#allocation10 + $0x1c8] ss:$16 sps:$4 sm:$0xff]   ;;  %v11119_v38 = vld [vmem:[#allocation10 + $0x1e4] ss:$16 sps:$4 sm:$0xff]  }
 0x545   :  { %4858 = vmatprep.subr.bf16.mxu0 %v11095_v52  ;;  %4901 = vmatprep.subr.bf16.mxu1 %v11097_v4  ;;  %12247 = vst [vmem:[#allocation78_spill] sm:$0xff] %v11115_v59  ;;  %12248 = vst [vmem:[#allocation79_spill] sm:$0xff] %v11119_v38  ;;  %v11121_v52 = vld [vmem:[#allocation10 + $0x1ec] ss:$16 sps:$4 sm:$0xff]   ;;  %v11125_v4 = vld [vmem:[#allocation10 + $0x1e0] ss:$16 sps:$4 sm:$0xff]  }
 0x546   :  { %12249 = vst [vmem:[#allocation80_spill] sm:$0xff] %v11121_v52  ;;  %12250 = vst [vmem:[#allocation81_spill] sm:$0xff] %v11125_v4 }
 0x548   :  { %4859 = vmatpush1.bf16.msra.mxu0 %v11101_v3  ;;  %4902 = vmatpush1.bf16.msra.mxu1 %v11103_v53  ;;  %v11127_v3 = vld [vmem:[#allocation10 + $0x1e8] ss:$16 sps:$4 sm:$0xff]  }
 0x549   :  { %4860 = vmatprep.subr.bf16.mxu0 %v11107_v42  ;;  %4903 = vmatprep.subr.bf16.mxu1 %v11109_v24  ;;  %12251 = vst [vmem:[#allocation82_spill] sm:$0xff] %v11127_v3 }
 0x54c   :  { %4861 = vmatpush1.bf16.msra.mxu0 %v11113_v22  ;;  %4904 = vmatpush1.bf16.msra.mxu1 %v11115_v59  ;;  %v3593_v59 = vld [vmem:[%s11769_s5] sm:$0xf] }
 0x54d   :  { %4862 = vmatprep.subr.bf16.mxu0 %v11119_v38  ;;  %4905 = vmatprep.subr.bf16.mxu1 %v11121_v52  ;;  %v3598_v22 = vrot.slane %v3593_v59, %v12185_v49  ;;  %v3602_v24 = vrot.slane %v3593_v59, %v12186_v39  ;;  %v3606_v32 = vrot.slane %v3593_v59, %v12052_v34 }
 0x54e   :  { %v3610_v39 = vrot.slane %v3593_v59, %v10265_v51 }
 0x550   :  { %4863 = vmatpush1.bf16.msra.mxu0 %v11125_v4  ;;  %4906 = vmatpush1.bf16.msra.mxu1 %v11127_v3 }
 0x551   :  { %5174 = vmatprep.subr.bf16.mxu0 %v10806_v44  ;;  %5217 = vmatprep.subr.bf16.mxu1 %v10808_v56 }
 0x5c6   :  { %v3969_v42 = vpop.f32.mrb[44].mxu0  ;;  %v4012_v38 = vpop.f32.mrb[44].mxu1 }
 0x5c7   :  { %v3970_v53 = vadd.f32 %v3969_v42, %v3598_v22  ;;  %v3971_v52 = vpop.f32.mrb[45].mxu0  ;;  %v4014_v46 = vpop.f32.mrb[45].mxu1  ;;  %v4013_v42 = vadd.f32 %v4012_v38, %v3606_v32 }
 0x5c8   :  { %v3972_v4 = vadd.f32 %v3971_v52, %v3602_v24  ;;  %v3973_v37 = vpop.f32.mrb[46].mxu0  ;;  %v4016_v3 = vpop.f32.mrb[46].mxu1  ;;  %v4015_v52 = vadd.f32 %v4014_v46, %v3610_v39 }
 0x5c9   :  { %v8141_v36 = vmul.f32 -1.442695, %v3970_v53  ;;  %v3974_v44 = vadd.f32 %v3973_v37, %v3598_v22  ;;  %v3975_v35 = vpop.f32.mrb[47].mxu0  ;;  %v4018_v56 = vpop.f32.mrb[47].mxu1  ;;  %v4017_v45 = vadd.f32 %v4016_v3, %v3606_v32  ;;  %v8143_v26 = vmul.f32 -1.442695, %v4013_v42 }
 0x5ca   :  { %v8142_v31 = vmul.f32 -1.442695, %v3972_v4  ;;  %v3976_v30 = vadd.f32 %v3975_v35, %v3602_v24  ;;  %v4019_v22 = vadd.f32 %v4018_v56, %v3610_v39 }
 0x5cb   :  { %9525 = vpow2.f32 %v8141_v36  ;;  %v8144_v49 = vmul.f32 -1.442695, %v3974_v44  ;;  %v8146_v53 = vmul.f32 -1.442695, %v4017_v45 }
 0x5cc   :  { %v8145_v29 = vmul.f32 -1.442695, %v3976_v30  ;;  %9527 = vpow2.f32 %v8142_v31 }
 0x5cd   :  { %9529 = vpow2.f32 %v8144_v49 }
 0x5ce   :  { %9531 = vpow2.f32 %v8145_v29 }
 0x5cf   :  { %9533 = vtanh.f32 %v4015_v52 }
 0x5d0   :  { %9535 = vpow2.f32 %v8143_v26 }
 0x5d1   :  { %9537 = vpow2.f32 %v8146_v53 }
 0x5d5   :  { %v9526_v37 = vpop.eup %9525 }
 0x5d6   :  { %v4039_v25 = vadd.f32 1.0, %v9526_v37  ;;  %v9528_v4 = vpop.eup %9527 }
 0x5d7   :  { %v9530_v35 = vpop.eup %9529  ;;  %v4040_v30 = vadd.f32 1.0, %v9528_v4 }
 0x5d8   :  { %9539 = vrcp.f32 %v4039_v25  ;;  %v4042_v31 = vadd.f32 1.0, %v9530_v35  ;;  %v9532_v36 = vpop.eup %9531 }
 0x5d9   :  { %9541 = vtanh.f32 %v4019_v22  ;;  %v4043_v49 = vadd.f32 1.0, %v9532_v36  ;;  %v9534_v29 = vpop.eup %9533 }
 0x5da   :  { %9543 = vrcp.f32 %v4040_v30  ;;  %v9536_v32 = vpop.eup %9535 }
 0x5db   :  { %9545 = vrcp.f32 %v4042_v31  ;;  %v9538_v45 = vpop.eup %9537  ;;  %v4041_v26 = vadd.f32 1.0, %v9536_v32 }
 0x5dc   :  { %9547 = vrcp.f32 %v4043_v49  ;;  %v4044_v25 = vadd.f32 1.0, %v9538_v45 }
 0x5dd   :  { %9549 = vrcp.f32 %v4041_v26 }
 0x5de   :  { %9551 = vrcp.f32 %v4044_v25 }
 0x5e2   :  { %v9540_v46 = vpop.eup %9539 }
 0x5e3   :  { %v9542_v38 = vpop.eup %9541  ;;  %v4063_v39 = vmul.f32 %v9540_v46, %v9534_v29 }
 0x5e4   :  { %v9544_v3 = vpop.eup %9543 }
 0x5e5   :  { %v9546_v24 = vpop.eup %9545  ;;  %v4061_v59 = vmul.f32 %v9544_v3, %v10820_v40 }
 0x5e6   :  { %v4064_v44 = vmul.f32 %v9546_v24, %v9542_v38  ;;  %v4311_v56 = vpop.f32.mrb[16].mxu0  ;;  %v4354_v42 = vpop.f32.mrb[16].mxu1 }
 0x5e7   :  { %v9548_v52 = vpop.eup %9547  ;;  %v11143_v53 = vadd.f32 %v4063_v39, %v4061_v59  ;;  %v8595_v37 = vadd.f32 %v4311_v56, %v10251_v54  ;;  %v4313_v22 = vpop.f32.mrb[17].mxu0  ;;  %v8627_v3 = vadd.f32 %v4354_v42, %v12053_v33 }
 0x5e8   :  { %v4356_v4 = vpop.f32.mrb[17].mxu1  ;;  %v4062_v35 = vmul.f32 %v9548_v52, %v10827_v60  ;;  %v8596_v30 = vadd.f32 %v4313_v22, %v10254_v55  ;;  %v4315_v31 = vpop.f32.mrb[18].mxu0 }
 0x5e9   :  { %v4358_v36 = vpop.f32.mrb[18].mxu1  ;;  %v8179_v40 = vmul.f32 -1.442695, %v8595_v37  ;;  %v8597_v49 = vadd.f32 %v4315_v31, %v10251_v54  ;;  %v4317_v29 = vpop.f32.mrb[19].mxu0  ;;  %9553 = vtanh.f32 %v11143_v53  ;;  %v8628_v59 = vadd.f32 %v4356_v4, %v12054_v48 }
 0x5ea   :  { %v4360_v32 = vpop.f32.mrb[19].mxu1  ;;  %v11150_v45 = vadd.f32 %v4064_v44, %v4062_v35  ;;  %v8180_v46 = vmul.f32 -1.442695, %v8596_v30  ;;  %v8598_v39 = vadd.f32 %v4317_v29, %v10254_v55  ;;  %v8629_v26 = vadd.f32 %v4358_v36, %v12053_v33  ;;  %v9550_v24 = vpop.eup %9549 }
 0x5eb   :  { %9555 = vpow2.f32 %v8179_v40  ;;  %v8182_v38 = vmul.f32 -1.442695, %v8597_v49  ;;  %v9552_v25 = vpop.eup %9551  ;;  %v8181_v44 = vmul.f32 -1.442695, %v8627_v3  ;;  %v8630_v30 = vadd.f32 %v4360_v32, %v12054_v48 }
 0x5ec   :  { %9557 = vtanh.f32 %v11150_v45  ;;  %v8183_v60 = vmul.f32 -1.442695, %v8598_v39  ;;  %v8184_v37 = vmul.f32 -1.442695, %v8629_v26 }
 0x5ed   :  { %9559 = vpow2.f32 %v8180_v46 }
 0x5ee   :  { %9561 = vpow2.f32 %v8182_v38 }
 0x5ef   :  { %9563 = vpow2.f32 %v8183_v60 }
 0x5f0   :  { %9565 = vtanh.f32 %v8628_v59 }
 0x5f1   :  { %9567 = vpow2.f32 %v8181_v44 }
 0x5f3   :  { %v9554_v56 = vpop.eup %9553 }
 0x5f4   :  { %v4069_v31 = vmul.f32 %v9554_v56, %v9550_v24 }
 0x5f5   :  { %v9556_v52 = vpop.eup %9555 }
 0x5f6   :  { %v9558_v22 = vpop.eup %9557  ;;  %v4389_v35 = vadd.f32 1.0, %v9556_v52 }
 0x5f7   :  { %v4070_v42 = vmul.f32 %v9558_v22, %v9552_v25  ;;  %v9560_v40 = vpop.eup %9559 }
 0x5f8   :  { %9569 = vrcp.f32 %v4389_v35  ;;  %v9562_v36 = vpop.eup %9561  ;;  %v4390_v49 = vadd.f32 1.0, %v9560_v40 }
 0x5f9   :  { %9571 = vpow2.f32 %v8184_v37  ;;  %v4071_v29 = vpack.c.bf16 %v4070_v42, %v4069_v31  ;;  %v4392_v4 = vadd.f32 1.0, %v9562_v36  ;;  %v9564_v46 = vpop.eup %9563 }
 0x5fa   :  { %9573 = vtanh.f32 %v8630_v30  ;;  %v4393_v38 = vadd.f32 1.0, %v9564_v46  ;;  %v9566_v39 = vpop.eup %9565  ;;  %v12282_v46 = vld [vmem:[#allocation48_spill] sm:$0xff] }
 0x5fb   :  { %9575 = vrcp.f32 %v4390_v49  ;;  %4864 = vmatprep.mubr.bf16.mxu0 %v4071_v29  ;;  %4907 = vmatprep.mubr.bf16.mxu1 %v4071_v29  ;;  %v9568_v32 = vpop.eup %9567 }
 0x5fc   :  { %9577 = vrcp.f32 %v4392_v4  ;;  %v4391_v44 = vadd.f32 1.0, %v9568_v32  ;;  %v12285_v32 = vld [vmem:[#allocation51_spill] sm:$0xff] }
 0x5fd   :  { %9579 = vrcp.f32 %v4393_v38  ;;  %v12283_v38 = vld [vmem:[#allocation49_spill] sm:$0xff] }
 0x5fe   :  { %9581 = vrcp.f32 %v4391_v44  ;;  %v12292_v44 = vld [vmem:[#allocation58_spill] sm:$0xff] }
 0x602   :  { %v9570_v60 = vpop.eup %9569 }
 0x603   :  { %v9572_v3 = vpop.eup %9571  ;;  %v4413_v26 = vmul.f32 %v9570_v60, %v9566_v39  ;;  %v12284_v39 = vld [vmem:[#allocation50_spill] sm:$0xff]  ;;  %v12286_v60 = vld [vmem:[#allocation52_spill] sm:$0xff] }
 0x604   :  { %v9574_v24 = vpop.eup %9573  ;;  %v4394_v35 = vadd.f32 1.0, %v9572_v3  ;;  %v12287_v3 = vld [vmem:[#allocation53_spill] sm:$0xff] }
 0x605   :  { %v9576_v59 = vpop.eup %9575 }
 0x606   :  { %v9578_v25 = vpop.eup %9577  ;;  %v4411_v56 = vmul.f32 %v9576_v59, %v10836_v41  ;;  %v12290_v59 = vld [vmem:[#allocation56_spill] sm:$0xff] }
 0x607   :  { %v4414_v52 = vmul.f32 %v9578_v25, %v9574_v24  ;;  %v9580_v37 = vpop.eup %9579  ;;  %v12289_v24 = vld [vmem:[#allocation55_spill] sm:$0xff]  ;;  %v12291_v25 = vld [vmem:[#allocation57_spill] sm:$0xff] }
 0x608   :  { %v11159_v22 = vadd.f32 %v4413_v26, %v4411_v56  ;;  %v4412_v30 = vmul.f32 %v9580_v37, %v10840_v50  ;;  %v9582_v42 = vpop.eup %9581  ;;  %v12252_v50 = vld [vmem:[#allocation16_spill] sm:$0xff]  ;;  %v12288_v26 = vld [vmem:[#allocation54_spill] sm:$0xff]  ;;  %v12293_v56 = vld [vmem:[#allocation59_spill] sm:$0xff] }
 0x609   :  { %v12295_v37 = vld [vmem:[#allocation61_spill] sm:$0xff] }
 0x60a   :  { %9583 = vtanh.f32 %v11159_v22  ;;  %v11163_v31 = vadd.f32 %v4414_v52, %v4412_v30  ;;  %v12294_v52 = vld [vmem:[#allocation60_spill] sm:$0xff]  ;;  %v12297_v30 = vld [vmem:[#allocation63_spill] sm:$0xff] }
 0x60b   :  { %9585 = vrcp.f32 %v4394_v35  ;;  %v12296_v35 = vld [vmem:[#allocation62_spill] sm:$0xff] }
 0x60c   :  { %9587 = vtanh.f32 %v11163_v31 }
 0x614   :  { %v9584_v40 = vpop.eup %9583 }
 0x615   :  { %v9586_v36 = vpop.eup %9585  ;;  %v4419_v41 = vmul.f32 %v9584_v40, %v9582_v42  ;;  %v12298_v42 = vld [vmem:[#allocation64_spill] sm:$0xff]  ;;  %v12299_v40 = vld [vmem:[#allocation65_spill] sm:$0xff] }
 0x616   :  { %v9588_v49 = vpop.eup %9587 }
 0x617   :  { %v4420_v29 = vmul.f32 %v9588_v49, %v9586_v36  ;;  %v12300_v36 = vld [vmem:[#allocation66_spill] sm:$0xff]  ;;  %v12301_v49 = vld [vmem:[#allocation67_spill] sm:$0xff] }
 0x619   :  { %v4421_v4 = vpack.c.bf16 %v4420_v29, %v4419_v41  ;;  %v12302_v41 = vld [vmem:[#allocation68_spill] sm:$0xff]  ;;  %v12303_v29 = vld [vmem:[#allocation69_spill] sm:$0xff] }
 0x61b   :  { %4865 = vmatmul.mubr.bf16.vlgmr.msra.gmra.mrb[48].mxu0 %v4421_v4  ;;  %4908 = vmatmul.mubr.bf16.vlgmr.msra.gmra.mrb[48].mxu1 %v4421_v4 }
 0x61c   :  { %5175 = vmatpush1.bf16.msra.mxu0 %v10843_v57  ;;  %5218 = vmatpush1.bf16.msra.mxu1 %v10845_v58  ;;  %v12253_v57 = vld [vmem:[#allocation17_spill] sm:$0xff]  ;;  %v12254_v58 = vld [vmem:[#allocation18_spill] sm:$0xff] }
 0x61d   :  { %5176 = vmatprep.subr.bf16.mxu0 %v10849_v5  ;;  %5219 = vmatprep.subr.bf16.mxu1 %v10851_v61  ;;  %v12255_v5 = vld [vmem:[#allocation19_spill] sm:$0xff]  ;;  %v12256_v61 = vld [vmem:[#allocation20_spill] sm:$0xff] }
 0x61e   :  { %5206 = vmatprep.mubr.bf16.mxu0 %v12029_v47  ;;  %5249 = vmatprep.mubr.bf16.mxu1 %v12029_v47 }
 0x620   :  { %5177 = vmatpush1.bf16.msra.mxu0 %v10857_v10  ;;  %5220 = vmatpush1.bf16.msra.mxu1 %v10859_v14  ;;  %v12257_v10 = vld [vmem:[#allocation21_spill] sm:$0xff]  ;;  %v12258_v14 = vld [vmem:[#allocation22_spill] sm:$0xff] }
 0x621   :  { %5178 = vmatprep.subr.bf16.mxu0 %v10863_v0  ;;  %5221 = vmatprep.subr.bf16.mxu1 %v10865_v20  ;;  %v12259_v0 = vld [vmem:[#allocation23_spill] sm:$0xff]  ;;  %v12260_v20 = vld [vmem:[#allocation24_spill] sm:$0xff] }
 0x624   :  { %5179 = vmatpush1.bf16.msra.mxu0 %v10871_v6  ;;  %5222 = vmatpush1.bf16.msra.mxu1 %v10873_v28  ;;  %v12261_v6 = vld [vmem:[#allocation25_spill] sm:$0xff]  ;;  %v12262_v28 = vld [vmem:[#allocation26_spill] sm:$0xff] }
 0x625   :  { %5180 = vmatprep.subr.bf16.mxu0 %v10877_v23  ;;  %5223 = vmatprep.subr.bf16.mxu1 %v10879_v63  ;;  %v12263_v23 = vld [vmem:[#allocation27_spill] sm:$0xff]  ;;  %v12264_v63 = vld [vmem:[#allocation28_spill] sm:$0xff] }
 0x628   :  { %5181 = vmatpush1.bf16.msra.mxu0 %v10883_v43  ;;  %5224 = vmatpush1.bf16.msra.mxu1 %v10885_v27  ;;  %v12265_v43 = vld [vmem:[#allocation29_spill] sm:$0xff]  ;;  %v12266_v27 = vld [vmem:[#allocation30_spill] sm:$0xff] }
 0x629   :  { %5182 = vmatprep.subr.bf16.mxu0 %v10889_v62  ;;  %5225 = vmatprep.subr.bf16.mxu1 %v10891_v15  ;;  %v12267_v62 = vld [vmem:[#allocation31_spill] sm:$0xff]  ;;  %v12268_v15 = vld [vmem:[#allocation32_spill] sm:$0xff] }
 0x62c   :  { %5183 = vmatpush1.bf16.msra.mxu0 %v10895_v16  ;;  %5226 = vmatpush1.bf16.msra.mxu1 %v10897_v13  ;;  %v12269_v16 = vld [vmem:[#allocation33_spill] sm:$0xff]  ;;  %v12270_v13 = vld [vmem:[#allocation34_spill] sm:$0xff] }
 0x62d   :  { %5184 = vmatprep.subr.bf16.mxu0 %v10901_v9  ;;  %5227 = vmatprep.subr.bf16.mxu1 %v10903_v7  ;;  %v12271_v9 = vld [vmem:[#allocation35_spill] sm:$0xff]  ;;  %v12272_v7 = vld [vmem:[#allocation38_spill] sm:$0xff] }
 0x630   :  { %5185 = vmatpush1.bf16.msra.mxu0 %v10907_v2  ;;  %5228 = vmatpush1.bf16.msra.mxu1 %v10909_v21  ;;  %v12273_v2 = vld [vmem:[#allocation39_spill] sm:$0xff]  ;;  %v12274_v21 = vld [vmem:[#allocation40_spill] sm:$0xff] }
 0x631   :  { %5186 = vmatprep.subr.bf16.mxu0 %v10913_v12  ;;  %5229 = vmatprep.subr.bf16.mxu1 %v10915_v8  ;;  %v12275_v12 = vld [vmem:[#allocation41_spill] sm:$0xff]  ;;  %v12276_v8 = vld [vmem:[#allocation42_spill] sm:$0xff] }
 0x634   :  { %5187 = vmatpush1.bf16.msra.mxu0 %v10919_v18  ;;  %5230 = vmatpush1.bf16.msra.mxu1 %v10921_v11  ;;  %v12277_v18 = vld [vmem:[#allocation43_spill] sm:$0xff]  ;;  %v12278_v11 = vld [vmem:[#allocation44_spill] sm:$0xff] }
 0x635   :  { %5188 = vmatprep.subr.bf16.mxu0 %v10925_v1  ;;  %5231 = vmatprep.subr.bf16.mxu1 %v10927_v19  ;;  %v12279_v1 = vld [vmem:[#allocation45_spill] sm:$0xff]  ;;  %v12280_v19 = vld [vmem:[#allocation46_spill] sm:$0xff] }
 0x638   :  { %5189 = vmatpush1.bf16.msra.mxu0 %v10931_v17  ;;  %5232 = vmatpush1.bf16.msra.mxu1 %v12252_v50  ;;  %v12281_v17 = vld [vmem:[#allocation47_spill] sm:$0xff] }
 0x639   :  { %5729 = vmatprep.subr.bf16.mxu0 %v12253_v57  ;;  %5772 = vmatprep.subr.bf16.mxu1 %v12254_v58  ;;  %v12305_v50 = vld [vmem:[#allocation71_spill] sm:$0xff]  ;;  %v12306_v57 = vld [vmem:[#allocation72_spill] sm:$0xff]  ;;  %v12307_v58 = vld [vmem:[#allocation73_spill] sm:$0xff] }
 0x63b   :  { %5207 = vmatmul.mubr.bf16.vlgmr.msra.gmra.mrb[20].mxu0 %v4421_v4  ;;  %5250 = vmatmul.mubr.bf16.vlgmr.msra.gmra.mrb[20].mxu1 %v4421_v4  ;;  %v12304_v4 = vld [vmem:[#allocation70_spill] sm:$0xff] }
 0x63c   :  { %5730 = vmatpush1.bf16.msra.mxu0 %v12255_v5  ;;  %5773 = vmatpush1.bf16.msra.mxu1 %v12256_v61  ;;  %v12308_v5 = vld [vmem:[#allocation74_spill] sm:$0xff]  ;;  %v12309_v61 = vld [vmem:[#allocation75_spill] sm:$0xff] }
 0x63d   :  { %5731 = vmatprep.subr.bf16.mxu0 %v12257_v10  ;;  %5774 = vmatprep.subr.bf16.mxu1 %v12258_v14  ;;  %v12310_v10 = vld [vmem:[#allocation76_spill] sm:$0xff]  ;;  %v12311_v14 = vld [vmem:[#allocation77_spill] sm:$0xff] }
 0x640   :  { %5732 = vmatpush1.bf16.msra.mxu0 %v12259_v0  ;;  %5775 = vmatpush1.bf16.msra.mxu1 %v12260_v20  ;;  %v12312_v0 = vld [vmem:[#allocation78_spill] sm:$0xff]  ;;  %v12313_v20 = vld [vmem:[#allocation79_spill] sm:$0xff] }
 0x641   :  { %5733 = vmatprep.subr.bf16.mxu0 %v12261_v6  ;;  %5776 = vmatprep.subr.bf16.mxu1 %v12262_v28  ;;  %v12314_v6 = vld [vmem:[#allocation80_spill] sm:$0xff]  ;;  %v12315_v28 = vld [vmem:[#allocation81_spill] sm:$0xff] }
 0x644   :  { %5734 = vmatpush1.bf16.msra.mxu0 %v12263_v23  ;;  %5777 = vmatpush1.bf16.msra.mxu1 %v12264_v63  ;;  %v12316_v23 = vld [vmem:[#allocation82_spill] sm:$0xff] }
 0x645   :  { %5735 = vmatprep.subr.bf16.mxu0 %v12265_v43  ;;  %5778 = vmatprep.subr.bf16.mxu1 %v12266_v27  ;;  %v11262_v63 = vld [vmem:[#allocation7 + $0x4] ss:$16 sps:$4 sm:$0xff]   ;;  %v11264_v43 = vld [vmem:[#allocation7 + $0xc] ss:$16 sps:$4 sm:$0xff]   ;;  %v4490_v27 = vld [vmem:[%s11769_s5] sm:$0xf] }
 0x648   :  { %5736 = vmatpush1.bf16.msra.mxu0 %v12267_v62  ;;  %5779 = vmatpush1.bf16.msra.mxu1 %v12268_v15  ;;  %v12317_v62 = vld [vmem:[#allocation36_spill] sm:$0xff] }
 0x649   :  { %5737 = vmatprep.subr.bf16.mxu0 %v12269_v16  ;;  %5780 = vmatprep.subr.bf16.mxu1 %v12270_v13  ;;  %v4495_v15 = vrot.slane %v4490_v27, %v12317_v62  ;;  %v12318_v16 = vld [vmem:[#allocation37_spill] sm:$0xff] }
 0x64a   :  { %v4499_v13 = vrot.slane %v4490_v27, %v12318_v16 }
 0x64c   :  { %5738 = vmatpush1.bf16.msra.mxu0 %v12271_v9  ;;  %5781 = vmatpush1.bf16.msra.mxu1 %v12272_v7 }
 0x64d   :  { %5739 = vmatprep.subr.bf16.mxu0 %v12273_v2  ;;  %5782 = vmatprep.subr.bf16.mxu1 %v12274_v21 }
 0x650   :  { %5740 = vmatpush1.bf16.msra.mxu0 %v12275_v12  ;;  %5783 = vmatpush1.bf16.msra.mxu1 %v12276_v8 }
 0x651   :  { %5741 = vmatprep.subr.bf16.mxu0 %v12277_v18  ;;  %5784 = vmatprep.subr.bf16.mxu1 %v12278_v11 }
 0x654   :  { %5742 = vmatpush1.bf16.msra.mxu0 %v12279_v1  ;;  %5785 = vmatpush1.bf16.msra.mxu1 %v12280_v19 }
 0x655   :  { %5743 = vmatprep.subr.bf16.mxu0 %v12281_v17  ;;  %5786 = vmatprep.subr.bf16.mxu1 %v12282_v46 }
 0x658   :  { %5744 = vmatpush1.bf16.msra.mxu0 %v12283_v38  ;;  %5787 = vmatpush1.bf16.msra.mxu1 %v12284_v39  ;;  %v4503_v38 = vrot.slane %v4490_v27, %v12052_v34 }
 0x659   :  { %5745 = vmatprep.subr.bf16.mxu0 %v12285_v32  ;;  %5788 = vmatprep.subr.bf16.mxu1 %v12286_v60 }
 0x65c   :  { %5746 = vmatpush1.bf16.msra.mxu0 %v12287_v3  ;;  %5789 = vmatpush1.bf16.msra.mxu1 %v12288_v26  ;;  %v4507_v26 = vrot.slane %v4490_v27, %v10265_v51 }
 0x65d   :  { %5747 = vmatprep.subr.bf16.mxu0 %v12289_v24  ;;  %5790 = vmatprep.subr.bf16.mxu1 %v12290_v59 }
 0x660   :  { %5748 = vmatpush1.bf16.msra.mxu0 %v12291_v25  ;;  %5791 = vmatpush1.bf16.msra.mxu1 %v12292_v44 }
 0x661   :  { %5749 = vmatprep.subr.bf16.mxu0 %v12293_v56  ;;  %5792 = vmatprep.subr.bf16.mxu1 %v12294_v52 }
 0x664   :  { %5750 = vmatpush1.bf16.msra.mxu0 %v12295_v37  ;;  %5793 = vmatpush1.bf16.msra.mxu1 %v12296_v35 }
 0x665   :  { %5751 = vmatprep.subr.bf16.mxu0 %v12297_v30  ;;  %5794 = vmatprep.subr.bf16.mxu1 %v12298_v42 }
 0x668   :  { %5752 = vmatpush1.bf16.msra.mxu0 %v12299_v40  ;;  %5795 = vmatpush1.bf16.msra.mxu1 %v12300_v36 }
 0x669   :  { %5753 = vmatprep.subr.bf16.mxu0 %v12301_v49  ;;  %5796 = vmatprep.subr.bf16.mxu1 %v12302_v41 }
 0x66c   :  { %5754 = vmatpush1.bf16.msra.mxu0 %v12303_v29  ;;  %5797 = vmatpush1.bf16.msra.mxu1 %v12304_v4 }
 0x66d   :  { %5755 = vmatprep.subr.bf16.mxu0 %v12305_v50  ;;  %5798 = vmatprep.subr.bf16.mxu1 %v12306_v57 }
 0x670   :  { %5756 = vmatpush1.bf16.msra.mxu0 %v12307_v58  ;;  %5799 = vmatpush1.bf16.msra.mxu1 %v12308_v5 }
 0x671   :  { %5757 = vmatprep.subr.bf16.mxu0 %v12309_v61  ;;  %5800 = vmatprep.subr.bf16.mxu1 %v12310_v10 }
 0x674   :  { %5758 = vmatpush1.bf16.msra.mxu0 %v12311_v14  ;;  %5801 = vmatpush1.bf16.msra.mxu1 %v12312_v0 }
 0x675   :  { %5759 = vmatprep.subr.bf16.mxu0 %v12313_v20  ;;  %5802 = vmatprep.subr.bf16.mxu1 %v12314_v6 }
 0x678   :  { %5760 = vmatpush1.bf16.msra.mxu0 %v12315_v28  ;;  %5803 = vmatpush1.bf16.msra.mxu1 %v12316_v23 }
 0x679   :  { %6071 = vmatprep.subr.bf16.mxu0 %v11262_v63  ;;  %6114 = vmatprep.subr.bf16.mxu1 %v11264_v43 }
 0x6ee   :  { %v4866_v9 = vpop.f32.mrb[48].mxu0  ;;  %v4909_v7 = vpop.f32.mrb[48].mxu1 }
 0x6ef   :  { %v4867_v2 = vadd.f32 %v4866_v9, %v4495_v15  ;;  %v4868_v21 = vpop.f32.mrb[49].mxu0  ;;  %v4911_v12 = vpop.f32.mrb[49].mxu1  ;;  %v4910_v24 = vadd.f32 %v4909_v7, %v4503_v38 }
 0x6f0   :  { %v4869_v8 = vadd.f32 %v4868_v21, %v4499_v13  ;;  %v4870_v18 = vpop.f32.mrb[50].mxu0  ;;  %v4913_v11 = vpop.f32.mrb[50].mxu1  ;;  %v4912_v25 = vadd.f32 %v4911_v12, %v4507_v26 }
 0x6f1   :  { %v8249_v1 = vmul.f32 -1.442695, %v4867_v2  ;;  %v4871_v19 = vadd.f32 %v4870_v18, %v4495_v15  ;;  %v4872_v17 = vpop.f32.mrb[51].mxu0  ;;  %v4915_v46 = vpop.f32.mrb[51].mxu1  ;;  %v4914_v59 = vadd.f32 %v4913_v11, %v4503_v38  ;;  %v8251_v44 = vmul.f32 -1.442695, %v4910_v24 }
 0x6f2   :  { %v8250_v39 = vmul.f32 -1.442695, %v4869_v8  ;;  %v4873_v32 = vadd.f32 %v4872_v17, %v4499_v13  ;;  %v4916_v37 = vadd.f32 %v4915_v46, %v4507_v26 }
 0x6f3   :  { %9589 = vpow2.f32 %v8249_v1  ;;  %v8252_v60 = vmul.f32 -1.442695, %v4871_v19  ;;  %v8254_v56 = vmul.f32 -1.442695, %v4914_v59 }
 0x6f4   :  { %v8253_v3 = vmul.f32 -1.442695, %v4873_v32  ;;  %9591 = vpow2.f32 %v8250_v39 }
 0x6f5   :  { %9593 = vpow2.f32 %v8252_v60 }
 0x6f6   :  { %9595 = vpow2.f32 %v8253_v3 }
 0x6f7   :  { %9597 = vtanh.f32 %v4912_v25 }
 0x6f8   :  { %9599 = vpow2.f32 %v8251_v44 }
 0x6f9   :  { %9601 = vpow2.f32 %v8254_v56 }
 0x6fd   :  { %v9590_v52 = vpop.eup %9589 }
 0x6fe   :  { %v4936_v35 = vadd.f32 1.0, %v9590_v52  ;;  %v9592_v30 = vpop.eup %9591 }
 0x6ff   :  { %v9594_v42 = vpop.eup %9593  ;;  %v4937_v40 = vadd.f32 1.0, %v9592_v30 }
 0x700   :  { %9603 = vrcp.f32 %v4936_v35  ;;  %v4939_v36 = vadd.f32 1.0, %v9594_v42  ;;  %v9596_v49 = vpop.eup %9595 }
 0x701   :  { %9605 = vtanh.f32 %v4916_v37  ;;  %v4940_v41 = vadd.f32 1.0, %v9596_v49  ;;  %v9598_v29 = vpop.eup %9597 }
 0x702   :  { %9607 = vrcp.f32 %v4937_v40  ;;  %v9600_v4 = vpop.eup %9599 }
 0x703   :  { %9609 = vrcp.f32 %v4939_v36  ;;  %v9602_v50 = vpop.eup %9601  ;;  %v4938_v10 = vadd.f32 1.0, %v9600_v4 }
 0x704   :  { %9611 = vrcp.f32 %v4940_v41  ;;  %v4941_v20 = vadd.f32 1.0, %v9602_v50 }
 0x705   :  { %9613 = vrcp.f32 %v4938_v10 }
 0x706   :  { %9615 = vrcp.f32 %v4941_v20 }
 0x70a   :  { %v9604_v57 = vpop.eup %9603 }
 0x70b   :  { %v9606_v58 = vpop.eup %9605  ;;  %v4960_v5 = vmul.f32 %v9604_v57, %v9598_v29 }
 0x70c   :  { %v9608_v61 = vpop.eup %9607 }
 0x70d   :  { %v9610_v14 = vpop.eup %9609  ;;  %v4958_v0 = vmul.f32 %v9608_v61, %v11143_v53 }
 0x70e   :  { %v4961_v6 = vmul.f32 %v9610_v14, %v9606_v58  ;;  %v5208_v28 = vpop.f32.mrb[20].mxu0  ;;  %v5251_v23 = vpop.f32.mrb[20].mxu1 }
 0x70f   :  { %v9612_v27 = vpop.eup %9611  ;;  %v11276_v15 = vadd.f32 %v4960_v5, %v4958_v0  ;;  %v8599_v13 = vadd.f32 %v5208_v28, %v10251_v54  ;;  %v5210_v9 = vpop.f32.mrb[21].mxu0  ;;  %v8631_v39 = vadd.f32 %v5251_v23, %v12053_v33 }
 0x710   :  { %v5253_v7 = vpop.f32.mrb[21].mxu1  ;;  %v4959_v2 = vmul.f32 %v9612_v27, %v11150_v45  ;;  %v8600_v21 = vadd.f32 %v5210_v9, %v10254_v55  ;;  %v5212_v12 = vpop.f32.mrb[22].mxu0 }
 0x711   :  { %v5255_v8 = vpop.f32.mrb[22].mxu1  ;;  %v8287_v53 = vmul.f32 -1.442695, %v8599_v13  ;;  %v8601_v18 = vadd.f32 %v5212_v12, %v10251_v54  ;;  %v5214_v11 = vpop.f32.mrb[23].mxu0  ;;  %9617 = vtanh.f32 %v11276_v15  ;;  %v8632_v3 = vadd.f32 %v5253_v7, %v12054_v48 }
 0x712   :  { %v5257_v1 = vpop.f32.mrb[23].mxu1  ;;  %v11283_v19 = vadd.f32 %v4961_v6, %v4959_v2  ;;  %v8288_v17 = vmul.f32 -1.442695, %v8600_v21  ;;  %v8602_v38 = vadd.f32 %v5214_v11, %v10254_v55  ;;  %v8633_v32 = vadd.f32 %v5255_v8, %v12053_v33  ;;  %v9614_v60 = vpop.eup %9613  ;;  %v11301_v11 = vld [vmem:[#allocation7 + $0x8] ss:$16 sps:$4 sm:$0xff]  }
 0x713   :  { %9619 = vpow2.f32 %v8287_v53  ;;  %v8290_v46 = vmul.f32 -1.442695, %v8601_v18  ;;  %v9616_v26 = vpop.eup %9615  ;;  %v8289_v24 = vmul.f32 -1.442695, %v8631_v39  ;;  %v8634_v37 = vadd.f32 %v5257_v1, %v12054_v48  ;;  %v11299_v18 = vld [vmem:[#allocation7] ss:$16 sps:$4 sm:$0xff]  }
 0x714   :  { %9621 = vtanh.f32 %v11283_v19  ;;  %v8291_v45 = vmul.f32 -1.442695, %v8602_v38  ;;  %v8292_v44 = vmul.f32 -1.442695, %v8633_v32  ;;  %v11315_v38 = vld [vmem:[#allocation7 + $0x28] ss:$16 sps:$4 sm:$0xff]  }
 0x715   :  { %9623 = vpow2.f32 %v8288_v17  ;;  %v11307_v17 = vld [vmem:[#allocation7 + $0x2c] ss:$16 sps:$4 sm:$0xff]   ;;  %v11327_v32 = vld [vmem:[#allocation7 + $0x40] ss:$16 sps:$4 sm:$0xff]  }
 0x716   :  { %9625 = vpow2.f32 %v8290_v46  ;;  %v11313_v46 = vld [vmem:[#allocation7 + $0x20] ss:$16 sps:$4 sm:$0xff]   ;;  %v11321_v39 = vld [vmem:[#allocation7 + $0x4c] ss:$16 sps:$4 sm:$0xff]  }
 0x717   :  { %9627 = vpow2.f32 %v8291_v45  ;;  %v11319_v45 = vld [vmem:[#allocation7 + $0x44] ss:$16 sps:$4 sm:$0xff]  }
 0x718   :  { %9629 = vtanh.f32 %v8632_v3  ;;  %v11333_v3 = vld [vmem:[#allocation7 + $0x64] ss:$16 sps:$4 sm:$0xff]  }
 0x719   :  { %9631 = vpow2.f32 %v8289_v24  ;;  %v11339_v24 = vld [vmem:[#allocation7 + $0x60] ss:$16 sps:$4 sm:$0xff]  }
 0x71b   :  { %v9618_v59 = vpop.eup %9617 }
 0x71c   :  { %v4966_v35 = vmul.f32 %v9618_v59, %v9614_v60  ;;  %v11329_v60 = vld [vmem:[#allocation7 + $0x48] ss:$16 sps:$4 sm:$0xff]  }
 0x71d   :  { %v9620_v25 = vpop.eup %9619  ;;  %v11341_v59 = vld [vmem:[#allocation7 + $0x68] ss:$16 sps:$4 sm:$0xff]  }
 0x71e   :  { %v9622_v56 = vpop.eup %9621  ;;  %v5286_v52 = vadd.f32 1.0, %v9620_v25  ;;  %v11345_v25 = vld [vmem:[#allocation7 + $0x84] ss:$16 sps:$4 sm:$0xff]  }
 0x71f   :  { %v4967_v30 = vmul.f32 %v9622_v56, %v9616_v26  ;;  %v9624_v42 = vpop.eup %9623  ;;  %v11335_v26 = vld [vmem:[#allocation7 + $0x6c] ss:$16 sps:$4 sm:$0xff]   ;;  %v11351_v56 = vld [vmem:[#allocation7 + $0x80] ss:$16 sps:$4 sm:$0xff]  }
 0x720   :  { %9633 = vrcp.f32 %v5286_v52  ;;  %v9626_v40 = vpop.eup %9625  ;;  %v5287_v36 = vadd.f32 1.0, %v9624_v42  ;;  %v11353_v52 = vld [vmem:[#allocation7 + $0x88] ss:$16 sps:$4 sm:$0xff]  }
 0x721   :  { %9635 = vpow2.f32 %v8292_v44  ;;  %v4968_v49 = vpack.c.bf16 %v4967_v30, %v4966_v35  ;;  %v5289_v41 = vadd.f32 1.0, %v9626_v40  ;;  %v9628_v29 = vpop.eup %9627  ;;  %v11347_v44 = vld [vmem:[#allocation7 + $0x8c] ss:$16 sps:$4 sm:$0xff]   ;;  %v11363_v30 = vld [vmem:[#allocation7 + $0xa0] ss:$16 sps:$4 sm:$0xff]  }
 0x722   :  { %9637 = vtanh.f32 %v8634_v37  ;;  %v5290_v4 = vadd.f32 1.0, %v9628_v29  ;;  %v9630_v50 = vpop.eup %9629  ;;  %v11357_v37 = vld [vmem:[#allocation7 + $0xa4] ss:$16 sps:$4 sm:$0xff]   ;;  %v11359_v35 = vld [vmem:[#allocation7 + $0xac] ss:$16 sps:$4 sm:$0xff]  }
 0x723   :  { %9639 = vrcp.f32 %v5287_v36  ;;  %5761 = vmatprep.mubr.bf16.mxu0 %v4968_v49  ;;  %5804 = vmatprep.mubr.bf16.mxu1 %v4968_v49  ;;  %v9632_v57 = vpop.eup %9631  ;;  %v11365_v42 = vld [vmem:[#allocation7 + $0xa8] ss:$16 sps:$4 sm:$0xff]   ;;  %v11369_v40 = vld [vmem:[#allocation7 + $0xc4] ss:$16 sps:$4 sm:$0xff]   ;;  %v11371_v36 = vld [vmem:[#allocation7 + $0xcc] ss:$16 sps:$4 sm:$0xff]  }
 0x724   :  { %9641 = vrcp.f32 %v5289_v41  ;;  %v5288_v20 = vadd.f32 1.0, %v9632_v57  ;;  %v11375_v49 = vld [vmem:[#allocation7 + $0xc0] ss:$16 sps:$4 sm:$0xff]   ;;  %v11377_v41 = vld [vmem:[#allocation7 + $0xc8] ss:$16 sps:$4 sm:$0xff]  }
 0x725   :  { %9643 = vrcp.f32 %v5290_v4  ;;  %v11381_v29 = vld [vmem:[#allocation7 + $0xe4] ss:$16 sps:$4 sm:$0xff]   ;;  %v11383_v4 = vld [vmem:[#allocation7 + $0xec] ss:$16 sps:$4 sm:$0xff]   ;;  %v11389_v57 = vld [vmem:[#allocation7 + $0xe8] ss:$16 sps:$4 sm:$0xff]  }
 0x726   :  { %9645 = vrcp.f32 %v5288_v20  ;;  %12319 = vst [vmem:[#allocation16_spill] sm:$0xff] %v11389_v57  ;;  %v11413_v20 = vld [vmem:[#allocation10 + $0x20] ss:$16 sps:$4 sm:$0xff]  }
 0x727   :  { %12326 = vst [vmem:[#allocation23_spill] sm:$0xff] %v11413_v20 }
 0x72a   :  { %v9634_v58 = vpop.eup %9633 }
 0x72b   :  { %v9636_v5 = vpop.eup %9635  ;;  %v5310_v61 = vmul.f32 %v9634_v58, %v9630_v50  ;;  %v11387_v50 = vld [vmem:[#allocation7 + $0xe0] ss:$16 sps:$4 sm:$0xff]   ;;  %v11397_v58 = vld [vmem:[#allocation10 + $0x4] ss:$16 sps:$4 sm:$0xff]  }
 0x72c   :  { %v9638_v10 = vpop.eup %9637  ;;  %v5291_v13 = vadd.f32 1.0, %v9636_v5  ;;  %12320 = vst [vmem:[#allocation17_spill] sm:$0xff] %v11397_v58  ;;  %v11399_v5 = vld [vmem:[#allocation10 + $0xc] ss:$16 sps:$4 sm:$0xff]  }
 0x72d   :  { %v9640_v14 = vpop.eup %9639  ;;  %12321 = vst [vmem:[#allocation18_spill] sm:$0xff] %v11399_v5 }
 0x72e   :  { %v9642_v0 = vpop.eup %9641  ;;  %v5308_v6 = vmul.f32 %v9640_v14, %v11159_v22  ;;  %v11409_v14 = vld [vmem:[#allocation10 + $0x24] ss:$16 sps:$4 sm:$0xff]  }
 0x72f   :  { %v5311_v28 = vmul.f32 %v9642_v0, %v9638_v10  ;;  %v9644_v23 = vpop.eup %9643  ;;  %v11403_v10 = vld [vmem:[#allocation10 + $0x8] ss:$16 sps:$4 sm:$0xff]   ;;  %12324 = vst [vmem:[#allocation21_spill] sm:$0xff] %v11409_v14  ;;  %v11411_v0 = vld [vmem:[#allocation10 + $0x2c] ss:$16 sps:$4 sm:$0xff]  }
 0x730   :  { %v11292_v27 = vadd.f32 %v5310_v61, %v5308_v6  ;;  %v5309_v9 = vmul.f32 %v9644_v23, %v11163_v31  ;;  %v9646_v2 = vpop.eup %9645  ;;  %v11305_v31 = vld [vmem:[#allocation7 + $0x24] ss:$16 sps:$4 sm:$0xff]   ;;  %v11401_v61 = vld [vmem:[#allocation10] ss:$16 sps:$4 sm:$0xff]   ;;  %12323 = vst [vmem:[#allocation20_spill] sm:$0xff] %v11403_v10  ;;  %12325 = vst [vmem:[#allocation22_spill] sm:$0xff] %v11411_v0 }
 0x731   :  { %12322 = vst [vmem:[#allocation19_spill] sm:$0xff] %v11401_v61  ;;  %v11415_v6 = vld [vmem:[#allocation10 + $0x28] ss:$16 sps:$4 sm:$0xff]   ;;  %v11423_v23 = vld [vmem:[#allocation10 + $0x4c] ss:$16 sps:$4 sm:$0xff]  }
 0x732   :  { %9647 = vtanh.f32 %v11292_v27  ;;  %v11296_v7 = vadd.f32 %v5311_v28, %v5309_v9  ;;  %12327 = vst [vmem:[#allocation24_spill] sm:$0xff] %v11415_v6  ;;  %v11421_v28 = vld [vmem:[#allocation10 + $0x44] ss:$16 sps:$4 sm:$0xff]   ;;  %12329 = vst [vmem:[#allocation26_spill] sm:$0xff] %v11423_v23  ;;  %v11427_v9 = vld [vmem:[#allocation10 + $0x48] ss:$16 sps:$4 sm:$0xff]  }
 0x733   :  { %9649 = vrcp.f32 %v5291_v13  ;;  %12328 = vst [vmem:[#allocation25_spill] sm:$0xff] %v11421_v28  ;;  %v11425_v13 = vld [vmem:[#allocation10 + $0x40] ss:$16 sps:$4 sm:$0xff]   ;;  %12331 = vst [vmem:[#allocation28_spill] sm:$0xff] %v11427_v9 }
 0x734   :  { %9651 = vtanh.f32 %v11296_v7  ;;  %12330 = vst [vmem:[#allocation27_spill] sm:$0xff] %v11425_v13 }
 0x73c   :  { %v9648_v21 = vpop.eup %9647 }
 0x73d   :  { %v9650_v12 = vpop.eup %9649  ;;  %v5316_v22 = vmul.f32 %v9648_v21, %v9646_v2  ;;  %v11433_v2 = vld [vmem:[#allocation10 + $0x64] ss:$16 sps:$4 sm:$0xff]   ;;  %v11435_v21 = vld [vmem:[#allocation10 + $0x6c] ss:$16 sps:$4 sm:$0xff]  }
 0x73e   :  { %v9652_v8 = vpop.eup %9651  ;;  %12332 = vst [vmem:[#allocation29_spill] sm:$0xff] %v11433_v2  ;;  %12333 = vst [vmem:[#allocation30_spill] sm:$0xff] %v11435_v21 }
 0x73f   :  { %v5317_v53 = vmul.f32 %v9652_v8, %v9650_v12  ;;  %v11437_v12 = vld [vmem:[#allocation10 + $0x60] ss:$16 sps:$4 sm:$0xff]   ;;  %v11439_v8 = vld [vmem:[#allocation10 + $0x68] ss:$16 sps:$4 sm:$0xff]  }
 0x740   :  { %12334 = vst [vmem:[#allocation31_spill] sm:$0xff] %v11437_v12  ;;  %12335 = vst [vmem:[#allocation32_spill] sm:$0xff] %v11439_v8 }
 0x741   :  { %v11303_v1 = vpack.c.bf16 %v5317_v53, %v5316_v22  ;;  %v11445_v22 = vld [vmem:[#allocation10 + $0x84] ss:$16 sps:$4 sm:$0xff]   ;;  %v11447_v53 = vld [vmem:[#allocation10 + $0x8c] ss:$16 sps:$4 sm:$0xff]  }
 0x742   :  { %12336 = vst [vmem:[#allocation33_spill] sm:$0xff] %v11445_v22  ;;  %12337 = vst [vmem:[#allocation34_spill] sm:$0xff] %v11447_v53 }
 0x743   :  { %5762 = vmatmul.mubr.bf16.vlgmr.msra.gmra.mrb[52].mxu0 %v11303_v1  ;;  %5805 = vmatmul.mubr.bf16.vlgmr.msra.gmra.mrb[52].mxu1 %v11303_v1 }
 0x744   :  { %6072 = vmatpush1.bf16.msra.mxu0 %v11299_v18  ;;  %6115 = vmatpush1.bf16.msra.mxu1 %v11301_v11 }
 0x745   :  { %6073 = vmatprep.subr.bf16.mxu0 %v11305_v31  ;;  %6116 = vmatprep.subr.bf16.mxu1 %v11307_v17 }
 0x746   :  { %6103 = vmatprep.mubr.bf16.mxu0 %v12029_v47  ;;  %6146 = vmatprep.mubr.bf16.mxu1 %v12029_v47 }
 0x748   :  { %6074 = vmatpush1.bf16.msra.mxu0 %v11313_v46  ;;  %6117 = vmatpush1.bf16.msra.mxu1 %v11315_v38 }
 0x749   :  { %6075 = vmatprep.subr.bf16.mxu0 %v11319_v45  ;;  %6118 = vmatprep.subr.bf16.mxu1 %v11321_v39 }
 0x74c   :  { %6076 = vmatpush1.bf16.msra.mxu0 %v11327_v32  ;;  %6119 = vmatpush1.bf16.msra.mxu1 %v11329_v60 }
 0x74d   :  { %6077 = vmatprep.subr.bf16.mxu0 %v11333_v3  ;;  %6120 = vmatprep.subr.bf16.mxu1 %v11335_v26 }
 0x750   :  { %6078 = vmatpush1.bf16.msra.mxu0 %v11339_v24  ;;  %6121 = vmatpush1.bf16.msra.mxu1 %v11341_v59 }
 0x751   :  { %6079 = vmatprep.subr.bf16.mxu0 %v11345_v25  ;;  %6122 = vmatprep.subr.bf16.mxu1 %v11347_v44 }
 0x754   :  { %6080 = vmatpush1.bf16.msra.mxu0 %v11351_v56  ;;  %6123 = vmatpush1.bf16.msra.mxu1 %v11353_v52 }
 0x755   :  { %6081 = vmatprep.subr.bf16.mxu0 %v11357_v37  ;;  %6124 = vmatprep.subr.bf16.mxu1 %v11359_v35 }
 0x758   :  { %6082 = vmatpush1.bf16.msra.mxu0 %v11363_v30  ;;  %6125 = vmatpush1.bf16.msra.mxu1 %v11365_v42 }
 0x759   :  { %6083 = vmatprep.subr.bf16.mxu0 %v11369_v40  ;;  %6126 = vmatprep.subr.bf16.mxu1 %v11371_v36 }
 0x75c   :  { %6084 = vmatpush1.bf16.msra.mxu0 %v11375_v49  ;;  %6127 = vmatpush1.bf16.msra.mxu1 %v11377_v41 }
 0x75d   :  { %6085 = vmatprep.subr.bf16.mxu0 %v11381_v29  ;;  %6128 = vmatprep.subr.bf16.mxu1 %v11383_v4 }
 0x760   :  { %6086 = vmatpush1.bf16.msra.mxu0 %v11387_v50  ;;  %6129 = vmatpush1.bf16.msra.mxu1 %v11389_v57 }
 0x761   :  { %6626 = vmatprep.subr.bf16.mxu0 %v11397_v58  ;;  %6669 = vmatprep.subr.bf16.mxu1 %v11399_v5 }
 0x763   :  { %6104 = vmatmul.mubr.bf16.vlgmr.msra.gmra.mrb[24].mxu0 %v11303_v1  ;;  %6147 = vmatmul.mubr.bf16.vlgmr.msra.gmra.mrb[24].mxu1 %v11303_v1  ;;  %v11449_v1 = vld [vmem:[#allocation10 + $0x80] ss:$16 sps:$4 sm:$0xff]  }
 0x764   :  { %6627 = vmatpush1.bf16.msra.mxu0 %v11401_v61  ;;  %6670 = vmatpush1.bf16.msra.mxu1 %v11403_v10  ;;  %12338 = vst [vmem:[#allocation35_spill] sm:$0xff] %v11449_v1 }
 0x765   :  { %6628 = vmatprep.subr.bf16.mxu0 %v11409_v14  ;;  %6671 = vmatprep.subr.bf16.mxu1 %v11411_v0 }
 0x768   :  { %6629 = vmatpush1.bf16.msra.mxu0 %v11413_v20  ;;  %6672 = vmatpush1.bf16.msra.mxu1 %v11415_v6 }
 0x769   :  { %6630 = vmatprep.subr.bf16.mxu0 %v11421_v28  ;;  %6673 = vmatprep.subr.bf16.mxu1 %v11423_v23 }
 0x76c   :  { %6631 = vmatpush1.bf16.msra.mxu0 %v11425_v13  ;;  %6674 = vmatpush1.bf16.msra.mxu1 %v11427_v9  ;;  %v11451_v9 = vld [vmem:[#allocation10 + $0x88] ss:$16 sps:$4 sm:$0xff]   ;;  %v11551_v13 = vld [vmem:[#allocation10 + $0x1a4] ss:$16 sps:$4 sm:$0xff]  }
 0x76d   :  { %6632 = vmatprep.subr.bf16.mxu0 %v11433_v2  ;;  %6675 = vmatprep.subr.bf16.mxu1 %v11435_v21  ;;  %12339 = vst [vmem:[#allocation38_spill] sm:$0xff] %v11451_v9  ;;  %v11457_v21 = vld [vmem:[#allocation10 + $0xa4] ss:$16 sps:$4 sm:$0xff]   ;;  %v11463_v2 = vld [vmem:[#allocation10 + $0xa8] ss:$16 sps:$4 sm:$0xff]   ;;  %12372 = vst [vmem:[#allocation71_spill] sm:$0xff] %v11551_v13 }
 0x76e   :  { %12340 = vst [vmem:[#allocation39_spill] sm:$0xff] %v11457_v21  ;;  %12343 = vst [vmem:[#allocation42_spill] sm:$0xff] %v11463_v2 }
 0x770   :  { %6633 = vmatpush1.bf16.msra.mxu0 %v11437_v12  ;;  %6676 = vmatpush1.bf16.msra.mxu1 %v11439_v8  ;;  %v11459_v12 = vld [vmem:[#allocation10 + $0xac] ss:$16 sps:$4 sm:$0xff]   ;;  %v11461_v8 = vld [vmem:[#allocation10 + $0xa0] ss:$16 sps:$4 sm:$0xff]  }
 0x771   :  { %6634 = vmatprep.subr.bf16.mxu0 %v11445_v22  ;;  %6677 = vmatprep.subr.bf16.mxu1 %v11447_v53  ;;  %12341 = vst [vmem:[#allocation40_spill] sm:$0xff] %v11459_v12  ;;  %12342 = vst [vmem:[#allocation41_spill] sm:$0xff] %v11461_v8  ;;  %v11469_v53 = vld [vmem:[#allocation10 + $0xc4] ss:$16 sps:$4 sm:$0xff]   ;;  %v11475_v22 = vld [vmem:[#allocation10 + $0xc8] ss:$16 sps:$4 sm:$0xff]  }
 0x772   :  { %12344 = vst [vmem:[#allocation43_spill] sm:$0xff] %v11469_v53  ;;  %12347 = vst [vmem:[#allocation46_spill] sm:$0xff] %v11475_v22 }
 0x774   :  { %6635 = vmatpush1.bf16.msra.mxu0 %v11449_v1  ;;  %6678 = vmatpush1.bf16.msra.mxu1 %v11451_v9  ;;  %v11471_v1 = vld [vmem:[#allocation10 + $0xcc] ss:$16 sps:$4 sm:$0xff]   ;;  %v11473_v9 = vld [vmem:[#allocation10 + $0xc0] ss:$16 sps:$4 sm:$0xff]  }
 0x775   :  { %6636 = vmatprep.subr.bf16.mxu0 %v11457_v21  ;;  %6679 = vmatprep.subr.bf16.mxu1 %v11459_v12  ;;  %12345 = vst [vmem:[#allocation44_spill] sm:$0xff] %v11471_v1  ;;  %12346 = vst [vmem:[#allocation45_spill] sm:$0xff] %v11473_v9  ;;  %v11481_v12 = vld [vmem:[#allocation10 + $0xe4] ss:$16 sps:$4 sm:$0xff]   ;;  %v11487_v21 = vld [vmem:[#allocation10 + $0xe8] ss:$16 sps:$4 sm:$0xff]  }
 0x776   :  { %12348 = vst [vmem:[#allocation47_spill] sm:$0xff] %v11481_v12  ;;  %12351 = vst [vmem:[#allocation50_spill] sm:$0xff] %v11487_v21 }
 0x778   :  { %6637 = vmatpush1.bf16.msra.mxu0 %v11461_v8  ;;  %6680 = vmatpush1.bf16.msra.mxu1 %v11463_v2  ;;  %v11483_v8 = vld [vmem:[#allocation10 + $0xec] ss:$16 sps:$4 sm:$0xff]   ;;  %v11485_v2 = vld [vmem:[#allocation10 + $0xe0] ss:$16 sps:$4 sm:$0xff]  }
 0x779   :  { %6638 = vmatprep.subr.bf16.mxu0 %v11469_v53  ;;  %6681 = vmatprep.subr.bf16.mxu1 %v11471_v1  ;;  %12349 = vst [vmem:[#allocation48_spill] sm:$0xff] %v11483_v8  ;;  %12350 = vst [vmem:[#allocation49_spill] sm:$0xff] %v11485_v2  ;;  %v11493_v1 = vld [vmem:[#allocation10 + $0x104] ss:$16 sps:$4 sm:$0xff]   ;;  %v11499_v53 = vld [vmem:[#allocation10 + $0x108] ss:$16 sps:$4 sm:$0xff]  }
 0x77a   :  { %12352 = vst [vmem:[#allocation51_spill] sm:$0xff] %v11493_v1  ;;  %12355 = vst [vmem:[#allocation54_spill] sm:$0xff] %v11499_v53 }
 0x77c   :  { %6639 = vmatpush1.bf16.msra.mxu0 %v11473_v9  ;;  %6682 = vmatpush1.bf16.msra.mxu1 %v11475_v22  ;;  %v11495_v9 = vld [vmem:[#allocation10 + $0x10c] ss:$16 sps:$4 sm:$0xff]   ;;  %v11497_v22 = vld [vmem:[#allocation10 + $0x100] ss:$16 sps:$4 sm:$0xff]  }
 0x77d   :  { %6640 = vmatprep.subr.bf16.mxu0 %v11481_v12  ;;  %6683 = vmatprep.subr.bf16.mxu1 %v11483_v8  ;;  %12353 = vst [vmem:[#allocation52_spill] sm:$0xff] %v11495_v9  ;;  %12354 = vst [vmem:[#allocation53_spill] sm:$0xff] %v11497_v22  ;;  %v11505_v8 = vld [vmem:[#allocation10 + $0x124] ss:$16 sps:$4 sm:$0xff]   ;;  %v11511_v12 = vld [vmem:[#allocation10 + $0x128] ss:$16 sps:$4 sm:$0xff]  }
 0x77e   :  { %12356 = vst [vmem:[#allocation55_spill] sm:$0xff] %v11505_v8  ;;  %12359 = vst [vmem:[#allocation58_spill] sm:$0xff] %v11511_v12 }
 0x780   :  { %6641 = vmatpush1.bf16.msra.mxu0 %v11485_v2  ;;  %6684 = vmatpush1.bf16.msra.mxu1 %v11487_v21  ;;  %v11507_v2 = vld [vmem:[#allocation10 + $0x12c] ss:$16 sps:$4 sm:$0xff]   ;;  %v11509_v21 = vld [vmem:[#allocation10 + $0x120] ss:$16 sps:$4 sm:$0xff]  }
 0x781   :  { %6642 = vmatprep.subr.bf16.mxu0 %v11493_v1  ;;  %6685 = vmatprep.subr.bf16.mxu1 %v11495_v9  ;;  %12357 = vst [vmem:[#allocation56_spill] sm:$0xff] %v11507_v2  ;;  %12358 = vst [vmem:[#allocation57_spill] sm:$0xff] %v11509_v21  ;;  %v11517_v9 = vld [vmem:[#allocation10 + $0x144] ss:$16 sps:$4 sm:$0xff]   ;;  %v11523_v1 = vld [vmem:[#allocation10 + $0x148] ss:$16 sps:$4 sm:$0xff]  }
 0x782   :  { %12360 = vst [vmem:[#allocation59_spill] sm:$0xff] %v11517_v9  ;;  %12363 = vst [vmem:[#allocation62_spill] sm:$0xff] %v11523_v1 }
 0x784   :  { %6643 = vmatpush1.bf16.msra.mxu0 %v11497_v22  ;;  %6686 = vmatpush1.bf16.msra.mxu1 %v11499_v53  ;;  %v11519_v22 = vld [vmem:[#allocation10 + $0x14c] ss:$16 sps:$4 sm:$0xff]   ;;  %v11521_v53 = vld [vmem:[#allocation10 + $0x140] ss:$16 sps:$4 sm:$0xff]  }
 0x785   :  { %6644 = vmatprep.subr.bf16.mxu0 %v11505_v8  ;;  %6687 = vmatprep.subr.bf16.mxu1 %v11507_v2  ;;  %12361 = vst [vmem:[#allocation60_spill] sm:$0xff] %v11519_v22  ;;  %12362 = vst [vmem:[#allocation61_spill] sm:$0xff] %v11521_v53  ;;  %v11529_v2 = vld [vmem:[#allocation10 + $0x164] ss:$16 sps:$4 sm:$0xff]   ;;  %v11535_v8 = vld [vmem:[#allocation10 + $0x168] ss:$16 sps:$4 sm:$0xff]  }
 0x786   :  { %12364 = vst [vmem:[#allocation63_spill] sm:$0xff] %v11529_v2  ;;  %12367 = vst [vmem:[#allocation66_spill] sm:$0xff] %v11535_v8 }
 0x788   :  { %6645 = vmatpush1.bf16.msra.mxu0 %v11509_v21  ;;  %6688 = vmatpush1.bf16.msra.mxu1 %v11511_v12  ;;  %v11531_v21 = vld [vmem:[#allocation10 + $0x16c] ss:$16 sps:$4 sm:$0xff]   ;;  %v11533_v12 = vld [vmem:[#allocation10 + $0x160] ss:$16 sps:$4 sm:$0xff]  }
 0x789   :  { %6646 = vmatprep.subr.bf16.mxu0 %v11517_v9  ;;  %6689 = vmatprep.subr.bf16.mxu1 %v11519_v22  ;;  %12365 = vst [vmem:[#allocation64_spill] sm:$0xff] %v11531_v21  ;;  %12366 = vst [vmem:[#allocation65_spill] sm:$0xff] %v11533_v12  ;;  %v11541_v22 = vld [vmem:[#allocation10 + $0x184] ss:$16 sps:$4 sm:$0xff]   ;;  %v11547_v9 = vld [vmem:[#allocation10 + $0x188] ss:$16 sps:$4 sm:$0xff]  }
 0x78a   :  { %12368 = vst [vmem:[#allocation67_spill] sm:$0xff] %v11541_v22  ;;  %12371 = vst [vmem:[#allocation70_spill] sm:$0xff] %v11547_v9 }
 0x78c   :  { %6647 = vmatpush1.bf16.msra.mxu0 %v11521_v53  ;;  %6690 = vmatpush1.bf16.msra.mxu1 %v11523_v1  ;;  %v11543_v53 = vld [vmem:[#allocation10 + $0x18c] ss:$16 sps:$4 sm:$0xff]   ;;  %v11545_v1 = vld [vmem:[#allocation10 + $0x180] ss:$16 sps:$4 sm:$0xff]  }
 0x78d   :  { %6648 = vmatprep.subr.bf16.mxu0 %v11529_v2  ;;  %6691 = vmatprep.subr.bf16.mxu1 %v11531_v21  ;;  %12369 = vst [vmem:[#allocation68_spill] sm:$0xff] %v11543_v53  ;;  %12370 = vst [vmem:[#allocation69_spill] sm:$0xff] %v11545_v1  ;;  %v11553_v2 = vld [vmem:[#allocation10 + $0x1ac] ss:$16 sps:$4 sm:$0xff]   ;;  %v11563_v21 = vld [vmem:[#allocation10 + $0x1c4] ss:$16 sps:$4 sm:$0xff]  }
 0x78e   :  { %12373 = vst [vmem:[#allocation72_spill] sm:$0xff] %v11553_v2  ;;  %12376 = vst [vmem:[#allocation75_spill] sm:$0xff] %v11563_v21 }
 0x790   :  { %6649 = vmatpush1.bf16.msra.mxu0 %v11533_v12  ;;  %6692 = vmatpush1.bf16.msra.mxu1 %v11535_v8  ;;  %v11557_v8 = vld [vmem:[#allocation10 + $0x1a0] ss:$16 sps:$4 sm:$0xff]   ;;  %v11559_v12 = vld [vmem:[#allocation10 + $0x1a8] ss:$16 sps:$4 sm:$0xff]  }
 0x791   :  { %6650 = vmatprep.subr.bf16.mxu0 %v11541_v22  ;;  %6693 = vmatprep.subr.bf16.mxu1 %v11543_v53  ;;  %12374 = vst [vmem:[#allocation73_spill] sm:$0xff] %v11557_v8  ;;  %12375 = vst [vmem:[#allocation74_spill] sm:$0xff] %v11559_v12  ;;  %v11565_v22 = vld [vmem:[#allocation10 + $0x1cc] ss:$16 sps:$4 sm:$0xff]   ;;  %v11569_v53 = vld [vmem:[#allocation10 + $0x1c0] ss:$16 sps:$4 sm:$0xff]  }
 0x792   :  { %12377 = vst [vmem:[#allocation76_spill] sm:$0xff] %v11565_v22  ;;  %12378 = vst [vmem:[#allocation77_spill] sm:$0xff] %v11569_v53 }
 0x794   :  { %6651 = vmatpush1.bf16.msra.mxu0 %v11545_v1  ;;  %6694 = vmatpush1.bf16.msra.mxu1 %v11547_v9  ;;  %v11571_v1 = vld [vmem:[#allocation10 + $0x1c8] ss:$16 sps:$4 sm:$0xff]   ;;  %v11575_v9 = vld [vmem:[#allocation10 + $0x1e4] ss:$16 sps:$4 sm:$0xff]  }
 0x795   :  { %6652 = vmatprep.subr.bf16.mxu0 %v11551_v13  ;;  %6695 = vmatprep.subr.bf16.mxu1 %v11553_v2  ;;  %12379 = vst [vmem:[#allocation78_spill] sm:$0xff] %v11571_v1  ;;  %12380 = vst [vmem:[#allocation79_spill] sm:$0xff] %v11575_v9  ;;  %v11577_v13 = vld [vmem:[#allocation10 + $0x1ec] ss:$16 sps:$4 sm:$0xff]   ;;  %v11581_v2 = vld [vmem:[#allocation10 + $0x1e0] ss:$16 sps:$4 sm:$0xff]  }
 0x796   :  { %12381 = vst [vmem:[#allocation80_spill] sm:$0xff] %v11577_v13  ;;  %12382 = vst [vmem:[#allocation81_spill] sm:$0xff] %v11581_v2 }
 0x798   :  { %6653 = vmatpush1.bf16.msra.mxu0 %v11557_v8  ;;  %6696 = vmatpush1.bf16.msra.mxu1 %v11559_v12  ;;  %v11583_v8 = vld [vmem:[#allocation10 + $0x1e8] ss:$16 sps:$4 sm:$0xff]  }
 0x799   :  { %6654 = vmatprep.subr.bf16.mxu0 %v11563_v21  ;;  %6697 = vmatprep.subr.bf16.mxu1 %v11565_v22  ;;  %12383 = vst [vmem:[#allocation82_spill] sm:$0xff] %v11583_v8 }
 0x79c   :  { %6655 = vmatpush1.bf16.msra.mxu0 %v11569_v53  ;;  %6698 = vmatpush1.bf16.msra.mxu1 %v11571_v1  ;;  %v5387_v1 = vld [vmem:[%s11769_s5] sm:$0xf] }
 0x79d   :  { %6656 = vmatprep.subr.bf16.mxu0 %v11575_v9  ;;  %6699 = vmatprep.subr.bf16.mxu1 %v11577_v13  ;;  %v5392_v53 = vrot.slane %v5387_v1, %v12317_v62  ;;  %v5396_v22 = vrot.slane %v5387_v1, %v12318_v16  ;;  %v5400_v0 = vrot.slane %v5387_v1, %v12052_v34 }
 0x79e   :  { %v5404_v16 = vrot.slane %v5387_v1, %v10265_v51 }
 0x7a0   :  { %6657 = vmatpush1.bf16.msra.mxu0 %v11581_v2  ;;  %6700 = vmatpush1.bf16.msra.mxu1 %v11583_v8 }
 0x7a1   :  { %6968 = vmatprep.subr.bf16.mxu0 %v11262_v63  ;;  %7011 = vmatprep.subr.bf16.mxu1 %v11264_v43 }
 0x816   :  { %v5763_v21 = vpop.f32.mrb[52].mxu0  ;;  %v5806_v9 = vpop.f32.mrb[52].mxu1 }
 0x817   :  { %v5764_v12 = vadd.f32 %v5763_v21, %v5392_v53  ;;  %v5765_v13 = vpop.f32.mrb[53].mxu0  ;;  %v5808_v23 = vpop.f32.mrb[53].mxu1  ;;  %v5807_v21 = vadd.f32 %v5806_v9, %v5400_v0 }
 0x818   :  { %v5766_v2 = vadd.f32 %v5765_v13, %v5396_v22  ;;  %v5767_v28 = vpop.f32.mrb[54].mxu0  ;;  %v5810_v8 = vpop.f32.mrb[54].mxu1  ;;  %v5809_v13 = vadd.f32 %v5808_v23, %v5404_v16 }
 0x819   :  { %v8357_v6 = vmul.f32 -1.442695, %v5764_v12  ;;  %v5768_v63 = vadd.f32 %v5767_v28, %v5392_v53  ;;  %v5769_v20 = vpop.f32.mrb[55].mxu0  ;;  %v5812_v43 = vpop.f32.mrb[55].mxu1  ;;  %v5811_v5 = vadd.f32 %v5810_v8, %v5400_v0  ;;  %v8359_v58 = vmul.f32 -1.442695, %v5807_v21 }
 0x81a   :  { %v8358_v14 = vmul.f32 -1.442695, %v5766_v2  ;;  %v5770_v10 = vadd.f32 %v5769_v20, %v5396_v22  ;;  %v5813_v53 = vadd.f32 %v5812_v43, %v5404_v16 }
 0x81b   :  { %9653 = vpow2.f32 %v8357_v6  ;;  %v8360_v62 = vmul.f32 -1.442695, %v5768_v63  ;;  %v8362_v12 = vmul.f32 -1.442695, %v5811_v5 }
 0x81c   :  { %v8361_v61 = vmul.f32 -1.442695, %v5770_v10  ;;  %9655 = vpow2.f32 %v8358_v14 }
 0x81d   :  { %9657 = vpow2.f32 %v8360_v62 }
 0x81e   :  { %9659 = vpow2.f32 %v8361_v61 }
 0x81f   :  { %9661 = vtanh.f32 %v5809_v13 }
 0x820   :  { %9663 = vpow2.f32 %v8359_v58 }
 0x821   :  { %9665 = vpow2.f32 %v8362_v12 }
 0x825   :  { %v9654_v28 = vpop.eup %9653 }
 0x826   :  { %v5833_v57 = vadd.f32 1.0, %v9654_v28  ;;  %v9656_v2 = vpop.eup %9655 }
 0x827   :  { %v9658_v20 = vpop.eup %9657  ;;  %v5834_v10 = vadd.f32 1.0, %v9656_v2 }
 0x828   :  { %9667 = vrcp.f32 %v5833_v57  ;;  %v5836_v14 = vadd.f32 1.0, %v9658_v20  ;;  %v9660_v6 = vpop.eup %9659 }
 0x829   :  { %9669 = vtanh.f32 %v5813_v53  ;;  %v5837_v62 = vadd.f32 1.0, %v9660_v6  ;;  %v9662_v61 = vpop.eup %9661 }
 0x82a   :  { %9671 = vrcp.f32 %v5834_v10  ;;  %v9664_v0 = vpop.eup %9663 }
 0x82b   :  { %9673 = vrcp.f32 %v5836_v14  ;;  %v9666_v5 = vpop.eup %9665  ;;  %v5835_v58 = vadd.f32 1.0, %v9664_v0 }
 0x82c   :  { %9675 = vrcp.f32 %v5837_v62  ;;  %v5838_v57 = vadd.f32 1.0, %v9666_v5 }
 0x82d   :  { %9677 = vrcp.f32 %v5835_v58 }
 0x82e   :  { %9679 = vrcp.f32 %v5838_v57 }
 0x832   :  { %v9668_v23 = vpop.eup %9667 }
 0x833   :  { %v9670_v9 = vpop.eup %9669  ;;  %v5857_v16 = vmul.f32 %v9668_v23, %v9662_v61 }
 0x834   :  { %v9672_v8 = vpop.eup %9671 }
 0x835   :  { %v9674_v22 = vpop.eup %9673  ;;  %v5855_v1 = vmul.f32 %v9672_v8, %v11276_v15 }
 0x836   :  { %v5858_v63 = vmul.f32 %v9674_v22, %v9670_v9  ;;  %v6105_v43 = vpop.f32.mrb[24].mxu0  ;;  %v6148_v21 = vpop.f32.mrb[24].mxu1 }
 0x837   :  { %v9676_v13 = vpop.eup %9675  ;;  %v11599_v12 = vadd.f32 %v5857_v16, %v5855_v1  ;;  %v8603_v28 = vadd.f32 %v6105_v43, %v10251_v54  ;;  %v6107_v53 = vpop.f32.mrb[25].mxu0  ;;  %v8635_v8 = vadd.f32 %v6148_v21, %v12053_v33 }
 0x838   :  { %v6150_v2 = vpop.f32.mrb[25].mxu1  ;;  %v5856_v20 = vmul.f32 %v9676_v13, %v11283_v19  ;;  %v8604_v10 = vadd.f32 %v6107_v53, %v10254_v55  ;;  %v6109_v14 = vpop.f32.mrb[26].mxu0 }
 0x839   :  { %v6152_v6 = vpop.f32.mrb[26].mxu1  ;;  %v8395_v15 = vmul.f32 -1.442695, %v8603_v28  ;;  %v8605_v62 = vadd.f32 %v6109_v14, %v10251_v54  ;;  %v6111_v61 = vpop.f32.mrb[27].mxu0  ;;  %9681 = vtanh.f32 %v11599_v12  ;;  %v8636_v1 = vadd.f32 %v6150_v2, %v12054_v48 }
 0x83a   :  { %v6154_v0 = vpop.f32.mrb[27].mxu1  ;;  %v11606_v5 = vadd.f32 %v5858_v63, %v5856_v20  ;;  %v8396_v23 = vmul.f32 -1.442695, %v8604_v10  ;;  %v8606_v16 = vadd.f32 %v6111_v61, %v10254_v55  ;;  %v8637_v58 = vadd.f32 %v6152_v6, %v12053_v33  ;;  %v9678_v22 = vpop.eup %9677 }
 0x83b   :  { %9683 = vpow2.f32 %v8395_v15  ;;  %v8398_v9 = vmul.f32 -1.442695, %v8605_v62  ;;  %v9680_v57 = vpop.eup %9679  ;;  %v8397_v63 = vmul.f32 -1.442695, %v8635_v8  ;;  %v8638_v10 = vadd.f32 %v6154_v0, %v12054_v48 }
 0x83c   :  { %9685 = vtanh.f32 %v11606_v5  ;;  %v8399_v19 = vmul.f32 -1.442695, %v8606_v16  ;;  %v8400_v28 = vmul.f32 -1.442695, %v8637_v58 }
 0x83d   :  { %9687 = vpow2.f32 %v8396_v23 }
 0x83e   :  { %9689 = vpow2.f32 %v8398_v9 }
 0x83f   :  { %9691 = vpow2.f32 %v8399_v19 }
 0x840   :  { %9693 = vtanh.f32 %v8636_v1 }
 0x841   :  { %9695 = vpow2.f32 %v8397_v63 }
 0x843   :  { %v9682_v43 = vpop.eup %9681 }
 0x844   :  { %v5863_v14 = vmul.f32 %v9682_v43, %v9678_v22 }
 0x845   :  { %v9684_v13 = vpop.eup %9683 }
 0x846   :  { %v9686_v53 = vpop.eup %9685  ;;  %v6183_v20 = vadd.f32 1.0, %v9684_v13 }
 0x847   :  { %v5864_v21 = vmul.f32 %v9686_v53, %v9680_v57  ;;  %v9688_v15 = vpop.eup %9687 }
 0x848   :  { %9697 = vrcp.f32 %v6183_v20  ;;  %v9690_v6 = vpop.eup %9689  ;;  %v6184_v62 = vadd.f32 1.0, %v9688_v15 }
 0x849   :  { %9699 = vpow2.f32 %v8400_v28  ;;  %v5865_v61 = vpack.c.bf16 %v5864_v21, %v5863_v14  ;;  %v6186_v2 = vadd.f32 1.0, %v9690_v6  ;;  %v9692_v23 = vpop.eup %9691 }
 0x84a   :  { %9701 = vtanh.f32 %v8638_v10  ;;  %v6187_v9 = vadd.f32 1.0, %v9692_v23  ;;  %v9694_v16 = vpop.eup %9693  ;;  %v12415_v23 = vld [vmem:[#allocation49_spill] sm:$0xff] }
 0x84b   :  { %9703 = vrcp.f32 %v6184_v62  ;;  %6658 = vmatprep.mubr.bf16.mxu0 %v5865_v61  ;;  %6701 = vmatprep.mubr.bf16.mxu1 %v5865_v61  ;;  %v9696_v0 = vpop.eup %9695 }
 0x84c   :  { %9705 = vrcp.f32 %v6186_v2  ;;  %v6185_v63 = vadd.f32 1.0, %v9696_v0  ;;  %v12418_v0 = vld [vmem:[#allocation52_spill] sm:$0xff] }
 0x84d   :  { %9707 = vrcp.f32 %v6187_v9  ;;  %v12416_v9 = vld [vmem:[#allocation50_spill] sm:$0xff] }
 0x84e   :  { %9709 = vrcp.f32 %v6185_v63  ;;  %v12425_v63 = vld [vmem:[#allocation59_spill] sm:$0xff] }
 0x852   :  { %v9698_v19 = vpop.eup %9697 }
 0x853   :  { %v9700_v8 = vpop.eup %9699  ;;  %v6207_v58 = vmul.f32 %v9698_v19, %v9694_v16  ;;  %v12417_v16 = vld [vmem:[#allocation51_spill] sm:$0xff]  ;;  %v12419_v19 = vld [vmem:[#allocation53_spill] sm:$0xff] }
 0x854   :  { %v9702_v22 = vpop.eup %9701  ;;  %v6188_v20 = vadd.f32 1.0, %v9700_v8  ;;  %v12420_v8 = vld [vmem:[#allocation54_spill] sm:$0xff] }
 0x855   :  { %v9704_v1 = vpop.eup %9703 }
 0x856   :  { %v9706_v57 = vpop.eup %9705  ;;  %v6205_v43 = vmul.f32 %v9704_v1, %v11292_v27  ;;  %v12423_v1 = vld [vmem:[#allocation57_spill] sm:$0xff] }
 0x857   :  { %v6208_v13 = vmul.f32 %v9706_v57, %v9702_v22  ;;  %v9708_v28 = vpop.eup %9707  ;;  %v12422_v22 = vld [vmem:[#allocation56_spill] sm:$0xff]  ;;  %v12424_v57 = vld [vmem:[#allocation58_spill] sm:$0xff] }
 0x858   :  { %v11615_v53 = vadd.f32 %v6207_v58, %v6205_v43  ;;  %v6206_v10 = vmul.f32 %v9708_v28, %v11296_v7  ;;  %v9710_v21 = vpop.eup %9709  ;;  %v12385_v7 = vld [vmem:[#allocation17_spill] sm:$0xff]  ;;  %v12421_v58 = vld [vmem:[#allocation55_spill] sm:$0xff]  ;;  %v12426_v43 = vld [vmem:[#allocation60_spill] sm:$0xff] }
 0x859   :  { %v12428_v28 = vld [vmem:[#allocation62_spill] sm:$0xff] }
 0x85a   :  { %9711 = vtanh.f32 %v11615_v53  ;;  %v11619_v14 = vadd.f32 %v6208_v13, %v6206_v10  ;;  %v12427_v13 = vld [vmem:[#allocation61_spill] sm:$0xff]  ;;  %v12430_v10 = vld [vmem:[#allocation64_spill] sm:$0xff] }
 0x85b   :  { %9713 = vrcp.f32 %v6188_v20  ;;  %v12429_v20 = vld [vmem:[#allocation63_spill] sm:$0xff] }
 0x85c   :  { %9715 = vtanh.f32 %v11619_v14 }
 0x864   :  { %v9712_v15 = vpop.eup %9711 }
 0x865   :  { %v9714_v6 = vpop.eup %9713  ;;  %v6213_v27 = vmul.f32 %v9712_v15, %v9710_v21  ;;  %v12431_v21 = vld [vmem:[#allocation65_spill] sm:$0xff]  ;;  %v12432_v15 = vld [vmem:[#allocation66_spill] sm:$0xff] }
 0x866   :  { %v9716_v62 = vpop.eup %9715 }
 0x867   :  { %v6214_v61 = vmul.f32 %v9716_v62, %v9714_v6  ;;  %v12433_v6 = vld [vmem:[#allocation67_spill] sm:$0xff]  ;;  %v12434_v62 = vld [vmem:[#allocation68_spill] sm:$0xff] }
 0x869   :  { %v6215_v2 = vpack.c.bf16 %v6214_v61, %v6213_v27  ;;  %v12435_v27 = vld [vmem:[#allocation69_spill] sm:$0xff]  ;;  %v12436_v61 = vld [vmem:[#allocation70_spill] sm:$0xff] }
 0x86b   :  { %6659 = vmatmul.mubr.bf16.vlgmr.msra.gmra.mrb[56].mxu0 %v6215_v2  ;;  %6702 = vmatmul.mubr.bf16.vlgmr.msra.gmra.mrb[56].mxu1 %v6215_v2 }
 0x86c   :  { %6969 = vmatpush1.bf16.msra.mxu0 %v11299_v18  ;;  %7012 = vmatpush1.bf16.msra.mxu1 %v11301_v11  ;;  %v12386_v18 = vld [vmem:[#allocation18_spill] sm:$0xff]  ;;  %v12387_v11 = vld [vmem:[#allocation19_spill] sm:$0xff] }
 0x86d   :  { %6970 = vmatprep.subr.bf16.mxu0 %v11305_v31  ;;  %7013 = vmatprep.subr.bf16.mxu1 %v11307_v17  ;;  %v12388_v31 = vld [vmem:[#allocation20_spill] sm:$0xff]  ;;  %v12389_v17 = vld [vmem:[#allocation21_spill] sm:$0xff] }
 0x86e   :  { %7000 = vmatprep.mubr.bf16.mxu0 %v12029_v47  ;;  %7043 = vmatprep.mubr.bf16.mxu1 %v12029_v47  ;;  %v12384_v47 = vld [vmem:[#allocation16_spill] sm:$0xff] }
 0x870   :  { %6971 = vmatpush1.bf16.msra.mxu0 %v11313_v46  ;;  %7014 = vmatpush1.bf16.msra.mxu1 %v11315_v38  ;;  %v12390_v46 = vld [vmem:[#allocation22_spill] sm:$0xff]  ;;  %v12391_v38 = vld [vmem:[#allocation23_spill] sm:$0xff] }
 0x871   :  { %6972 = vmatprep.subr.bf16.mxu0 %v11319_v45  ;;  %7015 = vmatprep.subr.bf16.mxu1 %v11321_v39  ;;  %v12392_v45 = vld [vmem:[#allocation24_spill] sm:$0xff]  ;;  %v12393_v39 = vld [vmem:[#allocation25_spill] sm:$0xff] }
 0x874   :  { %6973 = vmatpush1.bf16.msra.mxu0 %v11327_v32  ;;  %7016 = vmatpush1.bf16.msra.mxu1 %v11329_v60  ;;  %v12394_v32 = vld [vmem:[#allocation26_spill] sm:$0xff]  ;;  %v12395_v60 = vld [vmem:[#allocation27_spill] sm:$0xff] }
 0x875   :  { %6974 = vmatprep.subr.bf16.mxu0 %v11333_v3  ;;  %7017 = vmatprep.subr.bf16.mxu1 %v11335_v26  ;;  %v12396_v3 = vld [vmem:[#allocation28_spill] sm:$0xff]  ;;  %v12397_v26 = vld [vmem:[#allocation29_spill] sm:$0xff] }
 0x878   :  { %6975 = vmatpush1.bf16.msra.mxu0 %v11339_v24  ;;  %7018 = vmatpush1.bf16.msra.mxu1 %v11341_v59  ;;  %v12398_v24 = vld [vmem:[#allocation30_spill] sm:$0xff]  ;;  %v12399_v59 = vld [vmem:[#allocation31_spill] sm:$0xff] }
 0x879   :  { %6976 = vmatprep.subr.bf16.mxu0 %v11345_v25  ;;  %7019 = vmatprep.subr.bf16.mxu1 %v11347_v44  ;;  %v12400_v25 = vld [vmem:[#allocation32_spill] sm:$0xff]  ;;  %v12401_v44 = vld [vmem:[#allocation33_spill] sm:$0xff] }
 0x87c   :  { %6977 = vmatpush1.bf16.msra.mxu0 %v11351_v56  ;;  %7020 = vmatpush1.bf16.msra.mxu1 %v11353_v52  ;;  %v12402_v56 = vld [vmem:[#allocation34_spill] sm:$0xff]  ;;  %v12403_v52 = vld [vmem:[#allocation35_spill] sm:$0xff] }
 0x87d   :  { %6978 = vmatprep.subr.bf16.mxu0 %v11357_v37  ;;  %7021 = vmatprep.subr.bf16.mxu1 %v11359_v35  ;;  %v12404_v37 = vld [vmem:[#allocation38_spill] sm:$0xff]  ;;  %v12405_v35 = vld [vmem:[#allocation39_spill] sm:$0xff] }
 0x880   :  { %6979 = vmatpush1.bf16.msra.mxu0 %v11363_v30  ;;  %7022 = vmatpush1.bf16.msra.mxu1 %v11365_v42  ;;  %v12406_v30 = vld [vmem:[#allocation40_spill] sm:$0xff]  ;;  %v12407_v42 = vld [vmem:[#allocation41_spill] sm:$0xff] }
 0x881   :  { %6980 = vmatprep.subr.bf16.mxu0 %v11369_v40  ;;  %7023 = vmatprep.subr.bf16.mxu1 %v11371_v36  ;;  %v12408_v40 = vld [vmem:[#allocation42_spill] sm:$0xff]  ;;  %v12409_v36 = vld [vmem:[#allocation43_spill] sm:$0xff] }
 0x884   :  { %6981 = vmatpush1.bf16.msra.mxu0 %v11375_v49  ;;  %7024 = vmatpush1.bf16.msra.mxu1 %v11377_v41  ;;  %v12410_v49 = vld [vmem:[#allocation44_spill] sm:$0xff]  ;;  %v12411_v41 = vld [vmem:[#allocation45_spill] sm:$0xff] }
 0x885   :  { %6982 = vmatprep.subr.bf16.mxu0 %v11381_v29  ;;  %7025 = vmatprep.subr.bf16.mxu1 %v11383_v4  ;;  %v12412_v29 = vld [vmem:[#allocation46_spill] sm:$0xff]  ;;  %v12413_v4 = vld [vmem:[#allocation47_spill] sm:$0xff] }
 0x888   :  { %6983 = vmatpush1.bf16.msra.mxu0 %v11387_v50  ;;  %7026 = vmatpush1.bf16.msra.mxu1 %v12384_v47  ;;  %v12414_v50 = vld [vmem:[#allocation48_spill] sm:$0xff] }
 0x889   :  { %7523 = vmatprep.subr.bf16.mxu0 %v12385_v7  ;;  %7566 = vmatprep.subr.bf16.mxu1 %v12386_v18  ;;  %v12438_v47 = vld [vmem:[#allocation72_spill] sm:$0xff]  ;;  %v12439_v7 = vld [vmem:[#allocation73_spill] sm:$0xff]  ;;  %v12440_v18 = vld [vmem:[#allocation74_spill] sm:$0xff] }
 0x88b   :  { %7001 = vmatmul.mubr.bf16.vlgmr.msra.gmra.mrb[28].mxu0 %v6215_v2  ;;  %7044 = vmatmul.mubr.bf16.vlgmr.msra.gmra.mrb[28].mxu1 %v6215_v2  ;;  %v12437_v2 = vld [vmem:[#allocation71_spill] sm:$0xff] }
 0x88c   :  { %7524 = vmatpush1.bf16.msra.mxu0 %v12387_v11  ;;  %7567 = vmatpush1.bf16.msra.mxu1 %v12388_v31  ;;  %v12441_v11 = vld [vmem:[#allocation75_spill] sm:$0xff]  ;;  %v12442_v31 = vld [vmem:[#allocation76_spill] sm:$0xff] }
 0x88d   :  { %7525 = vmatprep.subr.bf16.mxu0 %v12389_v17  ;;  %7568 = vmatprep.subr.bf16.mxu1 %v12390_v46  ;;  %v12443_v17 = vld [vmem:[#allocation77_spill] sm:$0xff]  ;;  %v12444_v46 = vld [vmem:[#allocation78_spill] sm:$0xff] }
 0x890   :  { %7526 = vmatpush1.bf16.msra.mxu0 %v12391_v38  ;;  %7569 = vmatpush1.bf16.msra.mxu1 %v12392_v45  ;;  %v12445_v38 = vld [vmem:[#allocation79_spill] sm:$0xff]  ;;  %v12446_v45 = vld [vmem:[#allocation80_spill] sm:$0xff] }
 0x891   :  { %7527 = vmatprep.subr.bf16.mxu0 %v12393_v39  ;;  %7570 = vmatprep.subr.bf16.mxu1 %v12394_v32  ;;  %v12447_v39 = vld [vmem:[#allocation81_spill] sm:$0xff]  ;;  %v12448_v32 = vld [vmem:[#allocation82_spill] sm:$0xff] }
 0x894   :  { %7528 = vmatpush1.bf16.msra.mxu0 %v12395_v60  ;;  %7571 = vmatpush1.bf16.msra.mxu1 %v12396_v3  ;;  %v6284_v60 = vld [vmem:[%s11769_s5] sm:$0xf]  ;;  %v12449_v3 = vld [vmem:[#allocation36_spill] sm:$0xff] }
 0x895   :  { %7529 = vmatprep.subr.bf16.mxu0 %v12397_v26  ;;  %7572 = vmatprep.subr.bf16.mxu1 %v12398_v24  ;;  %v6289_v26 = vrot.slane %v6284_v60, %v12449_v3  ;;  %v12450_v24 = vld [vmem:[#allocation37_spill] sm:$0xff] }
 0x898   :  { %7530 = vmatpush1.bf16.msra.mxu0 %v12399_v59  ;;  %7573 = vmatpush1.bf16.msra.mxu1 %v12400_v25  ;;  %v6293_v59 = vrot.slane %v6284_v60, %v12450_v24 }
 0x899   :  { %7531 = vmatprep.subr.bf16.mxu0 %v12401_v44  ;;  %7574 = vmatprep.subr.bf16.mxu1 %v12402_v56 }
 0x89c   :  { %7532 = vmatpush1.bf16.msra.mxu0 %v12403_v52  ;;  %7575 = vmatpush1.bf16.msra.mxu1 %v12404_v37 }
 0x89d   :  { %7533 = vmatprep.subr.bf16.mxu0 %v12405_v35  ;;  %7576 = vmatprep.subr.bf16.mxu1 %v12406_v30 }
 0x8a0   :  { %7534 = vmatpush1.bf16.msra.mxu0 %v12407_v42  ;;  %7577 = vmatpush1.bf16.msra.mxu1 %v12408_v40 }
 0x8a1   :  { %7535 = vmatprep.subr.bf16.mxu0 %v12409_v36  ;;  %7578 = vmatprep.subr.bf16.mxu1 %v12410_v49 }
 0x8a4   :  { %7536 = vmatpush1.bf16.msra.mxu0 %v12411_v41  ;;  %7579 = vmatpush1.bf16.msra.mxu1 %v12412_v29  ;;  %v6297_v29 = vrot.slane %v6284_v60, %v12052_v34 }
 0x8a5   :  { %7537 = vmatprep.subr.bf16.mxu0 %v12413_v4  ;;  %7580 = vmatprep.subr.bf16.mxu1 %v12414_v50 }
 0x8a8   :  { %7538 = vmatpush1.bf16.msra.mxu0 %v12415_v23  ;;  %7581 = vmatpush1.bf16.msra.mxu1 %v12416_v9 }
 0x8a9   :  { %7539 = vmatprep.subr.bf16.mxu0 %v12417_v16  ;;  %7582 = vmatprep.subr.bf16.mxu1 %v12418_v0  ;;  %v6301_v16 = vrot.slane %v6284_v60, %v10265_v51 }
 0x8ac   :  { %7540 = vmatpush1.bf16.msra.mxu0 %v12419_v19  ;;  %7583 = vmatpush1.bf16.msra.mxu1 %v12420_v8 }
 0x8ad   :  { %7541 = vmatprep.subr.bf16.mxu0 %v12421_v58  ;;  %7584 = vmatprep.subr.bf16.mxu1 %v12422_v22 }
 0x8b0   :  { %7542 = vmatpush1.bf16.msra.mxu0 %v12423_v1  ;;  %7585 = vmatpush1.bf16.msra.mxu1 %v12424_v57 }
 0x8b1   :  { %7543 = vmatprep.subr.bf16.mxu0 %v12425_v63  ;;  %7586 = vmatprep.subr.bf16.mxu1 %v12426_v43 }
 0x8b4   :  { %7544 = vmatpush1.bf16.msra.mxu0 %v12427_v13  ;;  %7587 = vmatpush1.bf16.msra.mxu1 %v12428_v28 }
 0x8b5   :  { %7545 = vmatprep.subr.bf16.mxu0 %v12429_v20  ;;  %7588 = vmatprep.subr.bf16.mxu1 %v12430_v10 }
 0x8b8   :  { %7546 = vmatpush1.bf16.msra.mxu0 %v12431_v21  ;;  %7589 = vmatpush1.bf16.msra.mxu1 %v12432_v15 }
 0x8b9   :  { %7547 = vmatprep.subr.bf16.mxu0 %v12433_v6  ;;  %7590 = vmatprep.subr.bf16.mxu1 %v12434_v62 }
 0x8bc   :  { %7548 = vmatpush1.bf16.msra.mxu0 %v12435_v27  ;;  %7591 = vmatpush1.bf16.msra.mxu1 %v12436_v61 }
 0x8bd   :  { %7549 = vmatprep.subr.bf16.mxu0 %v12437_v2  ;;  %7592 = vmatprep.subr.bf16.mxu1 %v12438_v47 }
 0x8c0   :  { %7550 = vmatpush1.bf16.msra.mxu0 %v12439_v7  ;;  %7593 = vmatpush1.bf16.msra.mxu1 %v12440_v18 }
 0x8c1   :  { %7551 = vmatprep.subr.bf16.mxu0 %v12441_v11  ;;  %7594 = vmatprep.subr.bf16.mxu1 %v12442_v31 }
 0x8c4   :  { %7552 = vmatpush1.bf16.msra.mxu0 %v12443_v17  ;;  %7595 = vmatpush1.bf16.msra.mxu1 %v12444_v46 }
 0x8c5   :  { %7553 = vmatprep.subr.bf16.mxu0 %v12445_v38  ;;  %7596 = vmatprep.subr.bf16.mxu1 %v12446_v45 }
 0x8c8   :  { %7554 = vmatpush1.bf16.msra.mxu0 %v12447_v39  ;;  %7597 = vmatpush1.bf16.msra.mxu1 %v12448_v32 }
 0x93e   :  { %v6660_v25 = vpop.f32.mrb[56].mxu0  ;;  %v6703_v44 = vpop.f32.mrb[56].mxu1 }
 0x93f   :  { %v6661_v56 = vadd.f32 %v6660_v25, %v6289_v26  ;;  %v6662_v52 = vpop.f32.mrb[57].mxu0  ;;  %v6705_v37 = vpop.f32.mrb[57].mxu1  ;;  %v6704_v0 = vadd.f32 %v6703_v44, %v6297_v29 }
 0x940   :  { %v6663_v35 = vadd.f32 %v6662_v52, %v6293_v59  ;;  %v6664_v30 = vpop.f32.mrb[58].mxu0  ;;  %v6707_v42 = vpop.f32.mrb[58].mxu1  ;;  %v6706_v8 = vadd.f32 %v6705_v37, %v6301_v16 }
 0x941   :  { %v8465_v40 = vmul.f32 -1.442695, %v6661_v56  ;;  %v6665_v36 = vadd.f32 %v6664_v30, %v6289_v26  ;;  %v6666_v49 = vpop.f32.mrb[59].mxu0  ;;  %v6709_v41 = vpop.f32.mrb[59].mxu1  ;;  %v6708_v19 = vadd.f32 %v6707_v42, %v6297_v29  ;;  %v8467_v58 = vmul.f32 -1.442695, %v6704_v0 }
 0x942   :  { %v8466_v4 = vmul.f32 -1.442695, %v6663_v35  ;;  %v6667_v50 = vadd.f32 %v6666_v49, %v6293_v59  ;;  %v6710_v57 = vadd.f32 %v6709_v41, %v6301_v16 }
 0x943   :  { %9717 = vpow2.f32 %v8465_v40  ;;  %v8468_v23 = vmul.f32 -1.442695, %v6665_v36  ;;  %v8470_v22 = vmul.f32 -1.442695, %v6708_v19 }
 0x944   :  { %v8469_v9 = vmul.f32 -1.442695, %v6667_v50  ;;  %9719 = vpow2.f32 %v8466_v4 }
 0x945   :  { %9721 = vpow2.f32 %v8468_v23 }
 0x946   :  { %9723 = vpow2.f32 %v8469_v9 }
 0x947   :  { %9725 = vtanh.f32 %v6706_v8 }
 0x948   :  { %9727 = vpow2.f32 %v8467_v58 }
 0x949   :  { %9729 = vpow2.f32 %v8470_v22 }
 0x94d   :  { %v9718_v1 = vpop.eup %9717 }
 0x94e   :  { %v6730_v63 = vadd.f32 1.0, %v9718_v1  ;;  %v9720_v43 = vpop.eup %9719 }
 0x94f   :  { %v9722_v13 = vpop.eup %9721  ;;  %v6731_v28 = vadd.f32 1.0, %v9720_v43 }
 0x950   :  { %9731 = vrcp.f32 %v6730_v63  ;;  %v6733_v20 = vadd.f32 1.0, %v9722_v13  ;;  %v9724_v10 = vpop.eup %9723 }
 0x951   :  { %9733 = vtanh.f32 %v6710_v57  ;;  %v6734_v21 = vadd.f32 1.0, %v9724_v10  ;;  %v9726_v15 = vpop.eup %9725 }
 0x952   :  { %9735 = vrcp.f32 %v6731_v28  ;;  %v9728_v6 = vpop.eup %9727 }
 0x953   :  { %9737 = vrcp.f32 %v6733_v20  ;;  %v9730_v62 = vpop.eup %9729  ;;  %v6732_v7 = vadd.f32 1.0, %v9728_v6 }
 0x954   :  { %9739 = vrcp.f32 %v6734_v21  ;;  %v6735_v31 = vadd.f32 1.0, %v9730_v62 }
 0x955   :  { %9741 = vrcp.f32 %v6732_v7 }
 0x956   :  { %9743 = vrcp.f32 %v6735_v31 }
 0x95a   :  { %v9732_v27 = vpop.eup %9731 }
 0x95b   :  { %v9734_v61 = vpop.eup %9733  ;;  %v6754_v2 = vmul.f32 %v9732_v27, %v9726_v15 }
 0x95c   :  { %v9736_v47 = vpop.eup %9735 }
 0x95d   :  { %v9738_v18 = vpop.eup %9737  ;;  %v6752_v11 = vmul.f32 %v9736_v47, %v11599_v12 }
 0x95e   :  { %v6755_v17 = vmul.f32 %v9738_v18, %v9734_v61  ;;  %v7002_v46 = vpop.f32.mrb[28].mxu0  ;;  %v7045_v38 = vpop.f32.mrb[28].mxu1 }
 0x95f   :  { %v9740_v45 = vpop.eup %9739  ;;  %v11726_v39 = vadd.f32 %v6754_v2, %v6752_v11  ;;  %v8607_v32 = vadd.f32 %v7002_v46, %v10251_v54  ;;  %v7004_v60 = vpop.f32.mrb[29].mxu0  ;;  %v8639_v49 = vadd.f32 %v7045_v38, %v12053_v33 }
 0x960   :  { %v7047_v26 = vpop.f32.mrb[29].mxu1  ;;  %v6753_v59 = vmul.f32 %v9740_v45, %v11606_v5  ;;  %v8608_v25 = vadd.f32 %v7004_v60, %v10254_v55  ;;  %v7006_v44 = vpop.f32.mrb[30].mxu0 }
 0x961   :  { %v7049_v56 = vpop.f32.mrb[30].mxu1  ;;  %v8503_v12 = vmul.f32 -1.442695, %v8607_v32  ;;  %v8609_v52 = vadd.f32 %v7006_v44, %v10251_v54  ;;  %v7008_v37 = vpop.f32.mrb[31].mxu0  ;;  %9745 = vtanh.f32 %v11726_v39  ;;  %v8640_v29 = vadd.f32 %v7047_v26, %v12054_v48 }
 0x962   :  { %v7051_v35 = vpop.f32.mrb[31].mxu1  ;;  %v11733_v30 = vadd.f32 %v6755_v17, %v6753_v59  ;;  %v8504_v42 = vmul.f32 -1.442695, %v8608_v25  ;;  %v8610_v36 = vadd.f32 %v7008_v37, %v10254_v55  ;;  %v8641_v54 = vadd.f32 %v7049_v56, %v12053_v33  ;;  %v9742_v41 = vpop.eup %9741 }
 0x963   :  { %9747 = vpow2.f32 %v8503_v12  ;;  %v8506_v40 = vmul.f32 -1.442695, %v8609_v52  ;;  %v9744_v4 = vpop.eup %9743  ;;  %v8505_v50 = vmul.f32 -1.442695, %v8639_v49  ;;  %v8642_v19 = vadd.f32 %v7051_v35, %v12054_v48 }
 0x964   :  { %9749 = vtanh.f32 %v11733_v30  ;;  %v8507_v5 = vmul.f32 -1.442695, %v8610_v36  ;;  %v8508_v16 = vmul.f32 -1.442695, %v8641_v54 }
 0x965   :  { %9751 = vpow2.f32 %v8504_v42 }
 0x966   :  { %9753 = vpow2.f32 %v8506_v40 }
 0x967   :  { %9755 = vpow2.f32 %v8507_v5 }
 0x968   :  { %9757 = vtanh.f32 %v8640_v29 }
 0x969   :  { %9759 = vpow2.f32 %v8505_v50 }
 0x96b   :  { %v9746_v23 = vpop.eup %9745 }
 0x96c   :  { %v6760_v8 = vmul.f32 %v9746_v23, %v9742_v41 }
 0x96d   :  { %v9748_v9 = vpop.eup %9747 }
 0x96e   :  { %v9750_v0 = vpop.eup %9749  ;;  %v7080_v55 = vadd.f32 1.0, %v9748_v9 }
 0x96f   :  { %v6761_v58 = vmul.f32 %v9750_v0, %v9744_v4  ;;  %v9752_v22 = vpop.eup %9751 }
 0x970   :  { %9761 = vrcp.f32 %v7080_v55  ;;  %v9754_v33 = vpop.eup %9753  ;;  %v7081_v1 = vadd.f32 1.0, %v9752_v22 }
 0x971   :  { %9763 = vpow2.f32 %v8508_v16  ;;  %v6762_v57 = vpack.c.bf16 %v6761_v58, %v6760_v8  ;;  %v7083_v63 = vadd.f32 1.0, %v9754_v33  ;;  %v9756_v43 = vpop.eup %9755 }
 0x972   :  { %9765 = vtanh.f32 %v8642_v19  ;;  %v7084_v13 = vadd.f32 1.0, %v9756_v43  ;;  %v9758_v28 = vpop.eup %9757 }
 0x973   :  { %9767 = vrcp.f32 %v7081_v1  ;;  %7555 = vmatprep.mubr.bf16.mxu0 %v6762_v57  ;;  %7598 = vmatprep.mubr.bf16.mxu1 %v6762_v57  ;;  %v9760_v48 = vpop.eup %9759 }
 0x974   :  { %9769 = vrcp.f32 %v7083_v63  ;;  %v7082_v62 = vadd.f32 1.0, %v9760_v48 }
 0x975   :  { %9771 = vrcp.f32 %v7084_v13 }
 0x976   :  { %9773 = vrcp.f32 %v7082_v62 }
 0x97a   :  { %v9762_v20 = vpop.eup %9761 }
 0x97b   :  { %v9764_v10 = vpop.eup %9763  ;;  %v7104_v21 = vmul.f32 %v9762_v20, %v9758_v28 }
 0x97c   :  { %v9766_v15 = vpop.eup %9765  ;;  %v7085_v18 = vadd.f32 1.0, %v9764_v10 }
 0x97d   :  { %v9768_v6 = vpop.eup %9767 }
 0x97e   :  { %v9770_v27 = vpop.eup %9769  ;;  %v7102_v61 = vmul.f32 %v9768_v6, %v11615_v53  ;;  %v7181_v53 = vld [vmem:[%s11769_s5] sm:$0xf]  ;;  %s9925_s5 = smov [#allocation12]  }
 0x97f   :  { %v7105_v2 = vmul.f32 %v9770_v27, %v9766_v15  ;;  %v9772_v47 = vpop.eup %9771  ;;  %v7186_v59 = vrot.slane %v7181_v53, %v12449_v3  ;;  %v7194_v54 = vrot.slane %v7181_v53, %v12052_v34  ;;  %s7676_s27 = sshll.u32 %s9925_s5, 4  ;;  %s7677_s27 = int_to_ptr.vmem [resolvable:$true] %s7676_s27 }
 0x980   :  { %v7106_v7 = vadd.f32 %v7104_v21, %v7102_v61  ;;  %v7103_v11 = vmul.f32 %v9772_v47, %v11619_v14  ;;  %v9774_v17 = vpop.eup %9773  ;;  %v7190_v14 = vrot.slane %v7181_v53, %v12450_v24  ;;  %v7198_v24 = vrot.slane %v7181_v53, %v10265_v51  ;;  %s9891_s28 = scalar_lea.vmem %s7677_s27, 256  ;;  %p9896_p3 = scmp.lt.s32.totalorder %s7677_s27, %s7677_s27 }
 0x981   :  { %p9892_p2 = scmp.ne.s32.totalorder %s7677_s27, %s9891_s28  ;;  %p9897_p4 = scmp.lt.s32.totalorder %s9891_s28, %s9891_s28 }
 0x982   :  { %9775 = vtanh.f32 %v7106_v7  ;;  %v7107_v31 = vadd.f32 %v7105_v2, %v7103_v11 }
 0x983   :  { %9777 = vrcp.f32 %v7085_v18  ;;  %p9898_p5 = por %p9897_p4, %p9896_p3 }
 0x984   :  { %9779 = vtanh.f32 %v7107_v31 }
 0x985   :  { %p9899_p6 = pnand %p9898_p5, %p9892_p2 }
 0x98c   :  { %v9776_v46 = vpop.eup %9775 }
 0x98d   :  { %v7110_v38 = vmul.f32 %v9776_v46, %v9774_v17  ;;  %v9778_v45 = vpop.eup %9777 }
 0x98e   :  { %v9780_v32 = vpop.eup %9779 }
 0x98f   :  { %v7111_v60 = vmul.f32 %v9780_v32, %v9778_v45 }
 0x991   :  { %v7112_v26 = vpack.c.bf16 %v7111_v60, %v7110_v38 }
 0x993   :  { %7556 = vmatmul.mubr.bf16.vlgmr.msra.gmra.mrb[60].mxu0 %v7112_v26  ;;  %7599 = vmatmul.mubr.bf16.vlgmr.msra.gmra.mrb[60].mxu1 %v7112_v26 }
 0xa66   :  { %v7557_v25 = vpop.f32.mrb[60].mxu0  ;;  %v7600_v44 = vpop.f32.mrb[60].mxu1 }
 0xa67   :  { %v7558_v56 = vadd.f32 %v7557_v25, %v7186_v59  ;;  %v7559_v12 = vpop.f32.mrb[61].mxu0  ;;  %v7602_v52 = vpop.f32.mrb[61].mxu1  ;;  %v7601_v50 = vadd.f32 %v7600_v44, %v7194_v54 }
 0xa68   :  { %v7560_v37 = vadd.f32 %v7559_v12, %v7190_v14  ;;  %v7561_v35 = vpop.f32.mrb[62].mxu0  ;;  %v7604_v42 = vpop.f32.mrb[62].mxu1  ;;  %v7603_v9 = vadd.f32 %v7602_v52, %v7198_v24 }
 0xa69   :  { %v8573_v40 = vmul.f32 -1.442695, %v7558_v56  ;;  %v7562_v36 = vadd.f32 %v7561_v35, %v7186_v59  ;;  %v7563_v5 = vpop.f32.mrb[63].mxu0  ;;  %v7606_v49 = vpop.f32.mrb[63].mxu1  ;;  %v7605_v23 = vadd.f32 %v7604_v42, %v7194_v54  ;;  %v8575_v16 = vmul.f32 -1.442695, %v7601_v50 }
 0xa6a   :  { %v8574_v41 = vmul.f32 -1.442695, %v7560_v37  ;;  %v7564_v29 = vadd.f32 %v7563_v5, %v7190_v14  ;;  %v7607_v19 = vadd.f32 %v7606_v49, %v7198_v24 }
 0xa6b   :  { %9781 = vpow2.f32 %v8573_v40  ;;  %v8576_v3 = vmul.f32 -1.442695, %v7562_v36  ;;  %v8578_v0 = vmul.f32 -1.442695, %v7605_v23 }
 0xa6c   :  { %v8577_v4 = vmul.f32 -1.442695, %v7564_v29  ;;  %9783 = vpow2.f32 %v8574_v41 }
 0xa6d   :  { %9785 = vpow2.f32 %v8576_v3 }
 0xa6e   :  { %9787 = vpow2.f32 %v8577_v4 }
 0xa6f   :  { %9789 = vtanh.f32 %v7603_v9 }
 0xa70   :  { %9791 = vpow2.f32 %v8575_v16 }
 0xa71   :  { %9793 = vpow2.f32 %v8578_v0 }
 0xa75   :  { %v9782_v55 = vpop.eup %9781 }
 0xa76   :  { %v7627_v8 = vadd.f32 1.0, %v9782_v55  ;;  %v9784_v34 = vpop.eup %9783 }
 0xa77   :  { %v9786_v58 = vpop.eup %9785  ;;  %v7628_v22 = vadd.f32 1.0, %v9784_v34 }
 0xa78   :  { %9795 = vrcp.f32 %v7627_v8  ;;  %v7630_v33 = vadd.f32 1.0, %v9786_v58  ;;  %v9788_v51 = vpop.eup %9787 }
 0xa79   :  { %9797 = vtanh.f32 %v7607_v19  ;;  %v7631_v1 = vadd.f32 1.0, %v9788_v51  ;;  %v9790_v57 = vpop.eup %9789 }
 0xa7a   :  { %9799 = vrcp.f32 %v7628_v22  ;;  %v9792_v63 = vpop.eup %9791 }
 0xa7b   :  { %9801 = vrcp.f32 %v7630_v33  ;;  %v9794_v43 = vpop.eup %9793  ;;  %v7629_v10 = vadd.f32 1.0, %v9792_v63 }
 0xa7c   :  { %9803 = vrcp.f32 %v7631_v1  ;;  %v7632_v61 = vadd.f32 1.0, %v9794_v43 }
 0xa7d   :  { %9805 = vrcp.f32 %v7629_v10 }
 0xa82   :  { %v9796_v13 = vpop.eup %9795 }
 0xa83   :  { %v9798_v28 = vpop.eup %9797  ;;  %v7651_v48 = vmul.f32 %v9796_v13, %v9790_v57 }
 0xa84   :  { %v9800_v20 = vpop.eup %9799 }
 0xa85   :  { %v9802_v21 = vpop.eup %9801  ;;  %v7649_v15 = vmul.f32 %v9800_v20, %v11726_v39 }
 0xa86   :  { %v7652_v6 = vmul.f32 %v9802_v21, %v9798_v28  ;;  %v9804_v62 = vpop.eup %9803 }
 0xa87   :  { %v7653_v27 = vadd.f32 %v7651_v48, %v7649_v15  ;;  %v7650_v2 = vmul.f32 %v9804_v62, %v11733_v30  ;;  %v9806_v7 = vpop.eup %9805 }
 0xa89   :  { %9807 = vtanh.f32 %v7653_v27  ;;  %v7654_v47 = vadd.f32 %v7652_v6, %v7650_v2 }
 0xa8a   :  { %9809 = vrcp.f32 %v7632_v61 }
 0xa8b   :  { %9811 = vtanh.f32 %v7654_v47 }
 0xa93   :  { %v9808_v18 = vpop.eup %9807 }
 0xa94   :  { %v7657_v11 = vmul.f32 %v9808_v18, %v9806_v7  ;;  %v9810_v31 = vpop.eup %9809 }
 0xa95   :  { %v9812_v17 = vpop.eup %9811 }
 0xa96   :  { %v7658_v46 = vmul.f32 %v9812_v17, %v9810_v31 }
 0xa98   :  { %v7659_v39 = vpack.c.bf16 %v7658_v46, %v7657_v11 }
 0xa9a   :  { %v7667_v38 = vunpack.c.l.bf16 %v7659_v39  ;;  %v7668_v45 = vunpack.c.h.bf16 %v7659_v39 }
 0xa9c   :  { %7669 = vst [vmem:[#allocation12] sm:$0xff] %v7667_v38  ;;  %7670 = vst [vmem:[#allocation12 + $0x8] sm:$0xff] %v7668_v45 }
 0xa9d   :  { %9902 = shalt.err (!%p9899_p6)
}
 0xa9e   :  { %s9903_s7 = scalar_lea.hbm %s11770_s6, 256 }
 0xa9f   :  { %p9904_p7 = scmp.ne.s32.totalorder %s11770_s6, %s9903_s7  ;;  %p9907_p8 = scmp.lt.u32.totalorder %s9903_s7, %s11770_s6 }
 0xaa1   :  { %p9909_p9 = pnand %p9907_p8, %p9904_p7 }
 0xaa3   :  { %9912 = shalt.err (!%p9909_p9)
}
 0xaa4   :  { %s9926_s12 = smov 128   ;;  %s9927_s13 = smov 8  }
 0xaa5   :  { %7682 = dma.vmem_to_hbm [thread:$0]  %s7677_s27, 256, %s11770_s6, [#allocation9], %s9926_s12, %s9926_s12, %s9927_s13  }
 0xaa6   :  { %9917 = dma.done.wait [#allocation9], 256  }
 0xaa7   :  { %9918 = vsyncadd [#allocation9], 4294967040 }
 0xaa8   :  { %7686 = vsyncpa [#allocation8], 1 }
 0xaa9   :  { %7687 = vsyncpa [#allocation11], 1 }
 0xaaa   :  { %7688 = vsyncpa [#allocation9], 1 }

</bundles_post_ra>
